<compile_context>
chip_gen: v6e
topology: v6e:2x2x1
jax: 0.10.0
libtpu: 0.0.40
codegen_flags: <defaults>
</compile_context>

<pallas_src>
import math
from functools import partial

import numpy as np
import jax
import jax.numpy as jnp
from jax.experimental import pallas as pl
from jax.experimental.pallas import tpu as pltpu

# ---------------- configuration (small shapes consistent with the module) ----
B = 2                    # batch
WIN_SIZE = 8             # L (must be divisible by every patch size)
ENC_IN = 4               # M (number of variates)
CHANNEL = ENC_IN         # DAC channel-group size must equal M
D_MODEL = 32
N_HEADS = 1
E_LAYERS = 2
PATCH_SIZE = (2, 4)
C_OUT = 4                # unused by the returned attention maps
EPS = 1e-5
N_MAPS = len(PATCH_SIZE) * E_LAYERS          # 4 series maps (= 4 prior maps)
OUT_LANES = B * 2 * N_MAPS * WIN_SIZE        # 128 -> one dense vreg store


# ---------------- positional embedding (same formula as PositionalEmbedding) -
def positional_embedding(max_len, d_model):
    pos = np.arange(max_len, dtype=np.float32)[:, None]
    div = np.exp(np.arange(0, d_model, 2, dtype=np.float32)
                 * -(math.log(10000.0) / d_model))
    pe = np.zeros((max_len, d_model), dtype=np.float32)
    pe[:, 0::2] = np.sin(pos * div)
    pe[:, 1::2] = np.cos(pos * div)
    return jnp.asarray(pe)


def _upsample_mat(kind, p):
    """U (L, t) with U @ A @ U.T == repeat(A, p, p)  (series, t = L//p)
                               or  tile(A, (n, n))   (prior,  t = p)."""
    t = WIN_SIZE // p if kind == "series" else p
    u = np.zeros((WIN_SIZE, t), np.float32)
    if kind == "series":
        u[np.arange(WIN_SIZE), np.arange(WIN_SIZE) // p] = 1.0
    else:
        u[np.arange(WIN_SIZE), np.arange(WIN_SIZE) % p] = 1.0
    return u


# ---------------- constant packing (call ONCE, outside jit) -------------------
def pack_constants(params):
    """Pack every trace-time constant into ONE (rows, 128) f32 slab.
    Returns (slab, meta) with meta holding only static python offsets."""
    scale = 1.0 / math.sqrt(D_MODEL // N_HEADS)
    bm = B * ENC_IN
    pe = np.asarray(params["pe"], np.float32)

    entries = []
    off = 0

    def put(arr):
        nonlocal off
        arr = np.asarray(arr, np.float32)
        r, c = arr.shape
        rp = -(-r // 8) * 8                        # 8-sublane padded rows
        buf = np.zeros((rp, 128), np.float32)
        buf[:r, :c] = arr
        entries.append(buf)
        slc = (off, r, c)
        off += rp
        return slc

    branches = []
    data_off = bm                                  # rows [0,bm) of data slab = (B*M,L)
    row0 = 0                                       # row offset inside emb_all
    for pi, p in enumerate(PATCH_SIZE):
        n = WIN_SIZE // p
        for kind, t, c, w in (("series", n, p, params["w_ps"][pi]),
                              ("prior", p, n, params["w_pn"][pi])):
            w = np.asarray(w, np.float32)          # (3, c, D)
            r_rows = bm * t
            eye_bm = np.eye(bm, dtype=np.float32)
            u = _upsample_mat(kind, p)             # (L, t)
            k_base = (0 if kind == "series" else N_MAPS) + pi * E_LAYERS
            rmats = []
            for lyr in range(E_LAYERS):
                k_map = k_base + lyr
                rmat = np.zeros((r_rows, OUT_LANES), np.float32)
                for b in range(B):
                    lane0 = (b * 2 * N_MAPS + k_map) * WIN_SIZE
                    for m in range(ENC_IN):
                        rr = (b * ENC_IN + m) * t
                        rmat[rr:rr + t, lane0:lane0 + WIN_SIZE] = u.T
                rmats.append(put(rmat))
            blk = np.kron(eye_bm, np.ones((t, t), np.float32))
            branches.append(dict(
                t=t, c=c, rows=r_rows, row0=row0,
                data=(data_off, r_rows, c),
                bcast=put(np.kron(eye_bm, np.ones((t, 1), np.float32))),
                sp=put(np.kron(eye_bm, np.roll(np.eye(t, dtype=np.float32), -1, 1))),
                sm=put(np.kron(eye_bm, np.roll(np.eye(t, dtype=np.float32), 1, 1))),
                w0=put(w[0]), w1=put(w[1]), w2=put(w[2]),
                pe=put(np.tile(pe[:t], (bm, 1))),
                mask=put((blk - 1.0) * 1e30),      # 0 on-block, -1e30 off-block
                lmat=put(np.tile(u / ENC_IN, (1, bm))),
                rmat=tuple(rmats),
            ))
            data_off += r_rows
            row0 += r_rows

    layers = []
    for lyr in range(E_LAYERS):
        layers.append(dict(
            wq=put(np.asarray(params["wq"][lyr], np.float32) * scale),
            bq=put((np.asarray(params["bq"][lyr], np.float32) * scale)[None, :]),
            wk=put(np.asarray(params["wk"][lyr], np.float32)),
            bk=put(np.asarray(params["bk"][lyr], np.float32)[None, :]),
        ))

    slab = np.concatenate(entries, axis=0)
    meta = dict(branches=tuple(branches), layers=tuple(layers),
                x_vm=(0, bm, WIN_SIZE), data_rows=data_off, emb_rows=row0)
    return jnp.asarray(slab), meta


# ---------------- the single fused kernel ------------------------------------
def _detector_kernel(data_ref, const_ref, o_ref, *, meta):
    branches = meta["branches"]
    layers = meta["layers"]

    def cget(slc):                                 # static slab slice -> load
        o, r, c = slc
        return const_ref[o:o + r, 0:c]

    def dget(slc):
        o, r, c = slc
        return data_ref[o:o + r, 0:c]

    def bdot(a, b):                                # bf16 MXU operands, f32 acc
        return jnp.dot(a.astype(jnp.bfloat16), b.astype(jnp.bfloat16),
                       preferred_element_type=jnp.float32)

    # ---- RevIN statistics (per variate over time), kept in f32 -------------
    xo, xr, xc = meta["x_vm"]
    x_vm = data_ref[xo:xo + xr, 0:xc]              # (B*M, L) raw
    inv_l = 1.0 / xc
    mu = jnp.sum(x_vm, axis=-1, keepdims=True) * inv_l
    msq = jnp.sum(x_vm * x_vm, axis=-1, keepdims=True) * inv_l
    var = jnp.maximum(msq - mu * mu, 0.0)          # clamp -> no NaN from rsqrt
    rstd = jax.lax.rsqrt(var + EPS)

    # ---- per-branch: fused RevIN apply + circular conv1d(k=3) embedding ----
    embs = []
    for br in branches:
        x_br = dget(br["data"])                    # raw (R, c) branch view
        bc = cget(br["bcast"])                     # (R, B*M) 0/1 replication
        mu_row = jnp.dot(bc, mu, preferred_element_type=jnp.float32)
        rs_row = jnp.dot(bc, rstd, preferred_element_type=jnp.float32)
        xn = (x_br - mu_row) * rs_row              # RevIN 'norm'
        xp = bdot(cget(br["sp"]), xn)              # x[t-1]  (circular, in VMEM)
        xm = bdot(cget(br["sm"]), xn)              # x[t+1]
        emb = (bdot(xp, cget(br["w0"])) + bdot(xn, cget(br["w1"]))
               + bdot(xm, cget(br["w2"])) + cget(br["pe"]))
        embs.append(emb)
    emb_all = jnp.concatenate(embs, axis=0)        # (96, D), sublane-aligned

    # ---- per-layer Q / K projections (attention scale folded into wq/bq) ---
    q_all = [bdot(emb_all, cget(ly["wq"])) + cget(ly["bq"]) for ly in layers]
    k_all = [bdot(emb_all, cget(ly["wk"])) + cget(ly["bk"]) for ly in layers]

    # ---- DAC attention: block-diag masked softmax, folded mean/upsample ----
    out = jnp.zeros(o_ref.shape, jnp.float32)      # (L, 128) = one vreg
    for br in branches:
        r0, rr = br["row0"], br["rows"]
        mask = cget(br["mask"])                    # 0 on-block, -1e30 off-block
        lmat = cget(br["lmat"])                    # (L, R): channel mean + upsample
        for lyr in range(len(layers)):
            q = q_all[lyr][r0:r0 + rr, :]
            k = k_all[lyr][r0:r0 + rr, :]
            s = jax.lax.dot_general(               # (R, R) scores, one matmul
                q.astype(jnp.bfloat16), k.astype(jnp.bfloat16),
                (((1,), (1,)), ((), ())),
                preferred_element_type=jnp.float32) + mask
            s = s - jnp.max(s, axis=-1, keepdims=True)
            e = jnp.exp(s)                         # off-block -> exp(-1e30) = 0
            p = e * pl.reciprocal(jnp.sum(e, axis=-1, keepdims=True), approx=True)
            # channel mean + repeat/tile upsample + per-(batch,map) lane
            # placement are all folded into the two constant operands.
            out = out + bdot(bdot(lmat, p), cget(br["rmat"][lyr]))
    o_ref[...] = out                               # single dense 128-lane store


# ---------------- Detector.forward -------------------------------------------
def detector_forward(x, const_slab, *, meta):
    b, l, m = x.shape
    bm = b * m
    # x_ori (= embedding_window_size(x)), V/out projections, encoder LayerNorm
    # and self.projection never reach the returned attention maps -> skipped.
    # TODO(synk): n_heads > 1 head splitting is not implemented (default is 1).
    x_vm = jnp.transpose(x, (0, 2, 1)).reshape(bm, l)          # (B*M, L), raw
    pieces = [x_vm]
    for br in meta["branches"]:
        xb = x_vm.reshape(bm, br["t"], br["c"]).reshape(bm * br["t"], br["c"])
        pieces.append(jnp.pad(xb, ((0, 0), (0, l - br["c"]))))
    data_slab = jnp.concatenate(pieces, axis=0)                # (104, 8)

    kern = partial(_detector_kernel, meta=meta)
    slab = pl.pallas_call(
        kern,
        out_shape=jax.ShapeDtypeStruct((l, OUT_LANES), jnp.float32),
        grid=(1,),
        in_specs=[pl.BlockSpec(data_slab.shape, lambda i: (0, 0)),
                  pl.BlockSpec(const_slab.shape, lambda i: (0, 0))],
        out_specs=pl.BlockSpec((l, OUT_LANES), lambda i: (0, 0)),
        compiler_params=pltpu.CompilerParams(
            dimension_semantics=("arbitrary",)),
    )(data_slab, const_slab)

    # lane index = (b * 8 + map) * L + col  ->  (B, 8, L, L)
    maps = slab.reshape(l, b, 2 * N_MAPS, l).transpose(1, 2, 0, 3)
    series_out = [maps[:, k][:, None] for k in range(N_MAPS)]
    prior_out = [maps[:, N_MAPS + k][:, None] for k in range(N_MAPS)]
    return series_out, prior_out


# ---------------- parameters (deterministic synthetic init) ------------------
def init_params(key):
    ks = jax.random.split(key, 7)

    def conv_w(k, cin):                            # (3, Cin, D)
        return jax.random.normal(k, (3, cin, D_MODEL), jnp.float32) \
            * (1.0 / math.sqrt(3 * cin))

    params = {"pe": positional_embedding(WIN_SIZE, D_MODEL),
              "w_win": conv_w(ks[0], ENC_IN)}      # dead path, kept for parity
    kp = jax.random.split(ks[1], len(PATCH_SIZE))
    kn = jax.random.split(ks[2], len(PATCH_SIZE))
    params["w_ps"] = [conv_w(kp[i], p) for i, p in enumerate(PATCH_SIZE)]
    params["w_pn"] = [conv_w(kn[i], WIN_SIZE // p)
                      for i, p in enumerate(PATCH_SIZE)]
    s = 1.0 / math.sqrt(D_MODEL)
    kq = jax.random.split(ks[3], E_LAYERS)
    kk = jax.random.split(ks[4], E_LAYERS)
    kb = jax.random.split(ks[5], E_LAYERS)
    kc = jax.random.split(ks[6], E_LAYERS)
    params["wq"] = [jax.random.normal(kq[i], (D_MODEL, D_MODEL), jnp.float32) * s
                    for i in range(E_LAYERS)]
    params["wk"] = [jax.random.normal(kk[i], (D_MODEL, D_MODEL), jnp.float32) * s
                    for i in range(E_LAYERS)]
    params["bq"] = [jax.random.normal(kb[i], (D_MODEL,), jnp.float32) * s
                    for i in range(E_LAYERS)]
    params["bk"] = [jax.random.normal(kc[i], (D_MODEL,), jnp.float32) * s
                    for i in range(E_LAYERS)]
    return params


# ---------------- pure-JAX reference for a sanity check ----------------------
def reference_forward(x, params):
    b, l, m = x.shape
    mu = jnp.mean(x, axis=1, keepdims=True)
    std = jnp.sqrt(jnp.var(x, axis=1, keepdims=True) + 1e-5)
    xn = (x - mu) / std

    def embed(xe, w, pe):
        return (jnp.einsum("ntc,cd->ntd", jnp.roll(xe, 1, axis=1), w[0])
                + jnp.einsum("ntc,cd->ntd", xe, w[1])
                + jnp.einsum("ntc,cd->ntd", jnp.roll(xe, -1, axis=1), w[2]) + pe)

    scale = 1.0 / math.sqrt(D_MODEL // N_HEADS)
    series_out, prior_out = [], []
    for pi, p in enumerate(PATCH_SIZE):
        n = WIN_SIZE // p
        x_bm = jnp.transpose(xn, (0, 2, 1)).reshape(b * m, l)
        emb_ps = embed(x_bm.reshape(b * m, n, p), params["w_ps"][pi], params["pe"][:n])
        emb_pn = embed(x_bm.reshape(b * m, p, n), params["w_pn"][pi], params["pe"][:p])
        for layer in range(E_LAYERS):
            def attn_mean(e):
                q = e @ params["wq"][layer] + params["bq"][layer]
                k = e @ params["wk"][layer] + params["bk"][layer]
                s = jnp.einsum("bld,bsd->bls", q, k) * scale
                a = jax.nn.softmax(s, axis=-1)
                return jnp.mean(a.reshape(b, m, *a.shape[1:]), axis=1)
            ser, pri = attn_mean(emb_ps), attn_mean(emb_pn)
            series_out.append(jnp.repeat(jnp.repeat(ser, p, -2), p, -1)[:, None])
            prior_out.append(jnp.tile(pri, (1, n, n))[:, None])
    return series_out, prior_out


# ---------------- main --------------------------------------------------------
if __name__ == "__main__":
    key = jax.random.PRNGKey(0)
    k_x, k_p = jax.random.split(key)
    x = jax.random.normal(k_x, (B, WIN_SIZE, ENC_IN), dtype=jnp.float32)
    params = init_params(k_p)

    const_slab, meta = pack_constants(params)      # one-time weight packing
    fwd = jax.jit(partial(detector_forward, meta=meta))
    series, prior = fwd(x, const_slab)
    jax.block_until_ready(series + prior)

    series_ref, prior_ref = reference_forward(x, params)
    for got, want in zip(series + prior, series_ref + prior_ref):
        assert got.shape == want.shape == (B, N_HEADS, WIN_SIZE, WIN_SIZE)
        assert np.allclose(np.asarray(got), np.asarray(want),
                           rtol=2e-2, atol=2e-2)
    assert len(series) == len(PATCH_SIZE) * E_LAYERS
    print("KERNEL_OK")
</pallas_src>

<mosaic_0001>
module attributes {stable_mosaic.version = 11 : i64} {
  func.func @_detector_kernel(%arg0: i32, %arg1: memref<104x8xf32, #tpu.memory_space<vmem>>, %arg2: memref<960x128xf32, #tpu.memory_space<vmem>>, %arg3: memref<8x128xf32, #tpu.memory_space<vmem>>) attributes {dimension_semantics = [#tpu.dimension_semantics<arbitrary>], iteration_bounds = array<i64: 1>, scalar_prefetch = 0 : i64, scratch_operands = 0 : i64, tpu.core_type = #tpu.core_type<tc>, window_params = [{pipeline_mode = #tpu.pipeline_mode<synchronous>, transform_indices = @transform_0, window_bounds = array<i64: 104, 8>}, {pipeline_mode = #tpu.pipeline_mode<synchronous>, transform_indices = @transform_1, window_bounds = array<i64: 960, 128>}, {pipeline_mode = #tpu.pipeline_mode<synchronous>, transform_indices = @transform_2, window_bounds = array<i64: 8, 128>}]} {
    %c0 = arith.constant 0 : index
    %c0_0 = arith.constant 0 : index
    %0 = vector.load %arg1[%c0, %c0_0] : memref<104x8xf32, #tpu.memory_space<vmem>>, vector<8x8xf32>
    %cst = arith.constant dense<0.000000e+00> : vector<8xf32>
    %1 = vector.multi_reduction <add>, %0, %cst [1] : vector<8x8xf32> to vector<8xf32>
    %2 = vector.shape_cast %1 : vector<8xf32> to vector<8x1xf32>
    %cst_1 = arith.constant 1.250000e-01 : f32
    %3 = vector.broadcast %cst_1 : f32 to vector<8x1xf32>
    %4 = arith.mulf %2, %3 : vector<8x1xf32>
    %5 = arith.mulf %0, %0 : vector<8x8xf32>
    %cst_2 = arith.constant dense<0.000000e+00> : vector<8xf32>
    %6 = vector.multi_reduction <add>, %5, %cst_2 [1] : vector<8x8xf32> to vector<8xf32>
    %7 = vector.shape_cast %6 : vector<8xf32> to vector<8x1xf32>
    %cst_3 = arith.constant 1.250000e-01 : f32
    %8 = vector.broadcast %cst_3 : f32 to vector<8x1xf32>
    %9 = arith.mulf %7, %8 : vector<8x1xf32>
    %10 = arith.mulf %4, %4 : vector<8x1xf32>
    %11 = arith.subf %9, %10 : vector<8x1xf32>
    %cst_4 = arith.constant 0.000000e+00 : f32
    %12 = vector.broadcast %cst_4 : f32 to vector<8x1xf32>
    %13 = arith.maximumf %11, %12 : vector<8x1xf32>
    %cst_5 = arith.constant 9.99999974E-6 : f32
    %14 = vector.broadcast %cst_5 : f32 to vector<8x1xf32>
    %15 = arith.addf %13, %14 : vector<8x1xf32>
    %16 = math.rsqrt %15 : vector<8x1xf32>
    %c8 = arith.constant 8 : index
    %c0_6 = arith.constant 0 : index
    %17 = vector.load %arg1[%c8, %c0_6] : memref<104x8xf32, #tpu.memory_space<vmem>>, vector<32x2xf32>
    %c64 = arith.constant 64 : index
    %c0_7 = arith.constant 0 : index
    %18 = vector.load %arg2[%c64, %c0_7] : memref<960x128xf32, #tpu.memory_space<vmem>>, vector<32x8xf32>
    %cst_8 = arith.constant dense<0.000000e+00> : vector<32x1xf32>
    %19 = tpu.matmul %18, %4, %cst_8 {dimension_numbers = #tpu.dot_dimension_numbers<[1], [0], [0], [1], [0, 0, 1, 1], [], []>} : vector<32x8xf32>, vector<8x1xf32>, vector<32x1xf32> -> vector<32x1xf32>
    %cst_9 = arith.constant dense<0.000000e+00> : vector<32x1xf32>
    %20 = tpu.matmul %18, %16, %cst_9 {dimension_numbers = #tpu.dot_dimension_numbers<[1], [0], [0], [1], [0, 0, 1, 1], [], []>} : vector<32x8xf32>, vector<8x1xf32>, vector<32x1xf32> -> vector<32x1xf32>
    %21 = vector.broadcast %19 : vector<32x1xf32> to vector<32x2xf32>
    %22 = arith.subf %17, %21 : vector<32x2xf32>
    %23 = vector.broadcast %20 : vector<32x1xf32> to vector<32x2xf32>
    %24 = arith.mulf %22, %23 : vector<32x2xf32>
    %c96 = arith.constant 96 : index
    %c0_10 = arith.constant 0 : index
    %25 = vector.load %arg2[%c96, %c0_10] : memref<960x128xf32, #tpu.memory_space<vmem>>, vector<32x32xf32>
    %26 = arith.truncf %25 : vector<32x32xf32> to vector<32x32xbf16>
    %27 = arith.truncf %24 : vector<32x2xf32> to vector<32x2xbf16>
    %cst_11 = arith.constant dense<0.000000e+00> : vector<32x2xf32>
    %28 = tpu.matmul %26, %27, %cst_11 {dimension_numbers = #tpu.dot_dimension_numbers<[1], [0], [0], [1], [0, 0, 1, 1], [], []>} : vector<32x32xbf16>, vector<32x2xbf16>, vector<32x2xf32> -> vector<32x2xf32>
    %c128 = arith.constant 128 : index
    %c0_12 = arith.constant 0 : index
    %29 = vector.load %arg2[%c128, %c0_12] : memref<960x128xf32, #tpu.memory_space<vmem>>, vector<32x32xf32>
    %30 = arith.truncf %29 : vector<32x32xf32> to vector<32x32xbf16>
    %31 = arith.truncf %24 : vector<32x2xf32> to vector<32x2xbf16>
    %cst_13 = arith.constant dense<0.000000e+00> : vector<32x2xf32>
    %32 = tpu.matmul %30, %31, %cst_13 {dimension_numbers = #tpu.dot_dimension_numbers<[1], [0], [0], [1], [0, 0, 1, 1], [], []>} : vector<32x32xbf16>, vector<32x2xbf16>, vector<32x2xf32> -> vector<32x2xf32>
    %c160 = arith.constant 160 : index
    %c0_14 = arith.constant 0 : index
    %33 = vector.load %arg2[%c160, %c0_14] : memref<960x128xf32, #tpu.memory_space<vmem>>, vector<2x32xf32>
    %34 = arith.truncf %28 : vector<32x2xf32> to vector<32x2xbf16>
    %35 = arith.truncf %33 : vector<2x32xf32> to vector<2x32xbf16>
    %cst_15 = arith.constant dense<0.000000e+00> : vector<32x32xf32>
    %36 = tpu.matmul %34, %35, %cst_15 {dimension_numbers = #tpu.dot_dimension_numbers<[1], [0], [0], [1], [0, 0, 1, 1], [], []>} : vector<32x2xbf16>, vector<2x32xbf16>, vector<32x32xf32> -> vector<32x32xf32>
    %c168 = arith.constant 168 : index
    %c0_16 = arith.constant 0 : index
    %37 = vector.load %arg2[%c168, %c0_16] : memref<960x128xf32, #tpu.memory_space<vmem>>, vector<2x32xf32>
    %38 = arith.truncf %24 : vector<32x2xf32> to vector<32x2xbf16>
    %39 = arith.truncf %37 : vector<2x32xf32> to vector<2x32xbf16>
    %cst_17 = arith.constant dense<0.000000e+00> : vector<32x32xf32>
    %40 = tpu.matmul %38, %39, %cst_17 {dimension_numbers = #tpu.dot_dimension_numbers<[1], [0], [0], [1], [0, 0, 1, 1], [], []>} : vector<32x2xbf16>, vector<2x32xbf16>, vector<32x32xf32> -> vector<32x32xf32>
    %41 = arith.addf %36, %40 : vector<32x32xf32>
    %c176 = arith.constant 176 : index
    %c0_18 = arith.constant 0 : index
    %42 = vector.load %arg2[%c176, %c0_18] : memref<960x128xf32, #tpu.memory_space<vmem>>, vector<2x32xf32>
    %43 = arith.truncf %32 : vector<32x2xf32> to vector<32x2xbf16>
    %44 = arith.truncf %42 : vector<2x32xf32> to vector<2x32xbf16>
    %cst_19 = arith.constant dense<0.000000e+00> : vector<32x32xf32>
    %45 = tpu.matmul %43, %44, %cst_19 {dimension_numbers = #tpu.dot_dimension_numbers<[1], [0], [0], [1], [0, 0, 1, 1], [], []>} : vector<32x2xbf16>, vector<2x32xbf16>, vector<32x32xf32> -> vector<32x32xf32>
    %46 = arith.addf %41, %45 : vector<32x32xf32>
    %c184 = arith.constant 184 : index
    %c0_20 = arith.constant 0 : index
    %47 = vector.load %arg2[%c184, %c0_20] : memref<960x128xf32, #tpu.memory_space<vmem>>, vector<32x32xf32>
    %48 = arith.addf %46, %47 : vector<32x32xf32>
    %c40 = arith.constant 40 : index
    %c0_21 = arith.constant 0 : index
    %49 = vector.load %arg1[%c40, %c0_21] : memref<104x8xf32, #tpu.memory_space<vmem>>, vector<16x4xf32>
    %c288 = arith.constant 288 : index
    %c0_22 = arith.constant 0 : index
    %50 = vector.load %arg2[%c288, %c0_22] : memref<960x128xf32, #tpu.memory_space<vmem>>, vector<16x8xf32>
    %cst_23 = arith.constant dense<0.000000e+00> : vector<16x1xf32>
    %51 = tpu.matmul %50, %4, %cst_23 {dimension_numbers = #tpu.dot_dimension_numbers<[1], [0], [0], [1], [0, 0, 1, 1], [], []>} : vector<16x8xf32>, vector<8x1xf32>, vector<16x1xf32> -> vector<16x1xf32>
    %cst_24 = arith.constant dense<0.000000e+00> : vector<16x1xf32>
    %52 = tpu.matmul %50, %16, %cst_24 {dimension_numbers = #tpu.dot_dimension_numbers<[1], [0], [0], [1], [0, 0, 1, 1], [], []>} : vector<16x8xf32>, vector<8x1xf32>, vector<16x1xf32> -> vector<16x1xf32>
    %53 = vector.broadcast %51 : vector<16x1xf32> to vector<16x4xf32>
    %54 = arith.subf %49, %53 : vector<16x4xf32>
    %55 = vector.broadcast %52 : vector<16x1xf32> to vector<16x4xf32>
    %56 = arith.mulf %54, %55 : vector<16x4xf32>
    %c304 = arith.constant 304 : index
    %c0_25 = arith.constant 0 : index
    %57 = vector.load %arg2[%c304, %c0_25] : memref<960x128xf32, #tpu.memory_space<vmem>>, vector<16x16xf32>
    %58 = arith.truncf %57 : vector<16x16xf32> to vector<16x16xbf16>
    %59 = arith.truncf %56 : vector<16x4xf32> to vector<16x4xbf16>
    %cst_26 = arith.constant dense<0.000000e+00> : vector<16x4xf32>
    %60 = tpu.matmul %58, %59, %cst_26 {dimension_numbers = #tpu.dot_dimension_numbers<[1], [0], [0], [1], [0, 0, 1, 1], [], []>} : vector<16x16xbf16>, vector<16x4xbf16>, vector<16x4xf32> -> vector<16x4xf32>
    %c320 = arith.constant 320 : index
    %c0_27 = arith.constant 0 : index
    %61 = vector.load %arg2[%c320, %c0_27] : memref<960x128xf32, #tpu.memory_space<vmem>>, vector<16x16xf32>
    %62 = arith.truncf %61 : vector<16x16xf32> to vector<16x16xbf16>
    %63 = arith.truncf %56 : vector<16x4xf32> to vector<16x4xbf16>
    %cst_28 = arith.constant dense<0.000000e+00> : vector<16x4xf32>
    %64 = tpu.matmul %62, %63, %cst_28 {dimension_numbers = #tpu.dot_dimension_numbers<[1], [0], [0], [1], [0, 0, 1, 1], [], []>} : vector<16x16xbf16>, vector<16x4xbf16>, vector<16x4xf32> -> vector<16x4xf32>
    %c336 = arith.constant 336 : index
    %c0_29 = arith.constant 0 : index
    %65 = vector.load %arg2[%c336, %c0_29] : memref<960x128xf32, #tpu.memory_space<vmem>>, vector<4x32xf32>
    %66 = arith.truncf %60 : vector<16x4xf32> to vector<16x4xbf16>
    %67 = arith.truncf %65 : vector<4x32xf32> to vector<4x32xbf16>
    %cst_30 = arith.constant dense<0.000000e+00> : vector<16x32xf32>
    %68 = tpu.matmul %66, %67, %cst_30 {dimension_numbers = #tpu.dot_dimension_numbers<[1], [0], [0], [1], [0, 0, 1, 1], [], []>} : vector<16x4xbf16>, vector<4x32xbf16>, vector<16x32xf32> -> vector<16x32xf32>
    %c344 = arith.constant 344 : index
    %c0_31 = arith.constant 0 : index
    %69 = vector.load %arg2[%c344, %c0_31] : memref<960x128xf32, #tpu.memory_space<vmem>>, vector<4x32xf32>
    %70 = arith.truncf %56 : vector<16x4xf32> to vector<16x4xbf16>
    %71 = arith.truncf %69 : vector<4x32xf32> to vector<4x32xbf16>
    %cst_32 = arith.constant dense<0.000000e+00> : vector<16x32xf32>
    %72 = tpu.matmul %70, %71, %cst_32 {dimension_numbers = #tpu.dot_dimension_numbers<[1], [0], [0], [1], [0, 0, 1, 1], [], []>} : vector<16x4xbf16>, vector<4x32xbf16>, vector<16x32xf32> -> vector<16x32xf32>
    %73 = arith.addf %68, %72 : vector<16x32xf32>
    %c352 = arith.constant 352 : index
    %c0_33 = arith.constant 0 : index
    %74 = vector.load %arg2[%c352, %c0_33] : memref<960x128xf32, #tpu.memory_space<vmem>>, vector<4x32xf32>
    %75 = arith.truncf %64 : vector<16x4xf32> to vector<16x4xbf16>
    %76 = arith.truncf %74 : vector<4x32xf32> to vector<4x32xbf16>
    %cst_34 = arith.constant dense<0.000000e+00> : vector<16x32xf32>
    %77 = tpu.matmul %75, %76, %cst_34 {dimension_numbers = #tpu.dot_dimension_numbers<[1], [0], [0], [1], [0, 0, 1, 1], [], []>} : vector<16x4xbf16>, vector<4x32xbf16>, vector<16x32xf32> -> vector<16x32xf32>
    %78 = arith.addf %73, %77 : vector<16x32xf32>
    %c360 = arith.constant 360 : index
    %c0_35 = arith.constant 0 : index
    %79 = vector.load %arg2[%c360, %c0_35] : memref<960x128xf32, #tpu.memory_space<vmem>>, vector<16x32xf32>
    %80 = arith.addf %78, %79 : vector<16x32xf32>
    %c56 = arith.constant 56 : index
    %c0_36 = arith.constant 0 : index
    %81 = vector.load %arg1[%c56, %c0_36] : memref<104x8xf32, #tpu.memory_space<vmem>>, vector<16x4xf32>
    %c432 = arith.constant 432 : index
    %c0_37 = arith.constant 0 : index
    %82 = vector.load %arg2[%c432, %c0_37] : memref<960x128xf32, #tpu.memory_space<vmem>>, vector<16x8xf32>
    %cst_38 = arith.constant dense<0.000000e+00> : vector<16x1xf32>
    %83 = tpu.matmul %82, %4, %cst_38 {dimension_numbers = #tpu.dot_dimension_numbers<[1], [0], [0], [1], [0, 0, 1, 1], [], []>} : vector<16x8xf32>, vector<8x1xf32>, vector<16x1xf32> -> vector<16x1xf32>
    %cst_39 = arith.constant dense<0.000000e+00> : vector<16x1xf32>
    %84 = tpu.matmul %82, %16, %cst_39 {dimension_numbers = #tpu.dot_dimension_numbers<[1], [0], [0], [1], [0, 0, 1, 1], [], []>} : vector<16x8xf32>, vector<8x1xf32>, vector<16x1xf32> -> vector<16x1xf32>
    %85 = vector.broadcast %83 : vector<16x1xf32> to vector<16x4xf32>
    %86 = arith.subf %81, %85 : vector<16x4xf32>
    %87 = vector.broadcast %84 : vector<16x1xf32> to vector<16x4xf32>
    %88 = arith.mulf %86, %87 : vector<16x4xf32>
    %c448 = arith.constant 448 : index
    %c0_40 = arith.constant 0 : index
    %89 = vector.load %arg2[%c448, %c0_40] : memref<960x128xf32, #tpu.memory_space<vmem>>, vector<16x16xf32>
    %90 = arith.truncf %89 : vector<16x16xf32> to vector<16x16xbf16>
    %91 = arith.truncf %88 : vector<16x4xf32> to vector<16x4xbf16>
    %cst_41 = arith.constant dense<0.000000e+00> : vector<16x4xf32>
    %92 = tpu.matmul %90, %91, %cst_41 {dimension_numbers = #tpu.dot_dimension_numbers<[1], [0], [0], [1], [0, 0, 1, 1], [], []>} : vector<16x16xbf16>, vector<16x4xbf16>, vector<16x4xf32> -> vector<16x4xf32>
    %c464 = arith.constant 464 : index
    %c0_42 = arith.constant 0 : index
    %93 = vector.load %arg2[%c464, %c0_42] : memref<960x128xf32, #tpu.memory_space<vmem>>, vector<16x16xf32>
    %94 = arith.truncf %93 : vector<16x16xf32> to vector<16x16xbf16>
    %95 = arith.truncf %88 : vector<16x4xf32> to vector<16x4xbf16>
    %cst_43 = arith.constant dense<0.000000e+00> : vector<16x4xf32>
    %96 = tpu.matmul %94, %95, %cst_43 {dimension_numbers = #tpu.dot_dimension_numbers<[1], [0], [0], [1], [0, 0, 1, 1], [], []>} : vector<16x16xbf16>, vector<16x4xbf16>, vector<16x4xf32> -> vector<16x4xf32>
    %c480 = arith.constant 480 : index
    %c0_44 = arith.constant 0 : index
    %97 = vector.load %arg2[%c480, %c0_44] : memref<960x128xf32, #tpu.memory_space<vmem>>, vector<4x32xf32>
    %98 = arith.truncf %92 : vector<16x4xf32> to vector<16x4xbf16>
    %99 = arith.truncf %97 : vector<4x32xf32> to vector<4x32xbf16>
    %cst_45 = arith.constant dense<0.000000e+00> : vector<16x32xf32>
    %100 = tpu.matmul %98, %99, %cst_45 {dimension_numbers = #tpu.dot_dimension_numbers<[1], [0], [0], [1], [0, 0, 1, 1], [], []>} : vector<16x4xbf16>, vector<4x32xbf16>, vector<16x32xf32> -> vector<16x32xf32>
    %c488 = arith.constant 488 : index
    %c0_46 = arith.constant 0 : index
    %101 = vector.load %arg2[%c488, %c0_46] : memref<960x128xf32, #tpu.memory_space<vmem>>, vector<4x32xf32>
    %102 = arith.truncf %88 : vector<16x4xf32> to vector<16x4xbf16>
    %103 = arith.truncf %101 : vector<4x32xf32> to vector<4x32xbf16>
    %cst_47 = arith.constant dense<0.000000e+00> : vector<16x32xf32>
    %104 = tpu.matmul %102, %103, %cst_47 {dimension_numbers = #tpu.dot_dimension_numbers<[1], [0], [0], [1], [0, 0, 1, 1], [], []>} : vector<16x4xbf16>, vector<4x32xbf16>, vector<16x32xf32> -> vector<16x32xf32>
    %105 = arith.addf %100, %104 : vector<16x32xf32>
    %c496 = arith.constant 496 : index
    %c0_48 = arith.constant 0 : index
    %106 = vector.load %arg2[%c496, %c0_48] : memref<960x128xf32, #tpu.memory_space<vmem>>, vector<4x32xf32>
    %107 = arith.truncf %96 : vector<16x4xf32> to vector<16x4xbf16>
    %108 = arith.truncf %106 : vector<4x32xf32> to vector<4x32xbf16>
    %cst_49 = arith.constant dense<0.000000e+00> : vector<16x32xf32>
    %109 = tpu.matmul %107, %108, %cst_49 {dimension_numbers = #tpu.dot_dimension_numbers<[1], [0], [0], [1], [0, 0, 1, 1], [], []>} : vector<16x4xbf16>, vector<4x32xbf16>, vector<16x32xf32> -> vector<16x32xf32>
    %110 = arith.addf %105, %109 : vector<16x32xf32>
    %c504 = arith.constant 504 : index
    %c0_50 = arith.constant 0 : index
    %111 = vector.load %arg2[%c504, %c0_50] : memref<960x128xf32, #tpu.memory_space<vmem>>, vector<16x32xf32>
    %112 = arith.addf %110, %111 : vector<16x32xf32>
    %c72 = arith.constant 72 : index
    %c0_51 = arith.constant 0 : index
    %113 = vector.load %arg1[%c72, %c0_51] : memref<104x8xf32, #tpu.memory_space<vmem>>, vector<32x2xf32>
    %c608 = arith.constant 608 : index
    %c0_52 = arith.constant 0 : index
    %114 = vector.load %arg2[%c608, %c0_52] : memref<960x128xf32, #tpu.memory_space<vmem>>, vector<32x8xf32>
    %cst_53 = arith.constant dense<0.000000e+00> : vector<32x1xf32>
    %115 = tpu.matmul %114, %4, %cst_53 {dimension_numbers = #tpu.dot_dimension_numbers<[1], [0], [0], [1], [0, 0, 1, 1], [], []>} : vector<32x8xf32>, vector<8x1xf32>, vector<32x1xf32> -> vector<32x1xf32>
    %cst_54 = arith.constant dense<0.000000e+00> : vector<32x1xf32>
    %116 = tpu.matmul %114, %16, %cst_54 {dimension_numbers = #tpu.dot_dimension_numbers<[1], [0], [0], [1], [0, 0, 1, 1], [], []>} : vector<32x8xf32>, vector<8x1xf32>, vector<32x1xf32> -> vector<32x1xf32>
    %117 = vector.broadcast %115 : vector<32x1xf32> to vector<32x2xf32>
    %118 = arith.subf %113, %117 : vector<32x2xf32>
    %119 = vector.broadcast %116 : vector<32x1xf32> to vector<32x2xf32>
    %120 = arith.mulf %118, %119 : vector<32x2xf32>
    %c640 = arith.constant 640 : index
    %c0_55 = arith.constant 0 : index
    %121 = vector.load %arg2[%c640, %c0_55] : memref<960x128xf32, #tpu.memory_space<vmem>>, vector<32x32xf32>
    %122 = arith.truncf %121 : vector<32x32xf32> to vector<32x32xbf16>
    %123 = arith.truncf %120 : vector<32x2xf32> to vector<32x2xbf16>
    %cst_56 = arith.constant dense<0.000000e+00> : vector<32x2xf32>
    %124 = tpu.matmul %122, %123, %cst_56 {dimension_numbers = #tpu.dot_dimension_numbers<[1], [0], [0], [1], [0, 0, 1, 1], [], []>} : vector<32x32xbf16>, vector<32x2xbf16>, vector<32x2xf32> -> vector<32x2xf32>
    %c672 = arith.constant 672 : index
    %c0_57 = arith.constant 0 : index
    %125 = vector.load %arg2[%c672, %c0_57] : memref<960x128xf32, #tpu.memory_space<vmem>>, vector<32x32xf32>
    %126 = arith.truncf %125 : vector<32x32xf32> to vector<32x32xbf16>
    %127 = arith.truncf %120 : vector<32x2xf32> to vector<32x2xbf16>
    %cst_58 = arith.constant dense<0.000000e+00> : vector<32x2xf32>
    %128 = tpu.matmul %126, %127, %cst_58 {dimension_numbers = #tpu.dot_dimension_numbers<[1], [0], [0], [1], [0, 0, 1, 1], [], []>} : vector<32x32xbf16>, vector<32x2xbf16>, vector<32x2xf32> -> vector<32x2xf32>
    %c704 = arith.constant 704 : index
    %c0_59 = arith.constant 0 : index
    %129 = vector.load %arg2[%c704, %c0_59] : memref<960x128xf32, #tpu.memory_space<vmem>>, vector<2x32xf32>
    %130 = arith.truncf %124 : vector<32x2xf32> to vector<32x2xbf16>
    %131 = arith.truncf %129 : vector<2x32xf32> to vector<2x32xbf16>
    %cst_60 = arith.constant dense<0.000000e+00> : vector<32x32xf32>
    %132 = tpu.matmul %130, %131, %cst_60 {dimension_numbers = #tpu.dot_dimension_numbers<[1], [0], [0], [1], [0, 0, 1, 1], [], []>} : vector<32x2xbf16>, vector<2x32xbf16>, vector<32x32xf32> -> vector<32x32xf32>
    %c712 = arith.constant 712 : index
    %c0_61 = arith.constant 0 : index
    %133 = vector.load %arg2[%c712, %c0_61] : memref<960x128xf32, #tpu.memory_space<vmem>>, vector<2x32xf32>
    %134 = arith.truncf %120 : vector<32x2xf32> to vector<32x2xbf16>
    %135 = arith.truncf %133 : vector<2x32xf32> to vector<2x32xbf16>
    %cst_62 = arith.constant dense<0.000000e+00> : vector<32x32xf32>
    %136 = tpu.matmul %134, %135, %cst_62 {dimension_numbers = #tpu.dot_dimension_numbers<[1], [0], [0], [1], [0, 0, 1, 1], [], []>} : vector<32x2xbf16>, vector<2x32xbf16>, vector<32x32xf32> -> vector<32x32xf32>
    %137 = arith.addf %132, %136 : vector<32x32xf32>
    %c720 = arith.constant 720 : index
    %c0_63 = arith.constant 0 : index
    %138 = vector.load %arg2[%c720, %c0_63] : memref<960x128xf32, #tpu.memory_space<vmem>>, vector<2x32xf32>
    %139 = arith.truncf %128 : vector<32x2xf32> to vector<32x2xbf16>
    %140 = arith.truncf %138 : vector<2x32xf32> to vector<2x32xbf16>
    %cst_64 = arith.constant dense<0.000000e+00> : vector<32x32xf32>
    %141 = tpu.matmul %139, %140, %cst_64 {dimension_numbers = #tpu.dot_dimension_numbers<[1], [0], [0], [1], [0, 0, 1, 1], [], []>} : vector<32x2xbf16>, vector<2x32xbf16>, vector<32x32xf32> -> vector<32x32xf32>
    %142 = arith.addf %137, %141 : vector<32x32xf32>
    %c728 = arith.constant 728 : index
    %c0_65 = arith.constant 0 : index
    %143 = vector.load %arg2[%c728, %c0_65] : memref<960x128xf32, #tpu.memory_space<vmem>>, vector<32x32xf32>
    %144 = arith.addf %142, %143 : vector<32x32xf32>
    %145 = tpu.concatenate %48, %80, %112, %144 in 0 : vector<32x32xf32>, vector<16x32xf32>, vector<16x32xf32>, vector<32x32xf32> -> vector<96x32xf32>
    %c800 = arith.constant 800 : index
    %c0_66 = arith.constant 0 : index
    %146 = vector.load %arg2[%c800, %c0_66] : memref<960x128xf32, #tpu.memory_space<vmem>>, vector<32x32xf32>
    %147 = arith.truncf %145 : vector<96x32xf32> to vector<96x32xbf16>
    %148 = arith.truncf %146 : vector<32x32xf32> to vector<32x32xbf16>
    %cst_67 = arith.constant dense<0.000000e+00> : vector<96x32xf32>
    %149 = tpu.matmul %147, %148, %cst_67 {dimension_numbers = #tpu.dot_dimension_numbers<[1], [0], [0], [1], [0, 0, 1, 1], [], []>} : vector<96x32xbf16>, vector<32x32xbf16>, vector<96x32xf32> -> vector<96x32xf32>
    %c832 = arith.constant 832 : index
    %c0_68 = arith.constant 0 : index
    %150 = vector.load %arg2[%c832, %c0_68] : memref<960x128xf32, #tpu.memory_space<vmem>>, vector<1x32xf32>
    %151 = vector.broadcast %150 : vector<1x32xf32> to vector<96x32xf32>
    %152 = arith.addf %149, %151 : vector<96x32xf32>
    %c880 = arith.constant 880 : index
    %c0_69 = arith.constant 0 : index
    %153 = vector.load %arg2[%c880, %c0_69] : memref<960x128xf32, #tpu.memory_space<vmem>>, vector<32x32xf32>
    %154 = arith.truncf %145 : vector<96x32xf32> to vector<96x32xbf16>
    %155 = arith.truncf %153 : vector<32x32xf32> to vector<32x32xbf16>
    %cst_70 = arith.constant dense<0.000000e+00> : vector<96x32xf32>
    %156 = tpu.matmul %154, %155, %cst_70 {dimension_numbers = #tpu.dot_dimension_numbers<[1], [0], [0], [1], [0, 0, 1, 1], [], []>} : vector<96x32xbf16>, vector<32x32xbf16>, vector<96x32xf32> -> vector<96x32xf32>
    %c912 = arith.constant 912 : index
    %c0_71 = arith.constant 0 : index
    %157 = vector.load %arg2[%c912, %c0_71] : memref<960x128xf32, #tpu.memory_space<vmem>>, vector<1x32xf32>
    %158 = vector.broadcast %157 : vector<1x32xf32> to vector<96x32xf32>
    %159 = arith.addf %156, %158 : vector<96x32xf32>
    %c840 = arith.constant 840 : index
    %c0_72 = arith.constant 0 : index
    %160 = vector.load %arg2[%c840, %c0_72] : memref<960x128xf32, #tpu.memory_space<vmem>>, vector<32x32xf32>
    %161 = arith.truncf %145 : vector<96x32xf32> to vector<96x32xbf16>
    %162 = arith.truncf %160 : vector<32x32xf32> to vector<32x32xbf16>
    %cst_73 = arith.constant dense<0.000000e+00> : vector<96x32xf32>
    %163 = tpu.matmul %161, %162, %cst_73 {dimension_numbers = #tpu.dot_dimension_numbers<[1], [0], [0], [1], [0, 0, 1, 1], [], []>} : vector<96x32xbf16>, vector<32x32xbf16>, vector<96x32xf32> -> vector<96x32xf32>
    %c872 = arith.constant 872 : index
    %c0_74 = arith.constant 0 : index
    %164 = vector.load %arg2[%c872, %c0_74] : memref<960x128xf32, #tpu.memory_space<vmem>>, vector<1x32xf32>
    %165 = vector.broadcast %164 : vector<1x32xf32> to vector<96x32xf32>
    %166 = arith.addf %163, %165 : vector<96x32xf32>
    %c920 = arith.constant 920 : index
    %c0_75 = arith.constant 0 : index
    %167 = vector.load %arg2[%c920, %c0_75] : memref<960x128xf32, #tpu.memory_space<vmem>>, vector<32x32xf32>
    %168 = arith.truncf %145 : vector<96x32xf32> to vector<96x32xbf16>
    %169 = arith.truncf %167 : vector<32x32xf32> to vector<32x32xbf16>
    %cst_76 = arith.constant dense<0.000000e+00> : vector<96x32xf32>
    %170 = tpu.matmul %168, %169, %cst_76 {dimension_numbers = #tpu.dot_dimension_numbers<[1], [0], [0], [1], [0, 0, 1, 1], [], []>} : vector<96x32xbf16>, vector<32x32xbf16>, vector<96x32xf32> -> vector<96x32xf32>
    %c952 = arith.constant 952 : index
    %c0_77 = arith.constant 0 : index
    %171 = vector.load %arg2[%c952, %c0_77] : memref<960x128xf32, #tpu.memory_space<vmem>>, vector<1x32xf32>
    %172 = vector.broadcast %171 : vector<1x32xf32> to vector<96x32xf32>
    %173 = arith.addf %170, %172 : vector<96x32xf32>
    %cst_78 = arith.constant 0.000000e+00 : f32
    %174 = vector.broadcast %cst_78 : f32 to vector<8x128xf32>
    %c216 = arith.constant 216 : index
    %c0_79 = arith.constant 0 : index
    %175 = vector.load %arg2[%c216, %c0_79] : memref<960x128xf32, #tpu.memory_space<vmem>>, vector<32x32xf32>
    %c248 = arith.constant 248 : index
    %c0_80 = arith.constant 0 : index
    %176 = vector.load %arg2[%c248, %c0_80] : memref<960x128xf32, #tpu.memory_space<vmem>>, vector<8x32xf32>
    %177 = vector.extract_strided_slice %152 {offsets = [0, 0], sizes = [32, 32], strides = [1, 1]} : vector<96x32xf32> to vector<32x32xf32>
    %178 = vector.extract_strided_slice %166 {offsets = [0, 0], sizes = [32, 32], strides = [1, 1]} : vector<96x32xf32> to vector<32x32xf32>
    %179 = arith.truncf %177 : vector<32x32xf32> to vector<32x32xbf16>
    %180 = arith.truncf %178 : vector<32x32xf32> to vector<32x32xbf16>
    %cst_81 = arith.constant dense<0.000000e+00> : vector<32x32xf32>
    %181 = tpu.matmul %179, %180, %cst_81 {dimension_numbers = #tpu.dot_dimension_numbers<[1], [1], [0], [0], [0, 0, 1, 0], [], []>} : vector<32x32xbf16>, vector<32x32xbf16>, vector<32x32xf32> -> vector<32x32xf32>
    %182 = arith.addf %181, %175 : vector<32x32xf32>
    %cst_82 = arith.constant dense<0xFF800000> : vector<32xf32>
    %183 = vector.multi_reduction <maximumf>, %182, %cst_82 [1] : vector<32x32xf32> to vector<32xf32>
    %184 = vector.shape_cast %183 : vector<32xf32> to vector<32x1xf32>
    %185 = vector.broadcast %184 : vector<32x1xf32> to vector<32x32xf32>
    %186 = arith.subf %182, %185 : vector<32x32xf32>
    %187 = math.exp %186 : vector<32x32xf32>
    %cst_83 = arith.constant dense<0.000000e+00> : vector<32xf32>
    %188 = vector.multi_reduction <add>, %187, %cst_83 [1] : vector<32x32xf32> to vector<32xf32>
    %189 = vector.shape_cast %188 : vector<32xf32> to vector<32x1xf32>
    %190 = tpu.reciprocal %189 {approx = true} : vector<32x1xf32> -> vector<32x1xf32>
    %191 = vector.broadcast %190 : vector<32x1xf32> to vector<32x32xf32>
    %192 = arith.mulf %187, %191 : vector<32x32xf32>
    %193 = arith.truncf %176 : vector<8x32xf32> to vector<8x32xbf16>
    %194 = arith.truncf %192 : vector<32x32xf32> to vector<32x32xbf16>
    %cst_84 = arith.constant dense<0.000000e+00> : vector<8x32xf32>
    %195 = tpu.matmul %193, %194, %cst_84 {dimension_numbers = #tpu.dot_dimension_numbers<[1], [0], [0], [1], [0, 0, 1, 1], [], []>} : vector<8x32xbf16>, vector<32x32xbf16>, vector<8x32xf32> -> vector<8x32xf32>
    %c0_85 = arith.constant 0 : index
    %c0_86 = arith.constant 0 : index
    %196 = vector.load %arg2[%c0_85, %c0_86] : memref<960x128xf32, #tpu.memory_space<vmem>>, vector<32x128xf32>
    %197 = arith.truncf %195 : vector<8x32xf32> to vector<8x32xbf16>
    %198 = arith.truncf %196 : vector<32x128xf32> to vector<32x128xbf16>
    %cst_87 = arith.constant dense<0.000000e+00> : vector<8x128xf32>
    %199 = tpu.matmul %197, %198, %cst_87 {dimension_numbers = #tpu.dot_dimension_numbers<[1], [0], [0], [1], [0, 0, 1, 1], [], []>} : vector<8x32xbf16>, vector<32x128xbf16>, vector<8x128xf32> -> vector<8x128xf32>
    %200 = arith.addf %174, %199 : vector<8x128xf32>
    %201 = vector.extract_strided_slice %159 {offsets = [0, 0], sizes = [32, 32], strides = [1, 1]} : vector<96x32xf32> to vector<32x32xf32>
    %202 = vector.extract_strided_slice %173 {offsets = [0, 0], sizes = [32, 32], strides = [1, 1]} : vector<96x32xf32> to vector<32x32xf32>
    %203 = arith.truncf %201 : vector<32x32xf32> to vector<32x32xbf16>
    %204 = arith.truncf %202 : vector<32x32xf32> to vector<32x32xbf16>
    %cst_88 = arith.constant dense<0.000000e+00> : vector<32x32xf32>
    %205 = tpu.matmul %203, %204, %cst_88 {dimension_numbers = #tpu.dot_dimension_numbers<[1], [1], [0], [0], [0, 0, 1, 0], [], []>} : vector<32x32xbf16>, vector<32x32xbf16>, vector<32x32xf32> -> vector<32x32xf32>
    %206 = arith.addf %205, %175 : vector<32x32xf32>
    %cst_89 = arith.constant dense<0xFF800000> : vector<32xf32>
    %207 = vector.multi_reduction <maximumf>, %206, %cst_89 [1] : vector<32x32xf32> to vector<32xf32>
    %208 = vector.shape_cast %207 : vector<32xf32> to vector<32x1xf32>
    %209 = vector.broadcast %208 : vector<32x1xf32> to vector<32x32xf32>
    %210 = arith.subf %206, %209 : vector<32x32xf32>
    %211 = math.exp %210 : vector<32x32xf32>
    %cst_90 = arith.constant dense<0.000000e+00> : vector<32xf32>
    %212 = vector.multi_reduction <add>, %211, %cst_90 [1] : vector<32x32xf32> to vector<32xf32>
    %213 = vector.shape_cast %212 : vector<32xf32> to vector<32x1xf32>
    %214 = tpu.reciprocal %213 {approx = true} : vector<32x1xf32> -> vector<32x1xf32>
    %215 = vector.broadcast %214 : vector<32x1xf32> to vector<32x32xf32>
    %216 = arith.mulf %211, %215 : vector<32x32xf32>
    %217 = arith.truncf %176 : vector<8x32xf32> to vector<8x32xbf16>
    %218 = arith.truncf %216 : vector<32x32xf32> to vector<32x32xbf16>
    %cst_91 = arith.constant dense<0.000000e+00> : vector<8x32xf32>
    %219 = tpu.matmul %217, %218, %cst_91 {dimension_numbers = #tpu.dot_dimension_numbers<[1], [0], [0], [1], [0, 0, 1, 1], [], []>} : vector<8x32xbf16>, vector<32x32xbf16>, vector<8x32xf32> -> vector<8x32xf32>
    %c32 = arith.constant 32 : index
    %c0_92 = arith.constant 0 : index
    %220 = vector.load %arg2[%c32, %c0_92] : memref<960x128xf32, #tpu.memory_space<vmem>>, vector<32x128xf32>
    %221 = arith.truncf %219 : vector<8x32xf32> to vector<8x32xbf16>
    %222 = arith.truncf %220 : vector<32x128xf32> to vector<32x128xbf16>
    %cst_93 = arith.constant dense<0.000000e+00> : vector<8x128xf32>
    %223 = tpu.matmul %221, %222, %cst_93 {dimension_numbers = #tpu.dot_dimension_numbers<[1], [0], [0], [1], [0, 0, 1, 1], [], []>} : vector<8x32xbf16>, vector<32x128xbf16>, vector<8x128xf32> -> vector<8x128xf32>
    %224 = arith.addf %200, %223 : vector<8x128xf32>
    %c376 = arith.constant 376 : index
    %c0_94 = arith.constant 0 : index
    %225 = vector.load %arg2[%c376, %c0_94] : memref<960x128xf32, #tpu.memory_space<vmem>>, vector<16x16xf32>
    %c392 = arith.constant 392 : index
    %c0_95 = arith.constant 0 : index
    %226 = vector.load %arg2[%c392, %c0_95] : memref<960x128xf32, #tpu.memory_space<vmem>>, vector<8x16xf32>
    %227 = vector.extract_strided_slice %152 {offsets = [32, 0], sizes = [16, 32], strides = [1, 1]} : vector<96x32xf32> to vector<16x32xf32>
    %228 = vector.extract_strided_slice %166 {offsets = [32, 0], sizes = [16, 32], strides = [1, 1]} : vector<96x32xf32> to vector<16x32xf32>
    %229 = arith.truncf %227 : vector<16x32xf32> to vector<16x32xbf16>
    %230 = arith.truncf %228 : vector<16x32xf32> to vector<16x32xbf16>
    %cst_96 = arith.constant dense<0.000000e+00> : vector<16x16xf32>
    %231 = tpu.matmul %229, %230, %cst_96 {dimension_numbers = #tpu.dot_dimension_numbers<[1], [1], [0], [0], [0, 0, 1, 0], [], []>} : vector<16x32xbf16>, vector<16x32xbf16>, vector<16x16xf32> -> vector<16x16xf32>
    %232 = arith.addf %231, %225 : vector<16x16xf32>
    %cst_97 = arith.constant dense<0xFF800000> : vector<16xf32>
    %233 = vector.multi_reduction <maximumf>, %232, %cst_97 [1] : vector<16x16xf32> to vector<16xf32>
    %234 = vector.shape_cast %233 : vector<16xf32> to vector<16x1xf32>
    %235 = vector.broadcast %234 : vector<16x1xf32> to vector<16x16xf32>
    %236 = arith.subf %232, %235 : vector<16x16xf32>
    %237 = math.exp %236 : vector<16x16xf32>
    %cst_98 = arith.constant dense<0.000000e+00> : vector<16xf32>
    %238 = vector.multi_reduction <add>, %237, %cst_98 [1] : vector<16x16xf32> to vector<16xf32>
    %239 = vector.shape_cast %238 : vector<16xf32> to vector<16x1xf32>
    %240 = tpu.reciprocal %239 {approx = true} : vector<16x1xf32> -> vector<16x1xf32>
    %241 = vector.broadcast %240 : vector<16x1xf32> to vector<16x16xf32>
    %242 = arith.mulf %237, %241 : vector<16x16xf32>
    %243 = arith.truncf %226 : vector<8x16xf32> to vector<8x16xbf16>
    %244 = arith.truncf %242 : vector<16x16xf32> to vector<16x16xbf16>
    %cst_99 = arith.constant dense<0.000000e+00> : vector<8x16xf32>
    %245 = tpu.matmul %243, %244, %cst_99 {dimension_numbers = #tpu.dot_dimension_numbers<[1], [0], [0], [1], [0, 0, 1, 1], [], []>} : vector<8x16xbf16>, vector<16x16xbf16>, vector<8x16xf32> -> vector<8x16xf32>
    %c256 = arith.constant 256 : index
    %c0_100 = arith.constant 0 : index
    %246 = vector.load %arg2[%c256, %c0_100] : memref<960x128xf32, #tpu.memory_space<vmem>>, vector<16x128xf32>
    %247 = arith.truncf %245 : vector<8x16xf32> to vector<8x16xbf16>
    %248 = arith.truncf %246 : vector<16x128xf32> to vector<16x128xbf16>
    %cst_101 = arith.constant dense<0.000000e+00> : vector<8x128xf32>
    %249 = tpu.matmul %247, %248, %cst_101 {dimension_numbers = #tpu.dot_dimension_numbers<[1], [0], [0], [1], [0, 0, 1, 1], [], []>} : vector<8x16xbf16>, vector<16x128xbf16>, vector<8x128xf32> -> vector<8x128xf32>
    %250 = arith.addf %224, %249 : vector<8x128xf32>
    %251 = vector.extract_strided_slice %159 {offsets = [32, 0], sizes = [16, 32], strides = [1, 1]} : vector<96x32xf32> to vector<16x32xf32>
    %252 = vector.extract_strided_slice %173 {offsets = [32, 0], sizes = [16, 32], strides = [1, 1]} : vector<96x32xf32> to vector<16x32xf32>
    %253 = arith.truncf %251 : vector<16x32xf32> to vector<16x32xbf16>
    %254 = arith.truncf %252 : vector<16x32xf32> to vector<16x32xbf16>
    %cst_102 = arith.constant dense<0.000000e+00> : vector<16x16xf32>
    %255 = tpu.matmul %253, %254, %cst_102 {dimension_numbers = #tpu.dot_dimension_numbers<[1], [1], [0], [0], [0, 0, 1, 0], [], []>} : vector<16x32xbf16>, vector<16x32xbf16>, vector<16x16xf32> -> vector<16x16xf32>
    %256 = arith.addf %255, %225 : vector<16x16xf32>
    %cst_103 = arith.constant dense<0xFF800000> : vector<16xf32>
    %257 = vector.multi_reduction <maximumf>, %256, %cst_103 [1] : vector<16x16xf32> to vector<16xf32>
    %258 = vector.shape_cast %257 : vector<16xf32> to vector<16x1xf32>
    %259 = vector.broadcast %258 : vector<16x1xf32> to vector<16x16xf32>
    %260 = arith.subf %256, %259 : vector<16x16xf32>
    %261 = math.exp %260 : vector<16x16xf32>
    %cst_104 = arith.constant dense<0.000000e+00> : vector<16xf32>
    %262 = vector.multi_reduction <add>, %261, %cst_104 [1] : vector<16x16xf32> to vector<16xf32>
    %263 = vector.shape_cast %262 : vector<16xf32> to vector<16x1xf32>
    %264 = tpu.reciprocal %263 {approx = true} : vector<16x1xf32> -> vector<16x1xf32>
    %265 = vector.broadcast %264 : vector<16x1xf32> to vector<16x16xf32>
    %266 = arith.mulf %261, %265 : vector<16x16xf32>
    %267 = arith.truncf %226 : vector<8x16xf32> to vector<8x16xbf16>
    %268 = arith.truncf %266 : vector<16x16xf32> to vector<16x16xbf16>
    %cst_105 = arith.constant dense<0.000000e+00> : vector<8x16xf32>
    %269 = tpu.matmul %267, %268, %cst_105 {dimension_numbers = #tpu.dot_dimension_numbers<[1], [0], [0], [1], [0, 0, 1, 1], [], []>} : vector<8x16xbf16>, vector<16x16xbf16>, vector<8x16xf32> -> vector<8x16xf32>
    %c272 = arith.constant 272 : index
    %c0_106 = arith.constant 0 : index
    %270 = vector.load %arg2[%c272, %c0_106] : memref<960x128xf32, #tpu.memory_space<vmem>>, vector<16x128xf32>
    %271 = arith.truncf %269 : vector<8x16xf32> to vector<8x16xbf16>
    %272 = arith.truncf %270 : vector<16x128xf32> to vector<16x128xbf16>
    %cst_107 = arith.constant dense<0.000000e+00> : vector<8x128xf32>
    %273 = tpu.matmul %271, %272, %cst_107 {dimension_numbers = #tpu.dot_dimension_numbers<[1], [0], [0], [1], [0, 0, 1, 1], [], []>} : vector<8x16xbf16>, vector<16x128xbf16>, vector<8x128xf32> -> vector<8x128xf32>
    %274 = arith.addf %250, %273 : vector<8x128xf32>
    %c520 = arith.constant 520 : index
    %c0_108 = arith.constant 0 : index
    %275 = vector.load %arg2[%c520, %c0_108] : memref<960x128xf32, #tpu.memory_space<vmem>>, vector<16x16xf32>
    %c536 = arith.constant 536 : index
    %c0_109 = arith.constant 0 : index
    %276 = vector.load %arg2[%c536, %c0_109] : memref<960x128xf32, #tpu.memory_space<vmem>>, vector<8x16xf32>
    %277 = vector.extract_strided_slice %152 {offsets = [48, 0], sizes = [16, 32], strides = [1, 1]} : vector<96x32xf32> to vector<16x32xf32>
    %278 = vector.extract_strided_slice %166 {offsets = [48, 0], sizes = [16, 32], strides = [1, 1]} : vector<96x32xf32> to vector<16x32xf32>
    %279 = arith.truncf %277 : vector<16x32xf32> to vector<16x32xbf16>
    %280 = arith.truncf %278 : vector<16x32xf32> to vector<16x32xbf16>
    %cst_110 = arith.constant dense<0.000000e+00> : vector<16x16xf32>
    %281 = tpu.matmul %279, %280, %cst_110 {dimension_numbers = #tpu.dot_dimension_numbers<[1], [1], [0], [0], [0, 0, 1, 0], [], []>} : vector<16x32xbf16>, vector<16x32xbf16>, vector<16x16xf32> -> vector<16x16xf32>
    %282 = arith.addf %281, %275 : vector<16x16xf32>
    %cst_111 = arith.constant dense<0xFF800000> : vector<16xf32>
    %283 = vector.multi_reduction <maximumf>, %282, %cst_111 [1] : vector<16x16xf32> to vector<16xf32>
    %284 = vector.shape_cast %283 : vector<16xf32> to vector<16x1xf32>
    %285 = vector.broadcast %284 : vector<16x1xf32> to vector<16x16xf32>
    %286 = arith.subf %282, %285 : vector<16x16xf32>
    %287 = math.exp %286 : vector<16x16xf32>
    %cst_112 = arith.constant dense<0.000000e+00> : vector<16xf32>
    %288 = vector.multi_reduction <add>, %287, %cst_112 [1] : vector<16x16xf32> to vector<16xf32>
    %289 = vector.shape_cast %288 : vector<16xf32> to vector<16x1xf32>
    %290 = tpu.reciprocal %289 {approx = true} : vector<16x1xf32> -> vector<16x1xf32>
    %291 = vector.broadcast %290 : vector<16x1xf32> to vector<16x16xf32>
    %292 = arith.mulf %287, %291 : vector<16x16xf32>
    %293 = arith.truncf %276 : vector<8x16xf32> to vector<8x16xbf16>
    %294 = arith.truncf %292 : vector<16x16xf32> to vector<16x16xbf16>
    %cst_113 = arith.constant dense<0.000000e+00> : vector<8x16xf32>
    %295 = tpu.matmul %293, %294, %cst_113 {dimension_numbers = #tpu.dot_dimension_numbers<[1], [0], [0], [1], [0, 0, 1, 1], [], []>} : vector<8x16xbf16>, vector<16x16xbf16>, vector<8x16xf32> -> vector<8x16xf32>
    %c400 = arith.constant 400 : index
    %c0_114 = arith.constant 0 : index
    %296 = vector.load %arg2[%c400, %c0_114] : memref<960x128xf32, #tpu.memory_space<vmem>>, vector<16x128xf32>
    %297 = arith.truncf %295 : vector<8x16xf32> to vector<8x16xbf16>
    %298 = arith.truncf %296 : vector<16x128xf32> to vector<16x128xbf16>
    %cst_115 = arith.constant dense<0.000000e+00> : vector<8x128xf32>
    %299 = tpu.matmul %297, %298, %cst_115 {dimension_numbers = #tpu.dot_dimension_numbers<[1], [0], [0], [1], [0, 0, 1, 1], [], []>} : vector<8x16xbf16>, vector<16x128xbf16>, vector<8x128xf32> -> vector<8x128xf32>
    %300 = arith.addf %274, %299 : vector<8x128xf32>
    %301 = vector.extract_strided_slice %159 {offsets = [48, 0], sizes = [16, 32], strides = [1, 1]} : vector<96x32xf32> to vector<16x32xf32>
    %302 = vector.extract_strided_slice %173 {offsets = [48, 0], sizes = [16, 32], strides = [1, 1]} : vector<96x32xf32> to vector<16x32xf32>
    %303 = arith.truncf %301 : vector<16x32xf32> to vector<16x32xbf16>
    %304 = arith.truncf %302 : vector<16x32xf32> to vector<16x32xbf16>
    %cst_116 = arith.constant dense<0.000000e+00> : vector<16x16xf32>
    %305 = tpu.matmul %303, %304, %cst_116 {dimension_numbers = #tpu.dot_dimension_numbers<[1], [1], [0], [0], [0, 0, 1, 0], [], []>} : vector<16x32xbf16>, vector<16x32xbf16>, vector<16x16xf32> -> vector<16x16xf32>
    %306 = arith.addf %305, %275 : vector<16x16xf32>
    %cst_117 = arith.constant dense<0xFF800000> : vector<16xf32>
    %307 = vector.multi_reduction <maximumf>, %306, %cst_117 [1] : vector<16x16xf32> to vector<16xf32>
    %308 = vector.shape_cast %307 : vector<16xf32> to vector<16x1xf32>
    %309 = vector.broadcast %308 : vector<16x1xf32> to vector<16x16xf32>
    %310 = arith.subf %306, %309 : vector<16x16xf32>
    %311 = math.exp %310 : vector<16x16xf32>
    %cst_118 = arith.constant dense<0.000000e+00> : vector<16xf32>
    %312 = vector.multi_reduction <add>, %311, %cst_118 [1] : vector<16x16xf32> to vector<16xf32>
    %313 = vector.shape_cast %312 : vector<16xf32> to vector<16x1xf32>
    %314 = tpu.reciprocal %313 {approx = true} : vector<16x1xf32> -> vector<16x1xf32>
    %315 = vector.broadcast %314 : vector<16x1xf32> to vector<16x16xf32>
    %316 = arith.mulf %311, %315 : vector<16x16xf32>
    %317 = arith.truncf %276 : vector<8x16xf32> to vector<8x16xbf16>
    %318 = arith.truncf %316 : vector<16x16xf32> to vector<16x16xbf16>
    %cst_119 = arith.constant dense<0.000000e+00> : vector<8x16xf32>
    %319 = tpu.matmul %317, %318, %cst_119 {dimension_numbers = #tpu.dot_dimension_numbers<[1], [0], [0], [1], [0, 0, 1, 1], [], []>} : vector<8x16xbf16>, vector<16x16xbf16>, vector<8x16xf32> -> vector<8x16xf32>
    %c416 = arith.constant 416 : index
    %c0_120 = arith.constant 0 : index
    %320 = vector.load %arg2[%c416, %c0_120] : memref<960x128xf32, #tpu.memory_space<vmem>>, vector<16x128xf32>
    %321 = arith.truncf %319 : vector<8x16xf32> to vector<8x16xbf16>
    %322 = arith.truncf %320 : vector<16x128xf32> to vector<16x128xbf16>
    %cst_121 = arith.constant dense<0.000000e+00> : vector<8x128xf32>
    %323 = tpu.matmul %321, %322, %cst_121 {dimension_numbers = #tpu.dot_dimension_numbers<[1], [0], [0], [1], [0, 0, 1, 1], [], []>} : vector<8x16xbf16>, vector<16x128xbf16>, vector<8x128xf32> -> vector<8x128xf32>
    %324 = arith.addf %300, %323 : vector<8x128xf32>
    %c760 = arith.constant 760 : index
    %c0_122 = arith.constant 0 : index
    %325 = vector.load %arg2[%c760, %c0_122] : memref<960x128xf32, #tpu.memory_space<vmem>>, vector<32x32xf32>
    %c792 = arith.constant 792 : index
    %c0_123 = arith.constant 0 : index
    %326 = vector.load %arg2[%c792, %c0_123] : memref<960x128xf32, #tpu.memory_space<vmem>>, vector<8x32xf32>
    %327 = vector.extract_strided_slice %152 {offsets = [64, 0], sizes = [32, 32], strides = [1, 1]} : vector<96x32xf32> to vector<32x32xf32>
    %328 = vector.extract_strided_slice %166 {offsets = [64, 0], sizes = [32, 32], strides = [1, 1]} : vector<96x32xf32> to vector<32x32xf32>
    %329 = arith.truncf %327 : vector<32x32xf32> to vector<32x32xbf16>
    %330 = arith.truncf %328 : vector<32x32xf32> to vector<32x32xbf16>
    %cst_124 = arith.constant dense<0.000000e+00> : vector<32x32xf32>
    %331 = tpu.matmul %329, %330, %cst_124 {dimension_numbers = #tpu.dot_dimension_numbers<[1], [1], [0], [0], [0, 0, 1, 0], [], []>} : vector<32x32xbf16>, vector<32x32xbf16>, vector<32x32xf32> -> vector<32x32xf32>
    %332 = arith.addf %331, %325 : vector<32x32xf32>
    %cst_125 = arith.constant dense<0xFF800000> : vector<32xf32>
    %333 = vector.multi_reduction <maximumf>, %332, %cst_125 [1] : vector<32x32xf32> to vector<32xf32>
    %334 = vector.shape_cast %333 : vector<32xf32> to vector<32x1xf32>
    %335 = vector.broadcast %334 : vector<32x1xf32> to vector<32x32xf32>
    %336 = arith.subf %332, %335 : vector<32x32xf32>
    %337 = math.exp %336 : vector<32x32xf32>
    %cst_126 = arith.constant dense<0.000000e+00> : vector<32xf32>
    %338 = vector.multi_reduction <add>, %337, %cst_126 [1] : vector<32x32xf32> to vector<32xf32>
    %339 = vector.shape_cast %338 : vector<32xf32> to vector<32x1xf32>
    %340 = tpu.reciprocal %339 {approx = true} : vector<32x1xf32> -> vector<32x1xf32>
    %341 = vector.broadcast %340 : vector<32x1xf32> to vector<32x32xf32>
    %342 = arith.mulf %337, %341 : vector<32x32xf32>
    %343 = arith.truncf %326 : vector<8x32xf32> to vector<8x32xbf16>
    %344 = arith.truncf %342 : vector<32x32xf32> to vector<32x32xbf16>
    %cst_127 = arith.constant dense<0.000000e+00> : vector<8x32xf32>
    %345 = tpu.matmul %343, %344, %cst_127 {dimension_numbers = #tpu.dot_dimension_numbers<[1], [0], [0], [1], [0, 0, 1, 1], [], []>} : vector<8x32xbf16>, vector<32x32xbf16>, vector<8x32xf32> -> vector<8x32xf32>
    %c544 = arith.constant 544 : index
    %c0_128 = arith.constant 0 : index
    %346 = vector.load %arg2[%c544, %c0_128] : memref<960x128xf32, #tpu.memory_space<vmem>>, vector<32x128xf32>
    %347 = arith.truncf %345 : vector<8x32xf32> to vector<8x32xbf16>
    %348 = arith.truncf %346 : vector<32x128xf32> to vector<32x128xbf16>
    %cst_129 = arith.constant dense<0.000000e+00> : vector<8x128xf32>
    %349 = tpu.matmul %347, %348, %cst_129 {dimension_numbers = #tpu.dot_dimension_numbers<[1], [0], [0], [1], [0, 0, 1, 1], [], []>} : vector<8x32xbf16>, vector<32x128xbf16>, vector<8x128xf32> -> vector<8x128xf32>
    %350 = arith.addf %324, %349 : vector<8x128xf32>
    %351 = vector.extract_strided_slice %159 {offsets = [64, 0], sizes = [32, 32], strides = [1, 1]} : vector<96x32xf32> to vector<32x32xf32>
    %352 = vector.extract_strided_slice %173 {offsets = [64, 0], sizes = [32, 32], strides = [1, 1]} : vector<96x32xf32> to vector<32x32xf32>
    %353 = arith.truncf %351 : vector<32x32xf32> to vector<32x32xbf16>
    %354 = arith.truncf %352 : vector<32x32xf32> to vector<32x32xbf16>
    %cst_130 = arith.constant dense<0.000000e+00> : vector<32x32xf32>
    %355 = tpu.matmul %353, %354, %cst_130 {dimension_numbers = #tpu.dot_dimension_numbers<[1], [1], [0], [0], [0, 0, 1, 0], [], []>} : vector<32x32xbf16>, vector<32x32xbf16>, vector<32x32xf32> -> vector<32x32xf32>
    %356 = arith.addf %355, %325 : vector<32x32xf32>
    %cst_131 = arith.constant dense<0xFF800000> : vector<32xf32>
    %357 = vector.multi_reduction <maximumf>, %356, %cst_131 [1] : vector<32x32xf32> to vector<32xf32>
    %358 = vector.shape_cast %357 : vector<32xf32> to vector<32x1xf32>
    %359 = vector.broadcast %358 : vector<32x1xf32> to vector<32x32xf32>
    %360 = arith.subf %356, %359 : vector<32x32xf32>
    %361 = math.exp %360 : vector<32x32xf32>
    %cst_132 = arith.constant dense<0.000000e+00> : vector<32xf32>
    %362 = vector.multi_reduction <add>, %361, %cst_132 [1] : vector<32x32xf32> to vector<32xf32>
    %363 = vector.shape_cast %362 : vector<32xf32> to vector<32x1xf32>
    %364 = tpu.reciprocal %363 {approx = true} : vector<32x1xf32> -> vector<32x1xf32>
    %365 = vector.broadcast %364 : vector<32x1xf32> to vector<32x32xf32>
    %366 = arith.mulf %361, %365 : vector<32x32xf32>
    %367 = arith.truncf %326 : vector<8x32xf32> to vector<8x32xbf16>
    %368 = arith.truncf %366 : vector<32x32xf32> to vector<32x32xbf16>
    %cst_133 = arith.constant dense<0.000000e+00> : vector<8x32xf32>
    %369 = tpu.matmul %367, %368, %cst_133 {dimension_numbers = #tpu.dot_dimension_numbers<[1], [0], [0], [1], [0, 0, 1, 1], [], []>} : vector<8x32xbf16>, vector<32x32xbf16>, vector<8x32xf32> -> vector<8x32xf32>
    %c576 = arith.constant 576 : index
    %c0_134 = arith.constant 0 : index
    %370 = vector.load %arg2[%c576, %c0_134] : memref<960x128xf32, #tpu.memory_space<vmem>>, vector<32x128xf32>
    %371 = arith.truncf %369 : vector<8x32xf32> to vector<8x32xbf16>
    %372 = arith.truncf %370 : vector<32x128xf32> to vector<32x128xbf16>
    %cst_135 = arith.constant dense<0.000000e+00> : vector<8x128xf32>
    %373 = tpu.matmul %371, %372, %cst_135 {dimension_numbers = #tpu.dot_dimension_numbers<[1], [0], [0], [1], [0, 0, 1, 1], [], []>} : vector<8x32xbf16>, vector<32x128xbf16>, vector<8x128xf32> -> vector<8x128xf32>
    %374 = arith.addf %350, %373 : vector<8x128xf32>
    %c0_136 = arith.constant 0 : index
    %c0_137 = arith.constant 0 : index
    %375 = vector.load %arg3[%c0_136, %c0_137] : memref<8x128xf32, #tpu.memory_space<vmem>>, vector<8x128xf32>
    tpu.vector_store %arg3[%c0_136, %c0_137], %374 {strides = array<i32>} : memref<8x128xf32, #tpu.memory_space<vmem>>, vector<8x128xf32>,
    return
  }
  func.func @transform_0(%arg0: i32) -> (i32, i32) {
    %c0_i32 = arith.constant 0 : i32
    %c0_i32_0 = arith.constant 0 : i32
    %c0_i32_1 = arith.constant 0 : i32
    return %c0_i32, %c0_i32_0 : i32, i32
  }
  func.func @transform_1(%arg0: i32) -> (i32, i32) {
    %c0_i32 = arith.constant 0 : i32
    %c0_i32_0 = arith.constant 0 : i32
    %c0_i32_1 = arith.constant 0 : i32
    return %c0_i32, %c0_i32_0 : i32, i32
  }
  func.func @transform_2(%arg0: i32) -> (i32, i32) {
    %c0_i32 = arith.constant 0 : i32
    %c0_i32_0 = arith.constant 0 : i32
    %c0_i32_1 = arith.constant 0 : i32
    return %c0_i32, %c0_i32_0 : i32, i32
  }
}

</mosaic_0001>

<bundles_post_ra>
// kernel: detector_forward.1
= control target key start
LH: loop header
LB: loop body
LE: loop exit
PB: predicated region body
PF: predicated region fallthrough
CT: control target
= control target key end

     0   :  { %7 = vsyncpa [#allocation3], 0  ;;  %s4754_s9 = smov [#allocation2]   ;;  %s5367_s0 = inlined_call_operand.vmem [shape: f32[104,8], index: 0, kind: input, shape index: {}]   ;;  %s5368_s1 = inlined_call_operand.hbm [shape: f32[960,128], index: 1, kind: input, shape index: {}]   ;;  %s5369_s2 = inlined_call_operand.vmem [shape: f32[8,128], index: 2, kind: output, shape index: {}]  }
   0x1   :  { %s15_s10 = sshll.u32 %s4754_s9, 4  ;;  %s16_s10 = int_to_ptr.vmem [resolvable:$true] %s15_s10 }
   0x2   :  { %s4740_s11 = scalar_lea.vmem %s16_s10, 15360  ;;  %p4745_p1 = scmp.lt.s32.totalorder %s16_s10, %s16_s10 }
   0x3   :  { %p4741_p0 = scmp.ne.s32.totalorder %s16_s10, %s4740_s11  ;;  %p4746_p2 = scmp.lt.s32.totalorder %s4740_s11, %s4740_s11 }
   0x5   :  { %p4747_p3 = por %p4746_p2, %p4745_p1 }
   0x7   :  { %p4748_p4 = pnand %p4747_p3, %p4741_p0 }
   0x9   :  { %4751 = shalt.err (!%p4748_p4)
}
   0xa   :  { %s4755_s12 = smov 128   ;;  %s4756_s13 = smov 8  }
   0xb   :  { %21 = dma.hbm_to_vmem [thread:$0]  %s5368_s1, 15360, %s16_s10, [#allocation3], %s4755_s12, %s4755_s12, %s4756_s13  }
   0xc   :  { %4752 = dma.done.wait [#allocation3], 15360  }
   0xd   :  { %4753 = vsyncadd [#allocation3], 4294951936  ;;  %vm27_vm0 = vcmask 64512   ;;  %v26_v0 = vld [vmem:[%s5367_s0] sm:$0xff]  ;;  %v47_v7 = vld [vmem:[#allocation2 + $0x48] sm:$0xff]  ;;  %v4757_v17 = vmov 0  }
   0xe   :  { %v28_v1 = vsel %vm27_vm0, %v26_v0, 0.0  ;;  %v32_v2 = vmul.f32 %v26_v0, %v26_v0  ;;  %v46_v4 = vld [vmem:[#allocation2 + $0x40] sm:$0xff]  ;;  %v48_v8 = vld [vmem:[#allocation2 + $0x50] sm:$0xff]  ;;  %v49_v12 = vld [vmem:[#allocation2 + $0x58] sm:$0xff]  ;;  %4632 = vset.pattern.permute.xlu1 %v4757_v17  ;;  %4633 = vset.pattern.permute.xlu0 %v4757_v17  ;;  %vm288_vm1 = vcmask 261120   ;;  %vm418_vm2 = vcmask 1040384  }
   0xf   :  { %29 = vadd.xlane.f32.xlu0 %v28_v1  ;;  %4202 = vmatprep.mubr.msk.f32.mxu0 %vm27_vm0, %v46_v4  ;;  %v280_v26 = vld [vmem:[#allocation2 + $0x60] sm:$0xff]  ;;  %v281_v27 = vld [vmem:[#allocation2 + $0x68] sm:$0xff]  ;;  %v44_v35 = vld [vmem:[%s5367_s0 + $0x18] sm:$0xff]  ;;  %vm411_vm3 = vcmask 15360   ;;  %vm4759_vm4 = vmmov 0   ;;  %vm892_vm5 = vcmask 1041408  }
  0x10   :  { %v33_v3 = vsel %vm27_vm0, %v32_v2, 0.0  ;;  %4210 = vmatprep.mubr.msk.f32.mxu1 %vm27_vm0, %v46_v4  ;;  %v284_v28 = vpack.c.bf16 %v281_v27, %v280_v26  ;;  %v344_v29 = vld [vmem:[#allocation2 + $0x80] sm:$0xff]  ;;  %v345_v30 = vld [vmem:[#allocation2 + $0x88] sm:$0xff]  ;;  %v43_v46 = vld [vmem:[%s5367_s0 + $0x10] sm:$0xff]  ;;  %vm791_vm6 = vcmask 130048   ;;  %vm888_vm7 = vcmask 31744  }
  0x11   :  { %v348_v31 = vpack.c.bf16 %v345_v30, %v344_v29  ;;  %v45_v34 = vld [vmem:[%s5367_s0 + $0x20] sm:$0xff]  ;;  %v42_v45 = vld [vmem:[%s5367_s0 + $0x8] sm:$0xff]  ;;  %v282_v55 = vld [vmem:[#allocation2 + $0x70] sm:$0xff] }
  0x12   :  { %v405_v51 = vld [vmem:[#allocation2 + $0xa0] sm:$0x3]  ;;  %v409_v52 = vld [vmem:[#allocation2 + $0xa8] sm:$0x3]  ;;  %v283_v56 = vld [vmem:[#allocation2 + $0x78] sm:$0xff] }
  0x13   :  { %34 = vadd.xlane.f32.xlu0 %v33_v3  ;;  %v346_v57 = vld [vmem:[#allocation2 + $0x90] sm:$0xff]  ;;  %v347_v58 = vld [vmem:[#allocation2 + $0x98] sm:$0xff]  ;;  %v408_v60 = vpack.c.bf16 %v405_v51, %v405_v51  ;;  %v410_v61 = vpack.c.bf16 %v409_v52, %v409_v52  ;;  %v285_v62 = vpack.c.bf16 %v283_v56, %v282_v55  ;;  %v4758_v55 = vmov 0.0  }
  0x14   :  { %v349_v63 = vpack.c.bf16 %v347_v58, %v346_v57  ;;  %v529_v2 = vld [vmem:[#allocation2 + $0xb0] sm:$0x3] }
  0x15   :  { %v478_v0 = vsel %vm418_vm2, %v408_v60, 0  ;;  %v420_v1 = vsel %vm418_vm2, %v410_v61, 0  ;;  %v532_v3 = vpack.c.bf16 %v529_v2, %v529_v2  ;;  %v604_v58 = vld [vmem:[%s5367_s0 + $0x30] sm:$0xff] }
  0x16   :  { %v787_v2 = vld [vmem:[#allocation2 + $0x130] sm:$0xff] }
  0x17   :  { %v540_v4 = vsel %vm418_vm2, %v532_v3, 0 }
  0x98   :  { %v30_v5 = vpop.xlane.xlu0 %29 }
  0x99   :  { %v4785_v6 = vmul.f32 0.125, %v30_v5 }
  0x9b   :  { %4200 = vmatprep.subr.mxu0 %v4785_v6  ;;  %v37_v10 = vmul.f32 %v4785_v6, %v4785_v6 }
  0x9c   :  { %4201 = vmatpush3.msra.mxu0 %v4785_v6  ;;  %v35_v9 = vpop.xlane.xlu0 %34 }
  0x9d   :  { %v36_v11 = vmul.f32 0.125, %v35_v9  ;;  %4203 = vmatmul.mubr.msk.f32.vlgmr.msra.gmra.mxu0 %vm27_vm0, %v47_v7 }
  0x9e   :  { %4205 = vmatprep.mubr.msk.f32.mxu0 %vm27_vm0, %v48_v8 }
  0x9f   :  { %v38_v13 = vsub.f32 %v36_v11, %v37_v10 }
  0xa1   :  { %v39_v14 = vmax.f32 %v38_v13, 0.0  ;;  %4206 = vmatmul.mubr.msk.f32.gmra.mxu0 %vm27_vm0, %v49_v12 }
  0xa2   :  { %4220 = vmatprep.mubr.msk.bf16.mxu0 %vm288_vm1, %v284_v28 }
  0xa3   :  { %v40_v15 = vadd.f32 1e-05, %v39_v14 }
  0xa5   :  { %4634 = vrsqrt.f32 %v40_v15 }
  0xb2   :  { %v4794_v16 = vpop.eup %4634 }
  0xb3   :  { %4208 = vmatprep.subr.mxu1 %v4794_v16 }
  0xb4   :  { %4209 = vmatpush3.msra.mxu1 %v4794_v16 }
  0xb5   :  { %4211 = vmatmul.mubr.msk.f32.vlgmr.msra.gmra.mxu1 %vm27_vm0, %v47_v7 }
  0xb6   :  { %4213 = vmatprep.mubr.msk.f32.mxu1 %vm27_vm0, %v48_v8 }
  0xb9   :  { %4214 = vmatmul.mubr.msk.f32.gmra.mxu1 %vm27_vm0, %v49_v12 }
  0xba   :  { %4228 = vmatprep.mubr.msk.bf16.mxu1 %vm288_vm1, %v348_v31 }
 0x15d   :  { %v4204_v18 = vpop.f32.mrf.mxu0 }
 0x15f   :  { %v128_v19 = vpop.f32.mrf.mxu0 }
 0x161   :  { %v4207_v20 = vpop.f32.mrf.mxu0 }
 0x162   :  { %249 = vperm.xlu1 %4632, %v4207_v20   ;;  %v606_v20 = vld [vmem:[#allocation2 + $0x128] sm:$0xff] }
 0x163   :  { %v138_v21 = vpop.f32.mrf.mxu0 }
 0x166   :  { %244 = vperm.xlu1 %4632, %v138_v21  }
 0x175   :  { %v4212_v22 = vpop.f32.mrf.mxu1 }
 0x177   :  { %v213_v23 = vpop.f32.mrf.mxu1 }
 0x179   :  { %v4215_v24 = vpop.f32.mrf.mxu1 }
 0x17a   :  { %273 = vperm.xlu1 %4632, %v4215_v24  }
 0x17b   :  { %v223_v25 = vpop.f32.mrf.mxu1 }
 0x17c   :  { %268 = vperm.xlu0 %4633, %v223_v25  }
 0x17e   :  { %234 = vperm.xlu1 %4632, %v128_v19   ;;  %v605_v19 = vld [vmem:[#allocation2 + $0x120] sm:$0xff] }
 0x182   :  { %239 = vperm.xlu1 %4632, %v4204_v18  }
 0x186   :  { %258 = vperm.xlu1 %4632, %v213_v23  }
 0x18a   :  { %263 = vperm.xlu1 %4632, %v4212_v22  }
 0x1dd   :  { %v250_v32 = vpop.permute.xlu1 %249 }
 0x1de   :  { %v255_v37 = vsub.f32 %v45_v34, %v250_v32 }
 0x1e1   :  { %v245_v33 = vpop.permute.xlu1 %244 }
 0x1e2   :  { %v254_v38 = vsub.f32 %v44_v35, %v245_v33 }
 0x1f5   :  { %v274_v36 = vpop.permute.xlu1 %273 }
 0x1f6   :  { %v279_v40 = vmul.f32 %v274_v36, %v255_v37  ;;  %v597_v36 = vld [vmem:[#allocation2 + $0xc8] sm:$0xff] }
 0x1f7   :  { %v269_v39 = vpop.permute.xlu0 %268 }
 0x1f8   :  { %v278_v41 = vmul.f32 %v269_v39, %v254_v38  ;;  %v598_v38 = vld [vmem:[#allocation2 + $0xd0] sm:$0xff] }
 0x1f9   :  { %v235_v42 = vpop.permute.xlu1 %234 }
 0x1fa   :  { %v287_v43 = vpack.c.bf16 %v279_v40, %v278_v41  ;;  %v252_v48 = vsub.f32 %v42_v45, %v235_v42  ;;  %v595_v42 = vld [vmem:[#allocation2 + $0xb8] sm:$0xff] }
 0x1fc   :  { %4216 = vmatprep.subr.bf16.mxu0 %v287_v43  ;;  %4224 = vmatprep.subr.bf16.mxu1 %v287_v43 }
 0x1fd   :  { %v240_v44 = vpop.permute.xlu1 %239  ;;  %4217 = vmatpush3.bf16.msra.mxu0 %v287_v43  ;;  %4225 = vmatpush3.bf16.msra.mxu1 %v287_v43 }
 0x1fe   :  { %v253_v49 = vsub.f32 %v43_v46, %v240_v44 }
 0x201   :  { %v259_v47 = vpop.permute.xlu1 %258 }
 0x202   :  { %v276_v53 = vmul.f32 %v259_v47, %v252_v48 }
 0x205   :  { %v264_v50 = vpop.permute.xlu1 %263 }
 0x206   :  { %v277_v54 = vmul.f32 %v264_v50, %v253_v49 }
 0x208   :  { %v286_v59 = vpack.c.bf16 %v277_v54, %v276_v53 }
 0x20a   :  { %4218 = vmatprep.subr.bf16.mxu0 %v286_v59  ;;  %4226 = vmatprep.subr.bf16.mxu1 %v286_v59 }
 0x20b   :  { %4219 = vmatpush3.bf16.msra.mxu0 %v286_v59  ;;  %4227 = vmatpush3.bf16.msra.mxu1 %v286_v59 }
 0x20c   :  { %4613 = vmatprep.subr.msk.bf16.mxu1 %vm418_vm2, %v408_v60  ;;  %4612 = vmatprep.subr.msk.bf16.mxu0 %vm418_vm2, %v410_v61 }
 0x20e   :  { %4221 = vmatmul.mubr.msk.bf16.vlgmr.msra.gmra.mxu0 %vm288_vm1, %v285_v62  ;;  %4229 = vmatmul.mubr.msk.bf16.vlgmr.msra.gmra.mxu1 %vm288_vm1, %v349_v63  ;;  %v883_v63 = vld [vmem:[#allocation2 + $0x150] sm:$0xf] }
 0x20f   :  { %4234 = vmatprep.mubr.msk.bf16.mxu0 %vm411_vm3, %v286_v59  ;;  %4239 = vmatpush3.bf16.msra.mxu1 %v478_v0  ;;  %v603_v59 = vld [vmem:[%s5367_s0 + $0x28] sm:$0xff]  ;;  %v886_v0 = vld [vmem:[#allocation2 + $0x158] sm:$0xf] }
 0x210   :  { %4250 = vmatprep.subr.mxu1 %v4785_v6  ;;  %4233 = vmatpush3.bf16.msra.mxu0 %v420_v1 }
 0x211   :  { %4614 = vmatprep.subr.msk.bf16.mxu0 %vm418_vm2, %v532_v3 }
 0x216   :  { %4235 = vmatmul.mubr.msk.bf16.vlgmr.msra.gmra.mxu0 %vm411_vm3, %v287_v43  ;;  %v596_v43 = vld [vmem:[#allocation2 + $0xc0] sm:$0xff] }
 0x217   :  { %4245 = vmatpush3.bf16.msra.mxu0 %v540_v4 }
 0x218   :  { %4260 = vmatprep.subr.bf16.mxu0 %v4758_v55 }
 0x2ce   :  { %v4222_v5 = vpop.f32.mrf.mxu0  ;;  %v4230_v7 = vpop.f32.mrf.mxu1 }
 0x2d0   :  { %v329_v8 = vpop.f32.mrf.mxu0  ;;  %v390_v9 = vpop.f32.mrf.mxu1 }
 0x2d2   :  { %v4223_v10 = vpop.f32.mrf.mxu0  ;;  %v4231_v11 = vpop.f32.mrf.mxu1 }
 0x2d3   :  { %v531_v13 = vpack.c.bf16 %v4231_v11, %v4230_v7  ;;  %v407_v18 = vpack.c.bf16 %v4223_v10, %v4222_v5  ;;  %v788_v5 = vld [vmem:[#allocation2 + $0x138] sm:$0xff]  ;;  %v836_v7 = vld [vmem:[#allocation2 + $0x140] sm:$0xff]  ;;  %v887_v10 = vpack.c.bf16 %v886_v0, %v886_v0 }
 0x2d4   :  { %v332_v12 = vpop.f32.mrf.mxu0  ;;  %v393_v14 = vpop.f32.mrf.mxu1 }
 0x2d5   :  { %v406_v15 = vpack.c.bf16 %v332_v12, %v329_v8  ;;  %v530_v17 = vpack.c.bf16 %v393_v14, %v390_v9  ;;  %v837_v8 = vld [vmem:[#allocation2 + $0x148] sm:$0xff]  ;;  %v885_v9 = vpack.c.bf16 %v883_v63, %v883_v63  ;;  %v789_v12 = vpack.c.bf16 %v788_v5, %v787_v2 }
 0x2d6   :  { %v4236_v21 = vpop.f32.mrf.mxu0 }
 0x2d7   :  { %4240 = vmatprep.mubr.msk.bf16.mxu1 %vm411_vm3, %v406_v15  ;;  %4246 = vmatprep.mubr.msk.bf16.mxu0 %vm411_vm3, %v530_v17  ;;  %v941_v14 = vsel %vm892_vm5, %v885_v9, 0  ;;  %v894_v15 = vsel %vm892_vm5, %v887_v10, 0  ;;  %v984_v17 = vld [vmem:[#allocation2 + $0x160] sm:$0xf]  ;;  %v1225_v10 = vld [vmem:[#allocation2 + $0x1c8] sm:$0xff] }
 0x2d8   :  { %4241 = vmatmul.mubr.msk.bf16.vlgmr.msra.gmra.mxu1 %vm411_vm3, %v407_v18  ;;  %4247 = vmatmul.mubr.msk.bf16.vlgmr.msra.gmra.mxu0 %vm411_vm3, %v531_v13  ;;  %v456_v22 = vpop.f32.mrf.mxu0  ;;  %v838_v13 = vpack.c.bf16 %v837_v8, %v836_v7  ;;  %v986_v18 = vpack.c.bf16 %v984_v17, %v984_v17  ;;  %v1224_v7 = vld [vmem:[#allocation2 + $0x1c0] sm:$0xff] }
 0x2d9   :  { %4251 = vmatpush3.msra.mxu1 %v4785_v6  ;;  %4252 = vmatprep.mubr.msk.f32.mxu1 %vm27_vm0, %v605_v19  ;;  %v1226_v17 = vpack.c.bf16 %v1225_v10, %v1224_v7  ;;  %v1713_v7 = vld [vmem:[#allocation2 + $0x288] sm:$0xff] }
 0x2da   :  { %4255 = vmatprep.subr.mxu1 %v4794_v16  ;;  %v4237_v23 = vpop.f32.mrf.mxu0  ;;  %4262 = vmatprep.mubr.msk.bf16.mxu0 %vm4759_vm4, %v4758_v55  ;;  %v1776_v10 = vld [vmem:[#allocation2 + $0x2a8] sm:$0xff] }
 0x2dc   :  { %v459_v24 = vpop.f32.mrf.mxu0 }
 0x2e0   :  { %4253 = vmatmul.mubr.msk.f32.vlgmr.msra.gmra.mxu1 %vm27_vm0, %v606_v20 }
 0x2e1   :  { %4256 = vmatpush3.msra.mxu1 %v4794_v16  ;;  %4257 = vmatprep.mubr.msk.f32.mxu1 %vm27_vm0, %v605_v19  ;;  %v991_v19 = vsel %vm892_vm5, %v986_v18, 0 }
 0x2e2   :  { %4266 = vmatprep.subr.bf16.mxu1 %v4758_v55 }
 0x2e4   :  { %4258 = vmatmul.mubr.msk.f32.vlgmr.msra.gmra.mxu1 %vm27_vm0, %v606_v20 }
 0x2e5   :  { %4268 = vmatprep.mubr.msk.bf16.mxu1 %vm4759_vm4, %v4758_v55 }
 0x398   :  { %v4242_v25 = vpop.f32.mrf.mxu1  ;;  %v4248_v26 = vpop.f32.mrf.mxu0 }
 0x399   :  { %v523_v27 = vadd.f32 %v4242_v25, %v4236_v21 }
 0x39a   :  { %v514_v28 = vpop.f32.mrf.mxu1  ;;  %v576_v29 = vpop.f32.mrf.mxu0 }
 0x39b   :  { %v515_v30 = vadd.f32 %v514_v28, %v456_v22  ;;  %v593_v31 = vadd.f32 %v4248_v26, %v523_v27  ;;  %v1042_v28 = vld [vmem:[#allocation2 + $0x1b0] sm:$0xff] }
 0x39c   :  { %v4243_v32 = vpop.f32.mrf.mxu1  ;;  %v4249_v33 = vpop.f32.mrf.mxu0 }
 0x39d   :  { %v526_v34 = vadd.f32 %v4243_v32, %v4237_v23  ;;  %v591_v35 = vadd.f32 %v576_v29, %v515_v30  ;;  %v601_v45 = vadd.f32 %v597_v36, %v593_v31 }
 0x39e   :  { %v517_v37 = vpop.f32.mrf.mxu1  ;;  %v579_v39 = vpop.f32.mrf.mxu0 }
 0x39f   :  { %v518_v40 = vadd.f32 %v517_v37, %v459_v24  ;;  %v594_v41 = vadd.f32 %v4249_v33, %v526_v34  ;;  %v599_v49 = vadd.f32 %v595_v42, %v591_v35  ;;  %v1043_v34 = vld [vmem:[#allocation2 + $0x1b8] sm:$0xff] }
 0x3a0   :  { %v4254_v44 = vpop.f32.mrf.mxu1 }
 0x3a1   :  { %v602_v46 = vadd.f32 %v598_v38, %v594_v41  ;;  %v592_v47 = vadd.f32 %v579_v39, %v518_v40  ;;  %770 = vperm.xlu1 %4632, %v4254_v44  }
 0x3a2   :  { %v679_v48 = vpop.f32.mrf.mxu1 }
 0x3a3   :  { %v4837_v50 = vpack.c.bf16 %v602_v46, %v601_v45  ;;  %v600_v51 = vadd.f32 %v596_v43, %v592_v47  ;;  %v1036_v45 = vld [vmem:[#allocation2 + $0x168] sm:$0xff]  ;;  %v1037_v47 = vld [vmem:[#allocation2 + $0x170] sm:$0xff] }
 0x3a4   :  { %v4259_v52 = vpop.f32.mrf.mxu1 }
 0x3a5   :  { %v4839_v53 = vpack.c.bf16 %v600_v51, %v599_v49  ;;  %765 = vperm.xlu1 %4632, %v679_v48  }
 0x3a6   :  { %v754_v54 = vpop.f32.mrf.mxu1 }
 0x3a9   :  { %777 = vperm.xlu1 %4632, %v754_v54  }
 0x3ad   :  { %782 = vperm.xlu1 %4632, %v4259_v52  }
 0x41c   :  { %v771_v56 = vpop.permute.xlu1 %770 }
 0x41d   :  { %v774_v61 = vsub.f32 %v604_v58, %v771_v56 }
 0x420   :  { %v766_v57 = vpop.permute.xlu1 %765 }
 0x421   :  { %v773_v62 = vsub.f32 %v603_v59, %v766_v57 }
 0x424   :  { %v778_v60 = vpop.permute.xlu1 %777 }
 0x425   :  { %v785_v3 = vmul.f32 %v778_v60, %v773_v62  ;;  %v1041_v62 = vld [vmem:[%s5367_s0 + $0x40] sm:$0xff] }
 0x428   :  { %v783_v1 = vpop.permute.xlu1 %782 }
 0x429   :  { %v786_v4 = vmul.f32 %v783_v1, %v774_v61  ;;  %v1040_v61 = vld [vmem:[%s5367_s0 + $0x38] sm:$0xff] }
 0x42b   :  { %v790_v11 = vpack.c.bf16 %v786_v4, %v785_v3  ;;  %v1319_v3 = vld [vmem:[#allocation2 + $0x1e0] sm:$0xf]  ;;  %v1322_v4 = vld [vmem:[#allocation2 + $0x1e8] sm:$0xf] }
 0x42d   :  { %4261 = vmatpush3.bf16.msra.mxu0 %v790_v11  ;;  %4267 = vmatpush3.bf16.msra.mxu1 %v790_v11 }
 0x42e   :  { %4278 = vmatprep.subr.bf16.mxu1 %v4758_v55  ;;  %4272 = vmatprep.subr.bf16.mxu0 %v4758_v55 }
 0x430   :  { %4263 = vmatmul.mubr.msk.bf16.vlgmr.msra.gmra.mxu0 %vm791_vm6, %v789_v12  ;;  %4269 = vmatmul.mubr.msk.bf16.vlgmr.msra.gmra.mxu1 %vm791_vm6, %v838_v13  ;;  %v1273_v12 = vld [vmem:[#allocation2 + $0x1d8] sm:$0xff]  ;;  %v1321_v13 = vpack.c.bf16 %v1319_v3, %v1319_v3 }
 0x431   :  { %4279 = vmatpush3.bf16.msra.mxu1 %v941_v14  ;;  %4273 = vmatpush3.bf16.msra.mxu0 %v894_v15  ;;  %v1323_v14 = vpack.c.bf16 %v1322_v4, %v1322_v4 }
 0x432   :  { %4290 = vmatprep.subr.mxu1 %v4785_v6  ;;  %4274 = vmatprep.mubr.msk.bf16.mxu0 %vm4759_vm4, %v4758_v55 }
 0x433   :  { %4284 = vmatprep.subr.bf16.mxu0 %v4758_v55  ;;  %4280 = vmatprep.mubr.msk.bf16.mxu1 %vm4759_vm4, %v4758_v55 }
 0x438   :  { %4275 = vmatmul.mubr.msk.bf16.vlgmr.msra.gmra.mxu0 %vm888_vm7, %v790_v11  ;;  %v1272_v11 = vld [vmem:[#allocation2 + $0x1d0] sm:$0xff] }
 0x439   :  { %4286 = vmatprep.mubr.msk.bf16.mxu0 %vm4759_vm4, %v4758_v55  ;;  %4285 = vmatpush3.bf16.msra.mxu0 %v991_v19  ;;  %v1274_v18 = vpack.c.bf16 %v1273_v12, %v1272_v11  ;;  %v1375_v19 = vsel %vm892_vm5, %v1321_v13, 0 }
 0x43a   :  { %4300 = vmatprep.subr.bf16.mxu0 %v4758_v55 }
 0x4f0   :  { %v829_v20 = vpop.f32.mrf.mxu0  ;;  %v876_v21 = vpop.f32.mrf.mxu1 }
 0x4f2   :  { %v4264_v22 = vpop.f32.mrf.mxu0  ;;  %v4270_v23 = vpop.f32.mrf.mxu1 }
 0x4f4   :  { %v832_v24 = vpop.f32.mrf.mxu0  ;;  %v879_v25 = vpop.f32.mrf.mxu1 }
 0x4f5   :  { %v884_v26 = vpack.c.bf16 %v832_v24, %v829_v20  ;;  %v985_v27 = vpack.c.bf16 %v879_v25, %v876_v21  ;;  %v1328_v20 = vsel %vm892_vm5, %v1323_v14, 0  ;;  %v1418_v21 = vld [vmem:[#allocation2 + $0x1f0] sm:$0xf] }
 0x4f6   :  { %v4265_v29 = vpop.f32.mrf.mxu0  ;;  %v4271_v30 = vpop.f32.mrf.mxu1  ;;  %v1420_v22 = vpack.c.bf16 %v1418_v21, %v1418_v21 }
 0x4f7   :  { %4281 = vmatmul.mubr.msk.bf16.vlgmr.msra.gmra.mxu1 %vm888_vm7, %v884_v26  ;;  %4287 = vmatmul.mubr.msk.bf16.vlgmr.msra.gmra.mxu0 %vm888_vm7, %v985_v27 }
 0x4f8   :  { %4291 = vmatpush3.msra.mxu1 %v4785_v6  ;;  %v930_v31 = vpop.f32.mrf.mxu0  ;;  %4292 = vmatprep.mubr.msk.f32.mxu1 %vm27_vm0, %v1042_v28  ;;  %v1425_v23 = vsel %vm892_vm5, %v1420_v22, 0  ;;  %v1475_v22 = vld [vmem:[%s5367_s0 + $0x50] sm:$0xff] }
 0x4f9   :  { %4295 = vmatprep.subr.mxu1 %v4794_v16  ;;  %4302 = vmatprep.mubr.msk.bf16.mxu0 %vm4759_vm4, %v4758_v55 }
 0x4fa   :  { %v4276_v32 = vpop.f32.mrf.mxu0 }
 0x4fc   :  { %v933_v33 = vpop.f32.mrf.mxu0 }
 0x4fe   :  { %v4277_v35 = vpop.f32.mrf.mxu0 }
 0x4ff   :  { %4293 = vmatmul.mubr.msk.f32.vlgmr.msra.gmra.mxu1 %vm27_vm0, %v1043_v34 }
 0x500   :  { %4296 = vmatpush3.msra.mxu1 %v4794_v16  ;;  %4297 = vmatprep.mubr.msk.f32.mxu1 %vm27_vm0, %v1042_v28 }
 0x501   :  { %4306 = vmatprep.subr.bf16.mxu1 %v4758_v55 }
 0x503   :  { %4298 = vmatmul.mubr.msk.f32.vlgmr.msra.gmra.mxu1 %vm27_vm0, %v1043_v34  ;;  %v1478_v34 = vld [vmem:[#allocation2 + $0x260] sm:$0xff] }
 0x504   :  { %4308 = vmatprep.mubr.msk.bf16.mxu1 %vm4759_vm4, %v4758_v55 }
 0x5b7   :  { %v977_v36 = vpop.f32.mrf.mxu1  ;;  %v1027_v37 = vpop.f32.mrf.mxu0 }
 0x5b8   :  { %v978_v38 = vadd.f32 %v977_v36, %v930_v31 }
 0x5b9   :  { %v4282_v39 = vpop.f32.mrf.mxu1  ;;  %v4288_v40 = vpop.f32.mrf.mxu0 }
 0x5ba   :  { %v1034_v41 = vadd.f32 %v1027_v37, %v978_v38  ;;  %v1479_v38 = vld [vmem:[#allocation2 + $0x268] sm:$0xff]  ;;  %v1480_v39 = vld [vmem:[#allocation2 + $0x270] sm:$0xff] }
 0x5bb   :  { %v980_v42 = vpop.f32.mrf.mxu1  ;;  %v1030_v43 = vpop.f32.mrf.mxu0 }
 0x5bc   :  { %v981_v44 = vadd.f32 %v980_v42, %v933_v33  ;;  %v1038_v52 = vadd.f32 %v1036_v45, %v1034_v41  ;;  %v1481_v41 = vld [vmem:[#allocation2 + $0x278] sm:$0xff] }
 0x5bd   :  { %v4283_v46 = vpop.f32.mrf.mxu1  ;;  %v4289_v48 = vpop.f32.mrf.mxu0 }
 0x5be   :  { %v1035_v49 = vadd.f32 %v1030_v43, %v981_v44 }
 0x5bf   :  { %v4294_v51 = vpop.f32.mrf.mxu1 }
 0x5c0   :  { %v1039_v54 = vadd.f32 %v1037_v47, %v1035_v49  ;;  %1207 = vperm.xlu1 %4632, %v4294_v51   ;;  %v1470_v49 = vld [vmem:[#allocation2 + $0x1f8] sm:$0xff]  ;;  %v1471_v51 = vld [vmem:[#allocation2 + $0x200] sm:$0xff] }
 0x5c1   :  { %v1116_v56 = vpop.f32.mrf.mxu1 }
 0x5c2   :  { %v4884_v57 = vpack.c.bf16 %v1039_v54, %v1038_v52 }
 0x5c3   :  { %v4299_v58 = vpop.f32.mrf.mxu1 }
 0x5c4   :  { %1202 = vperm.xlu1 %4632, %v1116_v56  }
 0x5c5   :  { %v1191_v59 = vpop.f32.mrf.mxu1 }
 0x5c6   :  { %1214 = vperm.xlu0 %4633, %v1191_v59  }
 0x5c8   :  { %1219 = vperm.xlu1 %4632, %v4299_v58  }
 0x63b   :  { %v1208_v60 = vpop.permute.xlu1 %1207 }
 0x63c   :  { %v1211_v2 = vsub.f32 %v1041_v62, %v1208_v60 }
 0x63f   :  { %v1203_v63 = vpop.permute.xlu1 %1202 }
 0x640   :  { %v1210_v0 = vsub.f32 %v1040_v61, %v1203_v63 }
 0x641   :  { %v1215_v1 = vpop.permute.xlu0 %1214 }
 0x642   :  { %v1222_v8 = vmul.f32 %v1215_v1, %v1210_v0 }
 0x643   :  { %v1220_v5 = vpop.permute.xlu1 %1219 }
 0x644   :  { %v1223_v9 = vmul.f32 %v1220_v5, %v1211_v2  ;;  %v1712_v5 = vld [vmem:[#allocation2 + $0x280] sm:$0xff] }
 0x646   :  { %v1227_v15 = vpack.c.bf16 %v1223_v9, %v1222_v8  ;;  %v1775_v8 = vld [vmem:[#allocation2 + $0x2a0] sm:$0xff]  ;;  %v1716_v9 = vpack.c.bf16 %v1713_v7, %v1712_v5  ;;  %v2148_v5 = vld [vmem:[#allocation2 + $0x370] sm:$0xff]  ;;  %v2149_v7 = vld [vmem:[#allocation2 + $0x378] sm:$0xff] }
 0x647   :  { %v1779_v11 = vpack.c.bf16 %v1776_v10, %v1775_v8 }
 0x648   :  { %4301 = vmatpush3.bf16.msra.mxu0 %v1227_v15  ;;  %4307 = vmatpush3.bf16.msra.mxu1 %v1227_v15 }
 0x649   :  { %4318 = vmatprep.subr.bf16.mxu1 %v4758_v55  ;;  %4312 = vmatprep.subr.bf16.mxu0 %v4758_v55 }
 0x64b   :  { %4303 = vmatmul.mubr.msk.bf16.vlgmr.msra.gmra.mxu0 %vm791_vm6, %v1226_v17  ;;  %4309 = vmatmul.mubr.msk.bf16.vlgmr.msra.gmra.mxu1 %vm791_vm6, %v1274_v18  ;;  %v1476_v17 = vld [vmem:[%s5367_s0 + $0x58] sm:$0xff] }
 0x64c   :  { %4319 = vmatpush3.bf16.msra.mxu1 %v1375_v19  ;;  %4313 = vmatpush3.bf16.msra.mxu0 %v1328_v20 }
 0x64d   :  { %4330 = vmatprep.subr.mxu1 %v4785_v6  ;;  %4314 = vmatprep.mubr.msk.bf16.mxu0 %vm4759_vm4, %v4758_v55 }
 0x64e   :  { %4324 = vmatprep.subr.bf16.mxu0 %v4758_v55  ;;  %4320 = vmatprep.mubr.msk.bf16.mxu1 %vm4759_vm4, %v4758_v55 }
 0x653   :  { %4315 = vmatmul.mubr.msk.bf16.vlgmr.msra.gmra.mxu0 %vm888_vm7, %v1227_v15  ;;  %v1477_v15 = vld [vmem:[%s5367_s0 + $0x60] sm:$0xff] }
 0x654   :  { %4325 = vmatpush3.bf16.msra.mxu0 %v1425_v23  ;;  %4326 = vmatprep.mubr.msk.bf16.mxu0 %vm4759_vm4, %v4758_v55  ;;  %v1474_v23 = vld [vmem:[%s5367_s0 + $0x48] sm:$0xff] }
 0x655   :  { %4338 = vmatprep.subr.mxu0 %v4794_v16 }
 0x70b   :  { %v1265_v24 = vpop.f32.mrf.mxu0  ;;  %v1312_v25 = vpop.f32.mrf.mxu1 }
 0x70d   :  { %v4304_v26 = vpop.f32.mrf.mxu0  ;;  %v4310_v27 = vpop.f32.mrf.mxu1 }
 0x70f   :  { %v1268_v28 = vpop.f32.mrf.mxu0  ;;  %v1315_v29 = vpop.f32.mrf.mxu1 }
 0x710   :  { %v1320_v30 = vpack.c.bf16 %v1268_v28, %v1265_v24  ;;  %v1419_v31 = vpack.c.bf16 %v1315_v29, %v1312_v25 }
 0x711   :  { %v4305_v32 = vpop.f32.mrf.mxu0  ;;  %v4311_v33 = vpop.f32.mrf.mxu1 }
 0x712   :  { %4321 = vmatmul.mubr.msk.bf16.vlgmr.msra.gmra.mxu1 %vm888_vm7, %v1320_v30  ;;  %4327 = vmatmul.mubr.msk.bf16.vlgmr.msra.gmra.mxu0 %vm888_vm7, %v1419_v31  ;;  %v1840_v32 = vld [vmem:[#allocation2 + $0x2c8] sm:$0x3] }
 0x713   :  { %4331 = vmatpush3.msra.mxu1 %v4785_v6  ;;  %4339 = vmatpush3.msra.mxu0 %v4794_v16  ;;  %v1364_v35 = vpop.f32.mrf.mxu0 }
 0x714   :  { %4332 = vmatprep.mubr.msk.f32.mxu1 %vm27_vm0, %v1478_v34  ;;  %4340 = vmatprep.mubr.msk.f32.mxu0 %vm27_vm0, %v1478_v34 }
 0x715   :  { %v4316_v36 = vpop.f32.mrf.mxu0 }
 0x716   :  { %v1715_v36 = vld [vmem:[#allocation2 + $0x298] sm:$0xff] }
 0x717   :  { %v1367_v37 = vpop.f32.mrf.mxu0 }
 0x719   :  { %v4317_v40 = vpop.f32.mrf.mxu0 }
 0x71a   :  { %4333 = vmatmul.mubr.msk.f32.vlgmr.msra.gmra.mxu1 %vm27_vm0, %v1479_v38  ;;  %4341 = vmatmul.mubr.msk.f32.vlgmr.msra.gmra.mxu0 %vm27_vm0, %v1479_v38  ;;  %v1778_v38 = vld [vmem:[#allocation2 + $0x2b8] sm:$0xff]  ;;  %v1841_v40 = vpack.c.bf16 %v1840_v32, %v1840_v32 }
 0x71b   :  { %4335 = vmatprep.mubr.msk.f32.mxu1 %vm27_vm0, %v1480_v39  ;;  %4343 = vmatprep.mubr.msk.f32.mxu0 %vm27_vm0, %v1480_v39 }
 0x71e   :  { %4336 = vmatmul.mubr.msk.f32.gmra.mxu1 %vm27_vm0, %v1481_v41  ;;  %4344 = vmatmul.mubr.msk.f32.gmra.mxu0 %vm27_vm0, %v1481_v41 }
 0x71f   :  { %4350 = vmatprep.mubr.msk.bf16.mxu1 %vm288_vm1, %v1716_v9  ;;  %4358 = vmatprep.mubr.msk.bf16.mxu0 %vm288_vm1, %v1779_v11 }
 0x7d2   :  { %v1411_v6 = vpop.f32.mrf.mxu1  ;;  %v1461_v16 = vpop.f32.mrf.mxu0 }
 0x7d3   :  { %v1412_v42 = vadd.f32 %v1411_v6, %v1364_v35  ;;  %v1714_v35 = vld [vmem:[#allocation2 + $0x290] sm:$0xff] }
 0x7d4   :  { %v4322_v43 = vpop.f32.mrf.mxu1  ;;  %v4328_v44 = vpop.f32.mrf.mxu0  ;;  %v1717_v41 = vpack.c.bf16 %v1715_v36, %v1714_v35 }
 0x7d5   :  { %v1468_v45 = vadd.f32 %v1461_v16, %v1412_v42  ;;  %v1849_v16 = vsel %vm418_vm2, %v1841_v40, 0  ;;  %v1836_v42 = vld [vmem:[#allocation2 + $0x2c0] sm:$0x3]  ;;  %v1958_v43 = vld [vmem:[#allocation2 + $0x2d0] sm:$0x3] }
 0x7d6   :  { %v1414_v46 = vpop.f32.mrf.mxu1  ;;  %v1464_v47 = vpop.f32.mrf.mxu0  ;;  %v1839_v44 = vpack.c.bf16 %v1836_v42, %v1836_v42  ;;  %v2027_v42 = vld [vmem:[#allocation2 + $0x2f0] sm:$0xff] }
 0x7d7   :  { %v1415_v48 = vadd.f32 %v1414_v46, %v1367_v37  ;;  %v1472_v60 = vadd.f32 %v1470_v49, %v1468_v45  ;;  %v1777_v37 = vld [vmem:[#allocation2 + $0x2b0] sm:$0xff]  ;;  %v1961_v45 = vpack.c.bf16 %v1958_v43, %v1958_v43  ;;  %v2035_v49 = vld [vmem:[#allocation2 + $0x338] sm:$0xff] }
 0x7d8   :  { %v4323_v52 = vpop.f32.mrf.mxu1  ;;  %v4329_v54 = vpop.f32.mrf.mxu0  ;;  %v1780_v6 = vpack.c.bf16 %v1778_v38, %v1777_v37  ;;  %v1907_v46 = vsel %vm418_vm2, %v1839_v44, 0 }
 0x7d9   :  { %v1469_v56 = vadd.f32 %v1464_v47, %v1415_v48  ;;  %v1969_v47 = vsel %vm418_vm2, %v1961_v45, 0  ;;  %v2034_v48 = vld [vmem:[#allocation2 + $0x330] sm:$0xff]  ;;  %v2151_v54 = vld [vmem:[#allocation2 + $0x388] sm:$0xff] }
 0x7da   :  { %v4334_v58 = vpop.f32.mrf.mxu1  ;;  %v4342_v59 = vpop.f32.mrf.mxu0  ;;  %v2043_v52 = vpack.c.bf16 %v2035_v49, %v2034_v48  ;;  %v2026_v48 = vld [vmem:[#allocation2 + $0x2e8] sm:$0xff] }
 0x7db   :  { %v1473_v61 = vadd.f32 %v1471_v51, %v1469_v56  ;;  %1671 = vperm.xlu1 %4632, %v4334_v58   ;;  %v2150_v51 = vld [vmem:[#allocation2 + $0x380] sm:$0xff] }
 0x7dc   :  { %v1560_v62 = vpop.f32.mrf.mxu1  ;;  %v1645_v63 = vpop.f32.mrf.mxu0  ;;  %v2153_v56 = vpack.c.bf16 %v2151_v54, %v2150_v51  ;;  %v4970_v54 = vld [vmem:[#allocation2 + $0x340] ss:$0 sm:$0xff] }
 0x7dd   :  { %v4921_v0 = vpack.c.bf16 %v1473_v61, %v1472_v60  ;;  %1666 = vperm.xlu0 %4633, %v1560_v62  }
 0x7de   :  { %v4337_v1 = vpop.f32.mrf.mxu1  ;;  %v4345_v3 = vpop.f32.mrf.mxu0 }
 0x7df   :  { %1681 = vperm.xlu1 %4632, %v4337_v1   ;;  %v2032_v1 = vld [vmem:[#allocation2 + $0x320] sm:$0xff] }
 0x7e0   :  { %v1570_v2 = vpop.f32.mrf.mxu1  ;;  %v1655_v4 = vpop.f32.mrf.mxu0 }
 0x7e1   :  { %1676 = vperm.xlu0 %4633, %v1570_v2  }
 0x7e3   :  { %1705 = vperm.xlu1 %4632, %v4345_v3  }
 0x7e5   :  { %1700 = vperm.xlu0 %4633, %v1655_v4   ;;  %v2033_v4 = vld [vmem:[#allocation2 + $0x328] sm:$0xff] }
 0x7e7   :  { %1695 = vperm.xlu1 %4632, %v4342_v59  }
 0x7e9   :  { %1690 = vperm.xlu0 %4633, %v1645_v63  }
 0x856   :  { %v1672_v12 = vpop.permute.xlu1 %1671 }
 0x857   :  { %v1685_v28 = vsub.f32 %v1475_v22, %v1672_v12  ;;  %v2042_v12 = vpack.c.bf16 %v2033_v4, %v2032_v1  ;;  %v2241_v22 = vld [vmem:[#allocation2 + $0x350] sm:$0xff] }
 0x858   :  { %v1667_v13 = vpop.permute.xlu0 %1666 }
 0x859   :  { %v1684_v29 = vsub.f32 %v1474_v23, %v1667_v13  ;;  %v2152_v13 = vpack.c.bf16 %v2149_v7, %v2148_v5  ;;  %v2332_v23 = vld [vmem:[#allocation2 + $0x398] sm:$0xff] }
 0x85a   :  { %v1682_v14 = vpop.permute.xlu1 %1681 }
 0x85b   :  { %v1687_v20 = vsub.f32 %v1477_v15, %v1682_v14  ;;  %v2242_v14 = vld [vmem:[#allocation2 + $0x358] sm:$0xff]  ;;  %v2243_v15 = vld [vmem:[#allocation2 + $0x360] sm:$0xff] }
 0x85c   :  { %v1677_v18 = vpop.permute.xlu0 %1676 }
 0x85d   :  { %v1686_v21 = vsub.f32 %v1476_v17, %v1677_v18  ;;  %v2245_v17 = vpack.c.bf16 %v2243_v15, %v2242_v14  ;;  %v2334_v18 = vld [vmem:[#allocation2 + $0x3a8] sm:$0xff]  ;;  %v4998_v14 = vld [vmem:[#allocation2 + $0x390] ss:$0 sm:$0xff] }
 0x85e   :  { %v1706_v19 = vpop.permute.xlu1 %1705 }
 0x85f   :  { %v1711_v25 = vmul.f32 %v1706_v19, %v1687_v20  ;;  %v2335_v19 = vld [vmem:[#allocation2 + $0x3b0] sm:$0xff] }
 0x860   :  { %v1701_v24 = vpop.permute.xlu0 %1700  ;;  %v2337_v20 = vpack.c.bf16 %v2335_v19, %v2334_v18 }
 0x861   :  { %v1710_v26 = vmul.f32 %v1701_v24, %v1686_v21  ;;  %v2240_v21 = vld [vmem:[#allocation2 + $0x348] sm:$0xff] }
 0x862   :  { %v1696_v27 = vpop.permute.xlu1 %1695  ;;  %v2244_v24 = vpack.c.bf16 %v2241_v22, %v2240_v21 }
 0x863   :  { %v1719_v30 = vpack.c.bf16 %v1711_v25, %v1710_v26  ;;  %v1709_v33 = vmul.f32 %v1696_v27, %v1685_v28  ;;  %v2333_v25 = vld [vmem:[#allocation2 + $0x3a0] sm:$0xff] }
 0x864   :  { %v1691_v31 = vpop.permute.xlu0 %1690  ;;  %v2336_v26 = vpack.c.bf16 %v2333_v25, %v2332_v23 }
 0x865   :  { %v1708_v34 = vmul.f32 %v1691_v31, %v1684_v29  ;;  %4346 = vmatprep.subr.bf16.mxu1 %v1719_v30  ;;  %4354 = vmatprep.subr.bf16.mxu0 %v1719_v30 }
 0x866   :  { %4347 = vmatpush3.bf16.msra.mxu1 %v1719_v30  ;;  %4355 = vmatpush3.bf16.msra.mxu0 %v1719_v30 }
 0x867   :  { %v1718_v39 = vpack.c.bf16 %v1709_v33, %v1708_v34 }
 0x869   :  { %4348 = vmatprep.subr.bf16.mxu1 %v1718_v39  ;;  %4356 = vmatprep.subr.bf16.mxu0 %v1718_v39 }
 0x86a   :  { %4349 = vmatpush3.bf16.msra.mxu1 %v1718_v39  ;;  %4357 = vmatpush3.bf16.msra.mxu0 %v1718_v39 }
 0x86b   :  { %4615 = vmatprep.subr.msk.bf16.mxu1 %vm418_vm2, %v1841_v40  ;;  %4616 = vmatprep.subr.msk.bf16.mxu0 %vm418_vm2, %v1839_v44 }
 0x86d   :  { %4351 = vmatmul.mubr.msk.bf16.vlgmr.msra.gmra.mxu1 %vm288_vm1, %v1717_v41  ;;  %4359 = vmatmul.mubr.msk.bf16.vlgmr.msra.gmra.mxu0 %vm288_vm1, %v1780_v6 }
 0x86e   :  { %4364 = vmatprep.mubr.msk.bf16.mxu1 %vm411_vm3, %v1718_v39  ;;  %4363 = vmatpush3.bf16.msra.mxu1 %v1849_v16 }
 0x86f   :  { %4617 = vmatprep.subr.msk.bf16.mxu1 %vm418_vm2, %v1961_v45  ;;  %4369 = vmatpush3.bf16.msra.mxu0 %v1907_v46  ;;  %v2024_v45 = vld [vmem:[#allocation2 + $0x2d8] sm:$0xff]  ;;  %v2025_v46 = vld [vmem:[#allocation2 + $0x2e0] sm:$0xff] }
 0x870   :  { %4380 = vmatprep.subr.bf16.mxu0 %v2043_v52 }
 0x875   :  { %4365 = vmatmul.mubr.msk.bf16.vlgmr.msra.gmra.mxu1 %vm411_vm3, %v1719_v30 }
 0x876   :  { %4375 = vmatpush3.bf16.msra.mxu1 %v1969_v47 }
 0x877   :  { %4396 = vmatprep.subr.bf16.mxu1 %v2153_v56 }
 0x92d   :  { %v4352_v58 = vpop.f32.mrf.mxu1  ;;  %v4360_v59 = vpop.f32.mrf.mxu0 }
 0x92f   :  { %v1760_v60 = vpop.f32.mrf.mxu1  ;;  %v1821_v61 = vpop.f32.mrf.mxu0 }
 0x931   :  { %v4353_v62 = vpop.f32.mrf.mxu1  ;;  %v4361_v63 = vpop.f32.mrf.mxu0 }
 0x932   :  { %v1838_v10 = vpack.c.bf16 %v4353_v62, %v4352_v58  ;;  %v1960_v11 = vpack.c.bf16 %v4361_v63, %v4360_v59 }
 0x933   :  { %v1763_v2 = vpop.f32.mrf.mxu1  ;;  %v1824_v3 = vpop.f32.mrf.mxu0 }
 0x934   :  { %v1837_v8 = vpack.c.bf16 %v1763_v2, %v1760_v60  ;;  %v1959_v9 = vpack.c.bf16 %v1824_v3, %v1821_v61 }
 0x935   :  { %v4366_v27 = vpop.f32.mrf.mxu1 }
 0x936   :  { %4370 = vmatprep.mubr.msk.bf16.mxu0 %vm411_vm3, %v1837_v8  ;;  %4376 = vmatprep.mubr.msk.bf16.mxu1 %vm411_vm3, %v1959_v9 }
 0x937   :  { %4371 = vmatmul.mubr.msk.bf16.vlgmr.msra.gmra.mxu0 %vm411_vm3, %v1838_v10  ;;  %4377 = vmatmul.mubr.msk.bf16.vlgmr.msra.gmra.mxu1 %vm411_vm3, %v1960_v11  ;;  %v1885_v28 = vpop.f32.mrf.mxu1 }
 0x938   :  { %4381 = vmatpush3.bf16.msra.mxu0 %v2043_v52  ;;  %4384 = vmatprep.mubr.msk.bf16.mxu0 %vm288_vm1, %v4839_v53 }
 0x939   :  { %4397 = vmatpush3.bf16.msra.mxu1 %v2153_v56  ;;  %4400 = vmatprep.mubr.msk.bf16.mxu1 %vm288_vm1, %v4839_v53  ;;  %v4367_v29 = vpop.f32.mrf.mxu1 }
 0x93a   :  { %4382 = vmatprep.subr.bf16.mxu0 %v2042_v12  ;;  %4398 = vmatprep.subr.bf16.mxu1 %v2152_v13 }
 0x93b   :  { %v1888_v30 = vpop.f32.mrf.mxu1 }
 0x93c   :  { %4383 = vmatpush3.bf16.msra.mxu0 %v2042_v12 }
 0x93d   :  { %4399 = vmatpush3.bf16.msra.mxu1 %v2152_v13  ;;  %4412 = vmatprep.subr.bf16.mxu0 %v2245_v17 }
 0x93e   :  { %4428 = vmatprep.subr.bf16.mxu1 %v2337_v20 }
 0x93f   :  { %4385 = vmatmul.mubr.msk.bf16.vlgmr.msra.gmra.mxu0 %vm288_vm1, %v4837_v50 }
 0x940   :  { %4401 = vmatmul.mubr.msk.bf16.vlgmr.msra.gmra.mxu1 %vm288_vm1, %v4837_v50  ;;  %4388 = vmatprep.mubr.msk.bf16.mxu0 %vm288_vm1, %v4884_v57 }
 0x941   :  { %4404 = vmatprep.mubr.msk.bf16.mxu1 %vm288_vm1, %v4884_v57  ;;  %4413 = vmatpush3.bf16.msra.mxu0 %v2245_v17 }
 0x942   :  { %4429 = vmatpush3.bf16.msra.mxu1 %v2337_v20  ;;  %4414 = vmatprep.subr.bf16.mxu0 %v2244_v24 }
 0x943   :  { %4430 = vmatprep.subr.bf16.mxu1 %v2336_v26 }
 0x945   :  { %4415 = vmatpush3.bf16.msra.mxu0 %v2244_v24 }
 0x946   :  { %4431 = vmatpush3.bf16.msra.mxu1 %v2336_v26 }
 0x947   :  { %4389 = vmatmul.mubr.msk.bf16.gmra.mxu0 %vm288_vm1, %v4921_v0  ;;  %4452 = vmatprep.subr.bf16.mxu1 %v4758_v55 }
 0x948   :  { %4405 = vmatmul.mubr.msk.bf16.gmra.mxu1 %vm288_vm1, %v4921_v0 }
 0x9f7   :  { %v4372_v31 = vpop.f32.mrf.mxu0  ;;  %v4378_v32 = vpop.f32.mrf.mxu1 }
 0x9f8   :  { %v1952_v36 = vadd.f32 %v4372_v31, %v4366_v27 }
 0x9f9   :  { %v1943_v33 = vpop.f32.mrf.mxu0  ;;  %v2005_v34 = vpop.f32.mrf.mxu1 }
 0x9fa   :  { %v1944_v35 = vadd.f32 %v1943_v33, %v1885_v28  ;;  %v2022_v44 = vadd.f32 %v4378_v32, %v1952_v36 }
 0x9fb   :  { %v4373_v37 = vpop.f32.mrf.mxu0  ;;  %v4379_v38 = vpop.f32.mrf.mxu1 }
 0x9fc   :  { %v1955_v39 = vadd.f32 %v4373_v37, %v4367_v29  ;;  %v2020_v6 = vadd.f32 %v2005_v34, %v1944_v35  ;;  %v2030_v61 = vadd.f32 %v2026_v48, %v2022_v44  ;;  %v5073_v44 = vld [vmem:[#allocation2 + $0x368] ss:$0 sm:$0xff] }
 0x9fd   :  { %v1946_v40 = vpop.f32.mrf.mxu0  ;;  %v2008_v41 = vpop.f32.mrf.mxu1 }
 0x9fe   :  { %v2023_v16 = vadd.f32 %v4379_v38, %v1955_v39  ;;  %v1947_v43 = vadd.f32 %v1946_v40, %v1888_v30  ;;  %v2028_v58 = vadd.f32 %v2024_v45, %v2020_v6 }
 0x9ff   :  { %v4386_v47 = vpop.f32.mrf.mxu0 }
 0xa00   :  { %v2021_v49 = vadd.f32 %v2008_v41, %v1947_v43  ;;  %v4968_v51 = vpop.f32.mrf.mxu1  ;;  %v2031_v52 = vadd.f32 %v2027_v42, %v2023_v16  ;;  %v4975_v1 = vadd.f32 %v4386_v47, %v4970_v54 }
 0xa01   :  { %v2101_v56 = vpop.f32.mrf.mxu0 }
 0xa02   :  { %v2029_v59 = vadd.f32 %v2025_v46, %v2021_v49  ;;  %v4972_v60 = vpop.f32.mrf.mxu1  ;;  %v2041_v4 = vpack.c.bf16 %v2031_v52, %v2030_v61 }
 0xa03   :  { %v4387_v62 = vpop.f32.mrf.mxu0 }
 0xa04   :  { %v2040_v63 = vpack.c.bf16 %v2029_v59, %v2028_v58  ;;  %v4978_v2 = vadd.f32 %v4387_v62, %v4970_v54  ;;  %v4980_v3 = vpop.f32.mrf.mxu1 }
 0xa05   :  { %v2104_v5 = vpop.f32.mrf.mxu0 }
 0xa06   :  { %v2430_v7 = vpack.c.bf16 %v4978_v2, %v4975_v1  ;;  %v4984_v8 = vpop.f32.mrf.mxu1  ;;  %4392 = vmatprep.mubr.msk.bf16.mxu0 %vm288_vm1, %v2040_v63  ;;  %4408 = vmatprep.mubr.msk.bf16.mxu1 %vm288_vm1, %v2040_v63  ;;  %v2105_v22 = vadd.f32 %v4970_v54, %v2104_v5  ;;  %v2202_v1 = vadd.f32 %v4968_v51, %v4998_v14 }
 0xa07   :  { %v4390_v9 = vpop.f32.mrf.mxu0  ;;  %4393 = vmatmul.mubr.msk.bf16.gmra.mxu0 %vm288_vm1, %v2041_v4  ;;  %4409 = vmatmul.mubr.msk.bf16.gmra.mxu1 %vm288_vm1, %v2041_v4 }
 0xa08   :  { %v4406_v10 = vpop.f32.mrf.mxu1  ;;  %4416 = vmatprep.mubr.msk.bf16.mxu0 %vm288_vm1, %v4839_v53  ;;  %4432 = vmatprep.mubr.msk.bf16.mxu1 %vm288_vm1, %v4839_v53  ;;  %v5001_v15 = vadd.f32 %v4390_v9, %v4970_v54 }
 0xa09   :  { %v4994_v11 = vpop.f32.mrf.mxu0  ;;  %v5007_v19 = vadd.f32 %v4406_v10, %v4998_v14 }
 0xa0a   :  { %v4996_v12 = vpop.f32.mrf.mxu1 }
 0xa0b   :  { %v4391_v13 = vpop.f32.mrf.mxu0 }
 0xa0c   :  { %v5004_v17 = vadd.f32 %v4391_v13, %v4970_v54  ;;  %v4407_v18 = vpop.f32.mrf.mxu1 }
 0xa0d   :  { %v5010_v20 = vadd.f32 %v4407_v18, %v4998_v14 }
 0xa0e   :  { %v3165_v53 = vpack.c.bf16 %v5004_v17, %v5001_v15  ;;  %v5253_v17 = vld [vmem:[#allocation2 + $0x208] sm:$0xff] }
 0xa0f   :  { %v3329_v21 = vpack.c.bf16 %v5010_v20, %v5007_v19  ;;  %4417 = vmatmul.mubr.msk.bf16.vlgmr.msra.gmra.mxu0 %vm288_vm1, %v4837_v50  ;;  %4433 = vmatmul.mubr.msk.bf16.vlgmr.msra.gmra.mxu1 %vm288_vm1, %v4837_v50  ;;  %v2102_v50 = vadd.f32 %v4970_v54, %v2101_v56 }
 0xa10   :  { %4420 = vmatprep.mubr.msk.bf16.mxu0 %vm288_vm1, %v4884_v57  ;;  %4436 = vmatprep.mubr.msk.bf16.mxu1 %vm288_vm1, %v4884_v57  ;;  %v5037_v57 = vpop.f32.mrf.mxu0 }
 0xa11   :  { %v2429_v23 = vpack.c.bf16 %v2105_v22, %v2102_v50 }
 0xa17   :  { %4421 = vmatmul.mubr.msk.bf16.gmra.mxu0 %vm288_vm1, %v4921_v0  ;;  %4437 = vmatmul.mubr.msk.bf16.gmra.mxu1 %vm288_vm1, %v4921_v0  ;;  %v5039_v0 = vpop.f32.mrf.mxu1 }
 0xa18   :  { %4424 = vmatprep.mubr.msk.bf16.mxu0 %vm288_vm1, %v2040_v63  ;;  %4440 = vmatprep.mubr.msk.bf16.mxu1 %vm288_vm1, %v2040_v63  ;;  %v3983_v63 = vld [vmem:[#allocation2 + $0x3b8] ss:$0 sm:$0xff] }
 0xa1f   :  { %4425 = vmatmul.mubr.msk.bf16.gmra.mxu0 %vm288_vm1, %v2041_v4  ;;  %4441 = vmatmul.mubr.msk.bf16.gmra.mxu1 %vm288_vm1, %v2041_v4 }
 0xa20   :  { %4448 = vmatprep.mubr.msk.bf16.mxu0 %vm288_vm1, %v2429_v23  ;;  %4456 = vmatprep.mubr.msk.bf16.mxu1 %vm4759_vm4, %v4758_v55 }
 0xac7   :  { %v4394_v24 = vpop.f32.mrf.mxu0  ;;  %v4410_v25 = vpop.f32.mrf.mxu1 }
 0xac8   :  { %v5042_v30 = vadd.f32 %v4394_v24, %v4970_v54  ;;  %v5045_v31 = vadd.f32 %v4410_v25, %v4998_v14 }
 0xac9   :  { %v2133_v26 = vpop.f32.mrf.mxu0  ;;  %v2225_v27 = vpop.f32.mrf.mxu1 }
 0xaca   :  { %v5054_v34 = vadd.f32 %v4970_v54, %v2133_v26  ;;  %v5057_v35 = vadd.f32 %v4998_v14, %v2225_v27 }
 0xacb   :  { %v4395_v28 = vpop.f32.mrf.mxu0  ;;  %v4411_v29 = vpop.f32.mrf.mxu1 }
 0xacc   :  { %v5048_v32 = vadd.f32 %v4395_v28, %v4970_v54  ;;  %v5051_v33 = vadd.f32 %v4411_v29, %v4998_v14 }
 0xacd   :  { %v2136_v36 = vpop.f32.mrf.mxu0  ;;  %v2228_v37 = vpop.f32.mrf.mxu1 }
 0xace   :  { %v5064_v40 = vadd.f32 %v4970_v54, %v2136_v36  ;;  %v5067_v41 = vadd.f32 %v4998_v14, %v2228_v37 }
 0xacf   :  { %v4418_v6 = vpop.f32.mrf.mxu0  ;;  %v4434_v16 = vpop.f32.mrf.mxu1 }
 0xad0   :  { %v2294_v49 = vadd.f32 %v4418_v6, %v5073_v44 }
 0xad1   :  { %v2285_v45 = vpop.f32.mrf.mxu0  ;;  %v5075_v46 = vpop.f32.mrf.mxu1 }
 0xad2   :  { %v2286_v59 = vadd.f32 %v5073_v44, %v2285_v45  ;;  %v2378_v38 = vadd.f32 %v3983_v63, %v5075_v46 }
 0xad3   :  { %v4419_v47 = vpop.f32.mrf.mxu0  ;;  %v4435_v48 = vpop.f32.mrf.mxu1 }
 0xad4   :  { %v2297_v52 = vadd.f32 %v4419_v47, %v5073_v44  ;;  %v2389_v29 = vadd.f32 %v4435_v48, %v3983_v63 }
 0xad5   :  { %v2288_v56 = vpop.f32.mrf.mxu0  ;;  %v2380_v58 = vpop.f32.mrf.mxu1 }
 0xad6   :  { %v2432_v61 = vpack.c.bf16 %v2297_v52, %v2294_v49  ;;  %v2289_v62 = vadd.f32 %v5073_v44, %v2288_v56  ;;  %v2386_v52 = vadd.f32 %v4434_v16, %v3983_v63 }
 0xad7   :  { %v4422_v4 = vpop.f32.mrf.mxu0  ;;  %v4438_v5 = vpop.f32.mrf.mxu1 }
 0xad8   :  { %v2431_v9 = vpack.c.bf16 %v2289_v62, %v2286_v59  ;;  %v5082_v10 = vadd.f32 %v4422_v4, %v5073_v44  ;;  %v5084_v13 = vadd.f32 %v4438_v5, %v3983_v63  ;;  %4618 = vmatprep.subr.msk.bf16.mxu0 %vm288_vm1, %v2432_v61  ;;  %v2443_v50 = vsel %vm288_vm1, %v2432_v61, 0 }
 0xad9   :  { %v2301_v18 = vpop.f32.mrf.mxu0  ;;  %v2393_v22 = vpop.f32.mrf.mxu1  ;;  %4445 = vmatpush3.bf16.xpose.msra.mxu0 %v2443_v50  ;;  %v2594_v5 = vpack.c.bf16 %v2389_v29, %v2386_v52  ;;  %v2194_v29 = vadd.f32 %v4998_v14, %v4972_v60  ;;  %v2381_v52 = vadd.f32 %v3983_v63, %v2380_v58 }
 0xada   :  { %v5089_v23 = vadd.f32 %v5073_v44, %v2301_v18  ;;  %v5091_v24 = vadd.f32 %v3983_v63, %v2393_v22  ;;  %4619 = vmatprep.subr.msk.bf16.mxu0 %vm288_vm1, %v2431_v9  ;;  %v2440_v50 = vsel %vm288_vm1, %v2431_v9, 0 }
 0xadb   :  { %v4423_v25 = vpop.f32.mrf.mxu0  ;;  %v4439_v26 = vpop.f32.mrf.mxu1  ;;  %v2605_v60 = vsel %vm288_vm1, %v2594_v5, 0 }
 0xadc   :  { %v5095_v27 = vadd.f32 %v4423_v25, %v5073_v44  ;;  %v5097_v28 = vadd.f32 %v4439_v26, %v3983_v63 }
 0xadd   :  { %v2304_v36 = vpop.f32.mrf.mxu0  ;;  %v2396_v37 = vpop.f32.mrf.mxu1 }
 0xade   :  { %v3166_v6 = vpack.c.bf16 %v5095_v27, %v5082_v10  ;;  %v3330_v45 = vpack.c.bf16 %v5097_v28, %v5084_v13  ;;  %v5104_v47 = vadd.f32 %v5073_v44, %v2304_v36  ;;  %v5106_v49 = vadd.f32 %v3983_v63, %v2396_v37 }
 0xadf   :  { %v4426_v56 = vpop.f32.mrf.mxu0  ;;  %v4442_v59 = vpop.f32.mrf.mxu1  ;;  %v2197_v37 = vadd.f32 %v4998_v14, %v4984_v8 }
 0xae0   :  { %v2839_v61 = vpack.c.bf16 %v5104_v47, %v5089_v23  ;;  %v3003_v48 = vpack.c.bf16 %v5106_v49, %v5091_v24  ;;  %v2326_v62 = vadd.f32 %v4426_v56, %v5073_v44  ;;  %v2418_v4 = vadd.f32 %v4442_v59, %v3983_v63  ;;  %v2954_v24 = vld [vmem:[#allocation2 + $0x100] sm:$0xff]  ;;  %v2955_v49 = vld [vmem:[#allocation2 + $0x108] sm:$0xff] }
 0xae1   :  { %v2317_v18 = vpop.f32.mrf.mxu0  ;;  %v2409_v22 = vpop.f32.mrf.mxu1  ;;  %4447 = vmatpush3.bf16.xpose.msra.mxu0 %v2440_v50  ;;  %v2591_v42 = vpack.c.bf16 %v2197_v37, %v2194_v29 }
 0xae2   :  { %v2318_v25 = vadd.f32 %v5073_v44, %v2317_v18  ;;  %v2410_v26 = vadd.f32 %v3983_v63, %v2409_v22  ;;  %4620 = vmatprep.subr.msk.bf16.mxu0 %vm288_vm1, %v2594_v5  ;;  %v2425_v5 = vld [vmem:[#allocation2 + $0xe0] sm:$0xff] }
 0xae3   :  { %v4427_v16 = vpop.f32.mrf.mxu0  ;;  %v4443_v36 = vpop.f32.mrf.mxu1 }
 0xae4   :  { %v2329_v39 = vadd.f32 %v4427_v16, %v5073_v44  ;;  %v2421_v56 = vadd.f32 %v4443_v36, %v3983_v63  ;;  %v2593_v36 = vpack.c.bf16 %v2381_v52, %v2378_v38 }
 0xae5   :  { %v2320_v59 = vpop.f32.mrf.mxu0  ;;  %v2412_v9 = vpop.f32.mrf.mxu1 }
 0xae6   :  { %v5121_v43 = vpack.c.bf16 %v2329_v39, %v2326_v62  ;;  %v5123_v18 = vpack.c.bf16 %v2421_v56, %v2418_v4  ;;  %v2321_v22 = vadd.f32 %v5073_v44, %v2320_v59  ;;  %v2413_v50 = vadd.f32 %v3983_v63, %v2412_v9  ;;  %v2427_v63 = vld [vmem:[#allocation2 + $0xf0] sm:$0xff] }
 0xae7   :  { %v2602_v39 = vsel %vm288_vm1, %v2593_v36, 0  ;;  %v2205_v44 = vadd.f32 %v4980_v3, %v4998_v14 }
 0xae8   :  { %v5127_v8 = vpack.c.bf16 %v2321_v22, %v2318_v25  ;;  %v5129_v16 = vpack.c.bf16 %v2413_v50, %v2410_v26  ;;  %4449 = vmatmul.mubr.msk.bf16.vlgmr.msra.gmra.mxu0 %vm288_vm1, %v2430_v7  ;;  %v2426_v7 = vld [vmem:[#allocation2 + $0xe8] sm:$0xff] }
 0xae9   :  { %4461 = vmatpush3.bf16.xpose.msra.mxu0 %v2605_v60  ;;  %4464 = vmatprep.mubr.msk.bf16.mxu0 %vm288_vm1, %v2591_v42  ;;  %v2592_v2 = vpack.c.bf16 %v2205_v44, %v2202_v1  ;;  %v2424_v42 = vld [vmem:[#allocation2 + $0xd8] sm:$0xff] }
 0xaea   :  { %4621 = vmatprep.subr.msk.bf16.mxu0 %vm288_vm1, %v2593_v36 }
 0xaf1   :  { %4463 = vmatpush3.bf16.xpose.msra.mxu0 %v2602_v39 }
 0xaf2   :  { %4484 = vmatprep.subr.bf16.mxu0 %v4758_v55 }
 0xaf8   :  { %4465 = vmatmul.mubr.msk.bf16.vlgmr.msra.gmra.mxu0 %vm288_vm1, %v2592_v2 }
 0xaf9   :  { %4488 = vmatprep.mubr.msk.bf16.mxu0 %vm4759_vm4, %v4758_v55 }
 0xba8   :  { %v4450_v38 = vpop.f32.mrf.mxu0 }
 0xba9   :  { %v2488_v46 = vadd.f32 %v4450_v38, %v2426_v7 }
 0xbaa   :  { %v2479_v58 = vpop.f32.mrf.mxu0 }
 0xbab   :  { %v2480_v62 = vadd.f32 %v2479_v58, %v2424_v42  ;;  %v2500_v3 = vsel %vm288_vm1, %v2488_v46, -inf }
 0xbac   :  { %2501 = vmax.xlane.f32.xlu0 %v2500_v3  ;;  %v4451_v4 = vpop.f32.mrf.mxu0 }
 0xbad   :  { %v2491_v25 = vadd.f32 %v4451_v4, %v2427_v63  ;;  %v2494_v56 = vsel %vm288_vm1, %v2480_v62, -inf }
 0xbae   :  { %v2482_v51 = vpop.f32.mrf.mxu0 }
 0xbaf   :  { %v2483_v26 = vadd.f32 %v2482_v51, %v2425_v5  ;;  %v2503_v37 = vsel %vm288_vm1, %v2491_v25, -inf }
 0xbb0   :  { %2504 = vmax.xlane.f32.xlu1 %v2503_v37  ;;  %2495 = vmax.xlane.f32.xlu0 %v2494_v56 }
 0xbb1   :  { %v2497_v29 = vsel %vm288_vm1, %v2483_v26, -inf }
 0xbb4   :  { %2498 = vmax.xlane.f32.xlu0 %v2497_v29 }
 0xbb8   :  { %v4466_v52 = vpop.f32.mrf.mxu0 }
 0xbb9   :  { %v2650_v59 = vadd.f32 %v4466_v52, %v2426_v7 }
 0xbba   :  { %v2641_v9 = vpop.f32.mrf.mxu0 }
 0xbbb   :  { %v2642_v22 = vadd.f32 %v2641_v9, %v2424_v42  ;;  %v2662_v50 = vsel %vm288_vm1, %v2650_v59, -inf }
 0xbbc   :  { %2663 = vmax.xlane.f32.xlu1 %v2662_v50  ;;  %v4467_v36 = vpop.f32.mrf.mxu0 }
 0xbbd   :  { %v2653_v60 = vadd.f32 %v4467_v36, %v2427_v63  ;;  %v2656_v1 = vsel %vm288_vm1, %v2642_v22, -inf }
 0xbbe   :  { %v2644_v39 = vpop.f32.mrf.mxu0 }
 0xbbf   :  { %v2645_v44 = vadd.f32 %v2644_v39, %v2425_v5  ;;  %v2665_v2 = vsel %vm288_vm1, %v2653_v60, -inf }
 0xbc0   :  { %2657 = vmax.xlane.f32.xlu1 %v2656_v1  ;;  %2666 = vmax.xlane.f32.xlu0 %v2665_v2 }
 0xbc1   :  { %v2659_v38 = vsel %vm288_vm1, %v2645_v44, -inf }
 0xbc4   :  { %2660 = vmax.xlane.f32.xlu0 %v2659_v38 }
 0xc35   :  { %v2502_v58 = vpop.xlane.xlu0 %2501 }
 0xc36   :  { %v2508_v7 = vsub.f32 %v2488_v46, %v2502_v58 }
 0xc38   :  { %v2514_v3 = vmul.f32 1.442695, %v2508_v7 }
 0xc39   :  { %v2505_v42 = vpop.xlane.xlu1 %2504  ;;  %v2496_v4 = vpop.xlane.xlu0 %2495 }
 0xc3a   :  { %4636 = vpow2.f32 %v2514_v3  ;;  %v2509_v51 = vsub.f32 %v2491_v25, %v2505_v42  ;;  %v2506_v37 = vsub.f32 %v2480_v62, %v2496_v4 }
 0xc3c   :  { %v2516_v63 = vmul.f32 1.442695, %v2509_v51  ;;  %v2510_v56 = vmul.f32 1.442695, %v2506_v37 }
 0xc3d   :  { %v2499_v5 = vpop.xlane.xlu0 %2498 }
 0xc3e   :  { %4638 = vpow2.f32 %v2516_v63  ;;  %v2507_v29 = vsub.f32 %v2483_v26, %v2499_v5 }
 0xc3f   :  { %4640 = vpow2.f32 %v2510_v56 }
 0xc40   :  { %v2512_v52 = vmul.f32 1.442695, %v2507_v29 }
 0xc42   :  { %4642 = vpow2.f32 %v2512_v52 }
 0xc45   :  { %v2664_v9 = vpop.xlane.xlu1 %2663 }
 0xc46   :  { %v2670_v50 = vsub.f32 %v2650_v59, %v2664_v9 }
 0xc47   :  { %v4637_v36 = vpop.eup %4636 }
 0xc48   :  { %v2676_v39 = vmul.f32 1.442695, %v2670_v50  ;;  %v2524_v46 = vsel %vm288_vm1, %v4637_v36, 0.0  ;;  %v2586_v50 = vld [vmem:[#allocation2 + $0x10] sm:$0xff] }
 0xc49   :  { %2525 = vadd.xlane.f32.xlu1 %v2524_v46  ;;  %v2658_v1 = vpop.xlane.xlu1 %2657  ;;  %v2667_v2 = vpop.xlane.xlu0 %2666 }
 0xc4a   :  { %4644 = vpow2.f32 %v2676_v39  ;;  %v2668_v25 = vsub.f32 %v2642_v22, %v2658_v1  ;;  %v2671_v62 = vsub.f32 %v2653_v60, %v2667_v2  ;;  %v2587_v39 = vld [vmem:[#allocation2 + $0x18] sm:$0xff] }
 0xc4b   :  { %v4639_v38 = vpop.eup %4638  ;;  %v2590_v46 = vpack.c.bf16 %v2587_v39, %v2586_v50  ;;  %v2428_v50 = vld [vmem:[#allocation2 + $0xf8] sm:$0xff] }
 0xc4c   :  { %v4641_v58 = vpop.eup %4640  ;;  %v2672_v7 = vmul.f32 1.442695, %v2668_v25  ;;  %v2678_v3 = vmul.f32 1.442695, %v2671_v62  ;;  %v2527_v26 = vsel %vm288_vm1, %v4639_v38, 0.0 }
 0xc4d   :  { %2528 = vadd.xlane.f32.xlu0 %v2527_v26  ;;  %v2518_v42 = vsel %vm288_vm1, %v4641_v58, 0.0  ;;  %v2661_v59 = vpop.xlane.xlu0 %2660  ;;  %4485 = vmatpush3.bf16.msra.mxu0 %v2590_v46 }
 0xc4e   :  { %4646 = vpow2.f32 %v2672_v7  ;;  %2519 = vadd.xlane.f32.xlu1 %v2518_v42  ;;  %v2669_v4 = vsub.f32 %v2645_v44, %v2661_v59  ;;  %4486 = vmatprep.subr.bf16.mxu0 %v4758_v55 }
 0xc4f   :  { %v4643_v51 = vpop.eup %4642  ;;  %4648 = vpow2.f32 %v2678_v3 }
 0xc50   :  { %v2674_v37 = vmul.f32 1.442695, %v2669_v4  ;;  %v2521_v63 = vsel %vm288_vm1, %v4643_v51, 0.0 }
 0xc51   :  { %2522 = vadd.xlane.f32.xlu0 %v2521_v63 }
 0xc52   :  { %4650 = vpow2.f32 %v2674_v37 }
 0xc57   :  { %v4645_v22 = vpop.eup %4644 }
 0xc58   :  { %v2686_v60 = vsel %vm288_vm1, %v4645_v22, 0.0 }
 0xc59   :  { %2687 = vadd.xlane.f32.xlu1 %v2686_v60 }
 0xc5b   :  { %v4647_v56 = vpop.eup %4646 }
 0xc5c   :  { %v4649_v5 = vpop.eup %4648  ;;  %v2680_v29 = vsel %vm288_vm1, %v4647_v56, 0.0 }
 0xc5d   :  { %2681 = vadd.xlane.f32.xlu1 %v2680_v29  ;;  %v2689_v52 = vsel %vm288_vm1, %v4649_v5, 0.0 }
 0xc5e   :  { %2690 = vadd.xlane.f32.xlu0 %v2689_v52 }
 0xc5f   :  { %v4651_v44 = vpop.eup %4650 }
 0xc60   :  { %v2683_v9 = vsel %vm288_vm1, %v4651_v44, 0.0 }
 0xc62   :  { %2684 = vadd.xlane.f32.xlu0 %v2683_v9 }
 0xcd2   :  { %v2526_v1 = vpop.xlane.xlu1 %2525 }
 0xcd3   :  { %4652 = vrcp.f32 %v2526_v1  ;;  %v2538_v1 = vpack.c.bf16 %v2428_v50, %v2428_v50 }
 0xcd6   :  { %v2529_v2 = vpop.xlane.xlu0 %2528 }
 0xcd7   :  { %v2520_v25 = vpop.xlane.xlu1 %2519  ;;  %4654 = vrcp.f32 %v2529_v2 }
 0xcd8   :  { %4656 = vrcp.f32 %v2520_v25 }
 0xcda   :  { %v2523_v62 = vpop.xlane.xlu0 %2522 }
 0xcdb   :  { %4658 = vrcp.f32 %v2523_v62 }
 0xce0   :  { %v4653_v7 = vpop.eup %4652 }
 0xce1   :  { %v2536_v42 = vmul.f32 %v4653_v7, %v4637_v36 }
 0xce2   :  { %v2688_v3 = vpop.xlane.xlu1 %2687 }
 0xce3   :  { %4660 = vrcp.f32 %v2688_v3 }
 0xce4   :  { %v4655_v26 = vpop.eup %4654 }
 0xce5   :  { %v2537_v59 = vmul.f32 %v4655_v26, %v4639_v38  ;;  %v4657_v4 = vpop.eup %4656 }
 0xce6   :  { %v2682_v37 = vpop.xlane.xlu1 %2681  ;;  %v2534_v52 = vmul.f32 %v4657_v4, %v4641_v58  ;;  %v2745_v4 = vld [vmem:[#allocation2 + $0x38] sm:$0xff] }
 0xce7   :  { %v2691_v63 = vpop.xlane.xlu0 %2690  ;;  %v2540_v60 = vpack.c.bf16 %v2537_v59, %v2536_v42  ;;  %v2584_v42 = vld [vmem:[#allocation2] sm:$0xff]  ;;  %v2744_v59 = vld [vmem:[#allocation2 + $0x30] sm:$0xff] }
 0xce8   :  { %v4659_v29 = vpop.eup %4658  ;;  %4662 = vrcp.f32 %v2691_v63 }
 0xce9   :  { %4453 = vmatpush3.bf16.msra.mxu1 %v2540_v60  ;;  %v2535_v9 = vmul.f32 %v4659_v29, %v4643_v51  ;;  %4664 = vrcp.f32 %v2682_v37  ;;  %v2743_v37 = vld [vmem:[#allocation2 + $0x28] sm:$0xff] }
 0xcea   :  { %4454 = vmatprep.subr.bf16.mxu1 %v4758_v55 }
 0xceb   :  { %v2685_v39 = vpop.xlane.xlu0 %2684  ;;  %v2539_v46 = vpack.c.bf16 %v2535_v9, %v2534_v52 }
 0xcec   :  { %4666 = vrcp.f32 %v2685_v39 }
 0xced   :  { %4455 = vmatpush3.bf16.msra.mxu1 %v2539_v46 }
 0xcee   :  { %4468 = vmatprep.subr.bf16.mxu1 %v4758_v55 }
 0xcf0   :  { %4457 = vmatmul.mubr.msk.bf16.vlgmr.msra.gmra.mxu1 %vm288_vm1, %v2538_v1  ;;  %v4661_v36 = vpop.eup %4660 }
 0xcf1   :  { %4472 = vmatprep.mubr.msk.bf16.mxu1 %vm4759_vm4, %v4758_v55  ;;  %v2698_v58 = vmul.f32 %v4661_v36, %v4645_v22  ;;  %v2585_v22 = vld [vmem:[#allocation2 + $0x8] sm:$0xff]  ;;  %v2844_v36 = vsel %vm288_vm1, %v2839_v61, 0 }
 0xcf5   :  { %v4663_v38 = vpop.eup %4662 }
 0xcf6   :  { %v2699_v51 = vmul.f32 %v4663_v38, %v4649_v5  ;;  %v4665_v2 = vpop.eup %4664  ;;  %v2589_v5 = vpack.c.bf16 %v2585_v22, %v2584_v42  ;;  %v2835_v22 = vld [vmem:[#allocation2 + $0x178] sm:$0xff] }
 0xcf7   :  { %v2696_v7 = vmul.f32 %v4665_v2, %v4647_v56  ;;  %v2748_v56 = vpack.c.bf16 %v2745_v4, %v2744_v59  ;;  %v2118_v2 = vadd.f32 %v4970_v54, %v4994_v11  ;;  %v5197_v11 = vld [vmem:[#allocation2 + $0x180] sm:$0xff] }
 0xcf8   :  { %v2701_v25 = vpack.c.bf16 %v2699_v51, %v2698_v58  ;;  %4487 = vmatpush3.bf16.msra.mxu0 %v2589_v5  ;;  %v2121_v58 = vadd.f32 %v4970_v54, %v5037_v57 }
 0xcf9   :  { %v4667_v62 = vpop.eup %4666  ;;  %4498 = vmatprep.subr.bf16.mxu0 %v4758_v55 }
 0xcfa   :  { %4469 = vmatpush3.bf16.msra.mxu1 %v2701_v25  ;;  %v2697_v3 = vmul.f32 %v4667_v62, %v4651_v44  ;;  %v2742_v44 = vld [vmem:[#allocation2 + $0x20] sm:$0xff]  ;;  %v2838_v25 = vpack.c.bf16 %v2121_v58, %v2118_v2 }
 0xcfb   :  { %4470 = vmatprep.subr.bf16.mxu1 %v4758_v55  ;;  %v2747_v63 = vpack.c.bf16 %v2743_v37, %v2742_v44 }
 0xcfc   :  { %v2700_v26 = vpack.c.bf16 %v2697_v3, %v2696_v7 }
 0xcfe   :  { %4471 = vmatpush3.bf16.msra.mxu1 %v2700_v26 }
 0xcff   :  { %4476 = vmatprep.subr.bf16.mxu1 %v4758_v55 }
 0xd01   :  { %4473 = vmatmul.mubr.msk.bf16.vlgmr.msra.gmra.mxu1 %vm288_vm1, %v2538_v1 }
 0xd02   :  { %4480 = vmatprep.mubr.msk.bf16.mxu1 %vm4759_vm4, %v4758_v55  ;;  %4477 = vmatpush3.bf16.msra.mxu1 %v2748_v56 }
 0xd03   :  { %4478 = vmatprep.subr.bf16.mxu1 %v4758_v55 }
 0xd06   :  { %4479 = vmatpush3.bf16.msra.mxu1 %v2747_v63 }
 0xd07   :  { %4492 = vmatprep.subr.bf16.mxu1 %v4758_v55 }
 0xdb0   :  { %v2578_v60 = vpop.f32.mrf.mxu1 }
 0xdb1   :  { %v2588_v29 = vpack.c.bf16 %v2578_v60, %v2578_v60 }
 0xdb2   :  { %v4458_v52 = vpop.f32.mrf.mxu1 }
 0xdb3   :  { %4489 = vmatmul.mubr.msk.bf16.vlgmr.msra.gmra.mxu0 %vm288_vm1, %v2588_v29 }
 0xdb4   :  { %v2581_v9 = vpop.f32.mrf.mxu1  ;;  %4500 = vmatprep.mubr.msk.bf16.mxu0 %vm4759_vm4, %v4758_v55 }
 0xdb6   :  { %v4459_v50 = vpop.f32.mrf.mxu1 }
 0xdc1   :  { %v2736_v39 = vpop.f32.mrf.mxu1 }
 0xdc2   :  { %v2746_v46 = vpack.c.bf16 %v2736_v39, %v2736_v39 }
 0xdc3   :  { %v4474_v1 = vpop.f32.mrf.mxu1 }
 0xdc4   :  { %4481 = vmatmul.mubr.msk.bf16.vlgmr.msra.gmra.mxu1 %vm288_vm1, %v2746_v46 }
 0xdc5   :  { %4493 = vmatpush3.bf16.xpose.msra.mxu1 %v2844_v36  ;;  %v2739_v38 = vpop.f32.mrf.mxu1  ;;  %4494 = vmatprep.mubr.msk.bf16.mxu1 %vm4759_vm4, %v4758_v55 }
 0xdc6   :  { %4504 = vmatprep.subr.bf16.mxu1 %v4758_v55 }
 0xdc7   :  { %v4475_v51 = vpop.f32.mrf.mxu1 }
 0xdcc   :  { %4495 = vmatmul.mubr.msk.bf16.vlgmr.msra.gmra.mxu1 %vm288_vm1, %v2838_v25 }
 0xdcd   :  { %4506 = vmatprep.mubr.msk.bf16.mxu1 %vm4759_vm4, %v4758_v55 }
 0xe73   :  { %v2829_v23 = vpop.f32.mrf.mxu0 }
 0xe75   :  { %v4490_v47 = vpop.f32.mrf.mxu0 }
 0xe77   :  { %v2832_v61 = vpop.f32.mrf.mxu0 }
 0xe78   :  { %v2837_v61 = vld [vmem:[#allocation2 + $0x188] sm:$0xff] }
 0xe79   :  { %v4491_v62 = vpop.f32.mrf.mxu0 }
 0xe84   :  { %v2786_v7 = vpop.f32.mrf.mxu1 }
 0xe85   :  { %v5195_v3 = vadd.f32 %v2829_v23, %v2786_v7  ;;  %v5204_v7 = vpack.c.bf16 %v2837_v61, %v2837_v61 }
 0xe86   :  { %v4482_v57 = vpop.f32.mrf.mxu1 }
 0xe87   :  { %v3008_v57 = vsel %vm288_vm1, %v3003_v48, 0  ;;  %v2957_v48 = vpack.c.bf16 %v2955_v49, %v2954_v24  ;;  %v3115_v49 = vld [vmem:[#allocation2 + $0x118] sm:$0xff] }
 0xe88   :  { %v2789_v26 = vpop.f32.mrf.mxu1 }
 0xe89   :  { %v2213_v26 = vadd.f32 %v4998_v14, %v5039_v0  ;;  %4505 = vmatpush3.bf16.msra.mxu1 %v2957_v48 }
 0xe8a   :  { %v4483_v42 = vpop.f32.mrf.mxu1  ;;  %4516 = vmatprep.subr.bf16.mxu1 %v4758_v55 }
 0xe8b   :  { %v2210_v42 = vadd.f32 %v4998_v14, %v4996_v12 }
 0xe8c   :  { %v2880_v5 = vpop.f32.mrf.mxu1 }
 0xe8d   :  { %v2881_v59 = vadd.f32 %v2880_v5, %v2835_v22  ;;  %v3002_v5 = vpack.c.bf16 %v2213_v26, %v2210_v42 }
 0xe8e   :  { %v4496_v54 = vpop.f32.mrf.mxu1 }
 0xe8f   :  { %v2887_v4 = vsel %vm791_vm6, %v2881_v59, -inf }
 0xe90   :  { %2888 = vmax.xlane.f32.xlu1 %v2887_v4  ;;  %v2883_v56 = vpop.f32.mrf.mxu1 }
 0xe91   :  { %v2884_v44 = vadd.f32 %v2883_v56, %v5197_v11 }
 0xe92   :  { %v4497_v37 = vpop.f32.mrf.mxu1 }
 0xe93   :  { %v2890_v63 = vsel %vm791_vm6, %v2884_v44, -inf }
 0xe94   :  { %2891 = vmax.xlane.f32.xlu0 %v2890_v63 }
 0xf19   :  { %v2889_v60 = vpop.xlane.xlu1 %2888 }
 0xf1a   :  { %v2893_v29 = vsub.f32 %v2881_v59, %v2889_v60 }
 0xf1c   :  { %v2895_v52 = vmul.f32 1.442695, %v2893_v29 }
 0xf1d   :  { %v2892_v9 = vpop.xlane.xlu0 %2891 }
 0xf1e   :  { %4668 = vpow2.f32 %v2895_v52  ;;  %v2894_v50 = vsub.f32 %v2884_v44, %v2892_v9 }
 0xf20   :  { %v2897_v39 = vmul.f32 1.442695, %v2894_v50 }
 0xf22   :  { %4670 = vpow2.f32 %v2897_v39 }
 0xf2b   :  { %v4669_v46 = vpop.eup %4668 }
 0xf2c   :  { %v2899_v1 = vsel %vm791_vm6, %v4669_v46, 0.0 }
 0xf2d   :  { %2900 = vadd.xlane.f32.xlu1 %v2899_v1 }
 0xf2f   :  { %v4671_v36 = vpop.eup %4670 }
 0xf30   :  { %v2902_v38 = vsel %vm791_vm6, %v4671_v36, 0.0 }
 0xf31   :  { %2903 = vadd.xlane.f32.xlu0 %v2902_v38 }
 0xfb6   :  { %v2901_v58 = vpop.xlane.xlu1 %2900 }
 0xfb7   :  { %4672 = vrcp.f32 %v2901_v58 }
 0xfba   :  { %v2904_v51 = vpop.xlane.xlu0 %2903 }
 0xfbb   :  { %4674 = vrcp.f32 %v2904_v51 }
 0xfc4   :  { %v4673_v2 = vpop.eup %4672 }
 0xfc5   :  { %v2907_v23 = vmul.f32 %v4673_v2, %v4669_v46 }
 0xfc8   :  { %v4675_v25 = vpop.eup %4674 }
 0xfc9   :  { %v2908_v47 = vmul.f32 %v4675_v25, %v4671_v36 }
 0xfcb   :  { %v2910_v62 = vpack.c.bf16 %v2908_v47, %v2907_v23 }
 0xfcd   :  { %4499 = vmatpush3.bf16.msra.mxu0 %v2910_v62 }
 0xfce   :  { %4510 = vmatprep.subr.bf16.mxu0 %v4758_v55 }
 0xfd0   :  { %4501 = vmatmul.mubr.msk.bf16.vlgmr.msra.gmra.mxu0 %vm791_vm6, %v5204_v7 }
 0xfd1   :  { %4511 = vmatpush3.bf16.xpose.msra.mxu0 %v3008_v57  ;;  %4512 = vmatprep.mubr.msk.bf16.mxu0 %vm4759_vm4, %v4758_v55 }
 0xfd2   :  { %4522 = vmatprep.subr.bf16.mxu0 %v4758_v55 }
 0xfd8   :  { %4513 = vmatmul.mubr.msk.bf16.vlgmr.msra.gmra.mxu0 %vm288_vm1, %v3002_v5 }
 0xfd9   :  { %4524 = vmatprep.mubr.msk.bf16.mxu0 %vm4759_vm4, %v4758_v55 }
0x1090   :  { %v2948_v59 = vpop.f32.mrf.mxu0 }
0x1091   :  { %v2956_v54 = vpack.c.bf16 %v2948_v59, %v2948_v59 }
0x1092   :  { %v4502_v0 = vpop.f32.mrf.mxu0 }
0x1093   :  { %4507 = vmatmul.mubr.msk.bf16.vlgmr.msra.gmra.mxu1 %vm791_vm6, %v2956_v54 }
0x1094   :  { %v2951_v4 = vpop.f32.mrf.mxu0  ;;  %4518 = vmatprep.mubr.msk.bf16.mxu1 %vm4759_vm4, %v4758_v55 }
0x1095   :  { %v5256_v4 = vld [vmem:[#allocation2 + $0x210] sm:$0xff] }
0x1096   :  { %v4503_v12 = vpop.f32.mrf.mxu0 }
0x1098   :  { %v3044_v14 = vpop.f32.mrf.mxu0 }
0x1099   :  { %v3045_v56 = vadd.f32 %v3044_v14, %v2835_v22 }
0x109a   :  { %v4514_v44 = vpop.f32.mrf.mxu0 }
0x109b   :  { %v3051_v37 = vsel %vm791_vm6, %v3045_v56, -inf }
0x109c   :  { %3052 = vmax.xlane.f32.xlu1 %v3051_v37  ;;  %v3047_v63 = vpop.f32.mrf.mxu0 }
0x109d   :  { %v3048_v60 = vadd.f32 %v3047_v63, %v5197_v11 }
0x109e   :  { %v4515_v29 = vpop.f32.mrf.mxu0 }
0x109f   :  { %v3054_v52 = vsel %vm791_vm6, %v3048_v60, -inf }
0x10a0   :  { %3055 = vmax.xlane.f32.xlu0 %v3054_v52 }
0x1125   :  { %v3053_v9 = vpop.xlane.xlu1 %3052 }
0x1126   :  { %v3057_v50 = vsub.f32 %v3045_v56, %v3053_v9 }
0x1128   :  { %v3059_v39 = vmul.f32 1.442695, %v3057_v50 }
0x1129   :  { %v3056_v46 = vpop.xlane.xlu0 %3055 }
0x112a   :  { %4676 = vpow2.f32 %v3059_v39  ;;  %v3058_v1 = vsub.f32 %v3048_v60, %v3056_v46 }
0x112c   :  { %v3061_v36 = vmul.f32 1.442695, %v3058_v1 }
0x112e   :  { %4678 = vpow2.f32 %v3061_v36 }
0x1137   :  { %v4677_v22 = vpop.eup %4676 }
0x1138   :  { %v3063_v38 = vsel %vm791_vm6, %v4677_v22, 0.0 }
0x1139   :  { %3064 = vadd.xlane.f32.xlu1 %v3063_v38 }
0x113b   :  { %v4679_v58 = vpop.eup %4678 }
0x113c   :  { %v3066_v51 = vsel %vm791_vm6, %v4679_v58, 0.0 }
0x113d   :  { %3067 = vadd.xlane.f32.xlu0 %v3066_v51 }
0x1153   :  { %v2995_v11 = vpop.f32.mrf.mxu1 }
0x1154   :  { %v3001_v2 = vadd.f32 %v2995_v11, %v5195_v3  ;;  %v3171_v3 = vsel %vm288_vm1, %v3166_v6, 0 }
0x1155   :  { %v4508_v25 = vpop.f32.mrf.mxu1 }
0x1157   :  { %v2998_v23 = vpop.f32.mrf.mxu1 }
0x1159   :  { %v4509_v47 = vpop.f32.mrf.mxu1 }
0x11c2   :  { %v3065_v61 = vpop.xlane.xlu1 %3064 }
0x11c3   :  { %4680 = vrcp.f32 %v3065_v61 }
0x11c6   :  { %v3068_v62 = vpop.xlane.xlu0 %3067 }
0x11c7   :  { %4682 = vrcp.f32 %v3068_v62 }
0x11d0   :  { %v4681_v57 = vpop.eup %4680 }
0x11d1   :  { %v3071_v42 = vmul.f32 %v4681_v57, %v4677_v22 }
0x11d4   :  { %v4683_v26 = vpop.eup %4682 }
0x11d5   :  { %v3072_v5 = vmul.f32 %v4683_v26, %v4679_v58  ;;  %v3164_v26 = vld [vmem:[#allocation2 + $0x218] sm:$0xff] }
0x11d7   :  { %v3073_v24 = vpack.c.bf16 %v3072_v5, %v3071_v42  ;;  %v3236_v5 = vpack.c.bf16 %v3164_v26, %v3164_v26  ;;  %v3492_v26 = vld [vmem:[#allocation2 + $0x310] sm:$0xff] }
0x11d9   :  { %4517 = vmatpush3.bf16.msra.mxu1 %v3073_v24  ;;  %v3281_v24 = vld [vmem:[#allocation2 + $0x190] sm:$0xff] }
0x11da   :  { %4528 = vmatprep.subr.bf16.mxu1 %v4758_v55 }
0x11dc   :  { %4519 = vmatmul.mubr.msk.bf16.vlgmr.msra.gmra.mxu1 %vm791_vm6, %v5204_v7  ;;  %v3114_v7 = vld [vmem:[#allocation2 + $0x110] sm:$0xff] }
0x11dd   :  { %4529 = vmatpush3.bf16.xpose.msra.mxu1 %v3171_v3  ;;  %4530 = vmatprep.mubr.msk.bf16.mxu1 %vm4759_vm4, %v4758_v55  ;;  %v3117_v48 = vpack.c.bf16 %v3115_v49, %v3114_v7  ;;  %v3282_v3 = vld [vmem:[#allocation2 + $0x198] sm:$0xff] }
0x11de   :  { %4540 = vmatprep.subr.bf16.mxu1 %v4758_v55  ;;  %v3284_v7 = vpack.c.bf16 %v3282_v3, %v3281_v24  ;;  %v3490_v24 = vld [vmem:[#allocation2 + $0x300] sm:$0xff] }
0x11df   :  { %4523 = vmatpush3.bf16.msra.mxu0 %v3117_v48 }
0x11e0   :  { %4534 = vmatprep.subr.bf16.mxu0 %v4758_v55 }
0x11e4   :  { %4531 = vmatmul.mubr.msk.bf16.vlgmr.msra.gmra.mxu1 %vm288_vm1, %v3165_v53 }
0x11e5   :  { %4542 = vmatprep.mubr.msk.bf16.mxu1 %vm4759_vm4, %v4758_v55  ;;  %4541 = vmatpush3.bf16.msra.mxu1 %v3284_v7 }
0x11e6   :  { %4552 = vmatprep.subr.bf16.mxu1 %v4758_v55 }
0x129c   :  { %v3108_v10 = vpop.f32.mrf.mxu1 }
0x129d   :  { %v3116_v27 = vpack.c.bf16 %v3108_v10, %v3108_v10 }
0x129e   :  { %v4520_v6 = vpop.f32.mrf.mxu1 }
0x129f   :  { %4525 = vmatmul.mubr.msk.bf16.vlgmr.msra.gmra.mxu0 %vm791_vm6, %v3116_v27 }
0x12a0   :  { %v3111_v59 = vpop.f32.mrf.mxu1  ;;  %4536 = vmatprep.mubr.msk.bf16.mxu0 %vm4759_vm4, %v4758_v55 }
0x12a2   :  { %v4521_v15 = vpop.f32.mrf.mxu1 }
0x12a4   :  { %v3207_v53 = vpop.f32.mrf.mxu1 }
0x12a5   :  { %v3208_v54 = vadd.f32 %v3207_v53, %v5253_v17 }
0x12a6   :  { %v4532_v0 = vpop.f32.mrf.mxu1 }
0x12a7   :  { %v3214_v12 = vsel %vm791_vm6, %v3208_v54, -inf }
0x12a8   :  { %3215 = vmax.xlane.f32.xlu1 %v3214_v12  ;;  %v3210_v14 = vpop.f32.mrf.mxu1 }
0x12a9   :  { %v3211_v56 = vadd.f32 %v3210_v14, %v5256_v4 }
0x12aa   :  { %v4533_v44 = vpop.f32.mrf.mxu1 }
0x12ab   :  { %v3217_v37 = vsel %vm791_vm6, %v3211_v56, -inf }
0x12ac   :  { %3218 = vmax.xlane.f32.xlu0 %v3217_v37 }
0x1331   :  { %v3216_v63 = vpop.xlane.xlu1 %3215 }
0x1332   :  { %v3220_v60 = vsub.f32 %v3208_v54, %v3216_v63 }
0x1334   :  { %v3222_v29 = vmul.f32 1.442695, %v3220_v60 }
0x1335   :  { %v3219_v52 = vpop.xlane.xlu0 %3218 }
0x1336   :  { %4684 = vpow2.f32 %v3222_v29  ;;  %v3221_v9 = vsub.f32 %v3211_v56, %v3219_v52 }
0x1338   :  { %v3224_v50 = vmul.f32 1.442695, %v3221_v9 }
0x133a   :  { %4686 = vpow2.f32 %v3224_v50 }
0x1343   :  { %v4685_v39 = vpop.eup %4684 }
0x1344   :  { %v3226_v46 = vsel %vm791_vm6, %v4685_v39, 0.0 }
0x1345   :  { %3227 = vadd.xlane.f32.xlu1 %v3226_v46 }
0x1347   :  { %v4687_v1 = vpop.eup %4686 }
0x1348   :  { %v3229_v36 = vsel %vm791_vm6, %v4687_v1, 0.0 }
0x1349   :  { %3230 = vadd.xlane.f32.xlu0 %v3229_v36 }
0x135f   :  { %v3155_v22 = vpop.f32.mrf.mxu0 }
0x1360   :  { %v3161_v38 = vadd.f32 %v3155_v22, %v3001_v2  ;;  %v3335_v2 = vsel %vm288_vm1, %v3330_v45, 0 }
0x1361   :  { %v4526_v58 = vpop.f32.mrf.mxu0 }
0x1363   :  { %v3158_v51 = vpop.f32.mrf.mxu0 }
0x1364   :  { %v5370_v51 = vpack.c.bf16 %v5064_v40, %v5054_v34  ;;  %v3714_v34 = vsel %vm288_vm1, %v5123_v18, 0  ;;  %v5372_v40 = vpack.c.bf16 %v5067_v41, %v5057_v35 }
0x1365   :  { %v4527_v11 = vpop.f32.mrf.mxu0 }
0x1366   :  { %v3505_v11 = vsel %vm288_vm1, %v5127_v8, 0 }
0x13ce   :  { %v3228_v25 = vpop.xlane.xlu1 %3227 }
0x13cf   :  { %4688 = vrcp.f32 %v3228_v25  ;;  %v5371_v25 = vpack.c.bf16 %v5048_v32, %v5042_v30  ;;  %v5373_v30 = vpack.c.bf16 %v5051_v33, %v5045_v31  ;;  %v3441_v32 = vld [vmem:[#allocation2 + $0x1a0] sm:$0xff]  ;;  %v3489_v33 = vld [vmem:[#allocation2 + $0x2f8] sm:$0xff] }
0x13d2   :  { %v3231_v23 = vpop.xlane.xlu0 %3230 }
0x13d3   :  { %4690 = vrcp.f32 %v3231_v23 }
0x13dc   :  { %v4689_v47 = vpop.eup %4688 }
0x13dd   :  { %v3234_v62 = vmul.f32 %v4689_v47, %v4685_v39 }
0x13e0   :  { %v4691_v61 = vpop.eup %4690 }
0x13e1   :  { %v3235_v57 = vmul.f32 %v4691_v61, %v4687_v1  ;;  %v3491_v61 = vld [vmem:[#allocation2 + $0x308] sm:$0xff] }
0x13e3   :  { %v3237_v42 = vpack.c.bf16 %v3235_v57, %v3234_v62 }
0x13e5   :  { %4535 = vmatpush3.bf16.msra.mxu0 %v3237_v42 }
0x13e6   :  { %4546 = vmatprep.subr.bf16.mxu0 %v4758_v55 }
0x13e8   :  { %4537 = vmatmul.mubr.msk.bf16.vlgmr.msra.gmra.mxu0 %vm791_vm6, %v3236_v5 }
0x13e9   :  { %4547 = vmatpush3.bf16.xpose.msra.mxu0 %v3335_v2  ;;  %4548 = vmatprep.mubr.msk.bf16.mxu0 %vm4759_vm4, %v4758_v55 }
0x13ea   :  { %4558 = vmatprep.subr.bf16.mxu0 %v4758_v55 }
0x13f0   :  { %4549 = vmatmul.mubr.msk.bf16.vlgmr.msra.gmra.mxu0 %vm288_vm1, %v3329_v21 }
0x13f1   :  { %4560 = vmatprep.mubr.msk.bf16.mxu0 %vm4759_vm4, %v4758_v55 }
0x14a8   :  { %v3275_v13 = vpop.f32.mrf.mxu0 }
0x14a9   :  { %v3283_v28 = vpack.c.bf16 %v3275_v13, %v3275_v13 }
0x14aa   :  { %v4538_v45 = vpop.f32.mrf.mxu0 }
0x14ab   :  { %4543 = vmatmul.mubr.msk.bf16.vlgmr.msra.gmra.mxu1 %vm791_vm6, %v3283_v28 }
0x14ac   :  { %v3278_v49 = vpop.f32.mrf.mxu0  ;;  %4554 = vmatprep.mubr.msk.bf16.mxu1 %vm4759_vm4, %v4758_v55 }
0x14ae   :  { %v4539_v19 = vpop.f32.mrf.mxu0 }
0x14b0   :  { %v3371_v20 = vpop.f32.mrf.mxu0 }
0x14b1   :  { %v3372_v21 = vadd.f32 %v3371_v20, %v5253_v17 }
0x14b2   :  { %v4550_v48 = vpop.f32.mrf.mxu0 }
0x14b3   :  { %v3378_v10 = vsel %vm791_vm6, %v3372_v21, -inf }
0x14b4   :  { %3379 = vmax.xlane.f32.xlu1 %v3378_v10  ;;  %v3374_v27 = vpop.f32.mrf.mxu0 }
0x14b5   :  { %v3375_v6 = vadd.f32 %v3374_v27, %v5256_v4 }
0x14b6   :  { %v4551_v59 = vpop.f32.mrf.mxu0 }
0x14b7   :  { %v3381_v15 = vsel %vm791_vm6, %v3375_v6, -inf }
0x14b8   :  { %3382 = vmax.xlane.f32.xlu0 %v3381_v15 }
0x153d   :  { %v3380_v53 = vpop.xlane.xlu1 %3379 }
0x153e   :  { %v3384_v54 = vsub.f32 %v3372_v21, %v3380_v53 }
0x1540   :  { %v3386_v0 = vmul.f32 1.442695, %v3384_v54 }
0x1541   :  { %v3383_v12 = vpop.xlane.xlu0 %3382 }
0x1542   :  { %4692 = vpow2.f32 %v3386_v0  ;;  %v3385_v14 = vsub.f32 %v3375_v6, %v3383_v12 }
0x1544   :  { %v3388_v56 = vmul.f32 1.442695, %v3385_v14 }
0x1546   :  { %4694 = vpow2.f32 %v3388_v56 }
0x154f   :  { %v4693_v17 = vpop.eup %4692 }
0x1550   :  { %v3390_v44 = vsel %vm791_vm6, %v4693_v17, 0.0 }
0x1551   :  { %3391 = vadd.xlane.f32.xlu1 %v3390_v44 }
0x1553   :  { %v4695_v37 = vpop.eup %4694 }
0x1554   :  { %v3393_v63 = vsel %vm791_vm6, %v4695_v37, 0.0 }
0x1555   :  { %3394 = vadd.xlane.f32.xlu0 %v3393_v63 }
0x156b   :  { %v3322_v4 = vpop.f32.mrf.mxu1 }
0x156c   :  { %v5288_v60 = vadd.f32 %v3322_v4, %v3161_v38  ;;  %v3508_v38 = vsel %vm288_vm1, %v5121_v43, 0 }
0x156d   :  { %v4544_v29 = vpop.f32.mrf.mxu1 }
0x156f   :  { %v3325_v52 = vpop.f32.mrf.mxu1 }
0x1571   :  { %v4545_v9 = vpop.f32.mrf.mxu1 }
0x15da   :  { %v3392_v50 = vpop.xlane.xlu1 %3391 }
0x15db   :  { %4696 = vrcp.f32 %v3392_v50 }
0x15de   :  { %v3395_v39 = vpop.xlane.xlu0 %3394 }
0x15df   :  { %4698 = vrcp.f32 %v3395_v39 }
0x15e8   :  { %v4697_v46 = vpop.eup %4696 }
0x15e9   :  { %v3398_v36 = vmul.f32 %v4697_v46, %v4693_v17 }
0x15ec   :  { %v4699_v1 = vpop.eup %4698 }
0x15ed   :  { %v3399_v22 = vmul.f32 %v4699_v1, %v4695_v37 }
0x15ef   :  { %v3400_v58 = vpack.c.bf16 %v3399_v22, %v3398_v36 }
0x15f1   :  { %4553 = vmatpush3.bf16.msra.mxu1 %v3400_v58 }
0x15f2   :  { %4622 = vmatprep.subr.msk.bf16.mxu1 %vm288_vm1, %v5121_v43  ;;  %v3711_v43 = vsel %vm288_vm1, %v5129_v16, 0 }
0x15f4   :  { %4555 = vmatmul.mubr.msk.bf16.vlgmr.msra.gmra.mxu1 %vm791_vm6, %v3236_v5 }
0x15f5   :  { %4565 = vmatpush3.bf16.xpose.msra.mxu1 %v3508_v38  ;;  %4568 = vmatprep.mubr.msk.bf16.mxu1 %vm288_vm1, %v5370_v51 }
0x15f6   :  { %4623 = vmatprep.subr.msk.bf16.mxu1 %vm288_vm1, %v5127_v8 }
0x15fd   :  { %4567 = vmatpush3.bf16.xpose.msra.mxu1 %v3505_v11 }
0x15fe   :  { %4624 = vmatprep.subr.msk.bf16.mxu1 %vm288_vm1, %v5123_v18  ;;  %v3442_v18 = vld [vmem:[#allocation2 + $0x1a8] sm:$0xff] }
0x15ff   :  { %v3444_v8 = vpack.c.bf16 %v3442_v18, %v3441_v32 }
0x1601   :  { %4559 = vmatpush3.bf16.msra.mxu0 %v3444_v8 }
0x1602   :  { %4572 = vmatprep.subr.bf16.mxu0 %v4758_v55 }
0x1604   :  { %4569 = vmatmul.mubr.msk.bf16.vlgmr.msra.gmra.mxu1 %vm288_vm1, %v5371_v25 }
0x1605   :  { %4589 = vmatpush3.bf16.xpose.msra.mxu1 %v3714_v34  ;;  %4592 = vmatprep.mubr.msk.bf16.mxu1 %vm288_vm1, %v5372_v40 }
0x1606   :  { %4625 = vmatprep.subr.msk.bf16.mxu1 %vm288_vm1, %v5129_v16 }
0x160d   :  { %4591 = vmatpush3.bf16.xpose.msra.mxu1 %v3711_v43 }
0x1614   :  { %4593 = vmatmul.mubr.msk.bf16.vlgmr.msra.gmra.mxu1 %vm288_vm1, %v5373_v30 }
0x16b4   :  { %v3435_v35 = vpop.f32.mrf.mxu1 }
0x16b5   :  { %v3443_v41 = vpack.c.bf16 %v3435_v35, %v3435_v35 }
0x16b6   :  { %v4556_v23 = vpop.f32.mrf.mxu1 }
0x16b7   :  { %4561 = vmatmul.mubr.msk.bf16.vlgmr.msra.gmra.mxu0 %vm791_vm6, %v3443_v41 }
0x16b8   :  { %v3438_v47 = vpop.f32.mrf.mxu1  ;;  %4576 = vmatprep.mubr.msk.bf16.mxu0 %vm4759_vm4, %v4758_v55 }
0x16ba   :  { %v4557_v16 = vpop.f32.mrf.mxu1 }
0x16c4   :  { %v4570_v31 = vpop.f32.mrf.mxu1 }
0x16c5   :  { %v3553_v62 = vadd.f32 %v4570_v31, %v3491_v61 }
0x16c6   :  { %v3544_v57 = vpop.f32.mrf.mxu1 }
0x16c7   :  { %v3545_v42 = vadd.f32 %v3544_v57, %v3489_v33  ;;  %v3565_v5 = vsel %vm288_vm1, %v3553_v62, -inf }
0x16c8   :  { %3566 = vmax.xlane.f32.xlu1 %v3565_v5  ;;  %v4571_v2 = vpop.f32.mrf.mxu1 }
0x16c9   :  { %v3556_v3 = vadd.f32 %v4571_v2, %v3492_v26  ;;  %v3559_v45 = vsel %vm288_vm1, %v3545_v42, -inf }
0x16ca   :  { %v3547_v7 = vpop.f32.mrf.mxu1 }
0x16cb   :  { %v3548_v13 = vadd.f32 %v3547_v7, %v3490_v24  ;;  %v3568_v28 = vsel %vm288_vm1, %v3556_v3, -inf }
0x16cc   :  { %3569 = vmax.xlane.f32.xlu0 %v3568_v28  ;;  %3560 = vmax.xlane.f32.xlu1 %v3559_v45 }
0x16cd   :  { %v3562_v49 = vsel %vm288_vm1, %v3548_v13, -inf }
0x16d0   :  { %3563 = vmax.xlane.f32.xlu0 %v3562_v49  ;;  %v3493_v49 = vld [vmem:[#allocation2 + $0x318] sm:$0xff] }
0x16d4   :  { %v4594_v12 = vpop.f32.mrf.mxu1 }
0x16d5   :  { %v3759_v4 = vadd.f32 %v4594_v12, %v3491_v61  ;;  %v3649_v12 = vld [vmem:[#allocation2 + $0x220] sm:$0xff] }
0x16d6   :  { %v3750_v17 = vpop.f32.mrf.mxu1 }
0x16d7   :  { %v3751_v46 = vadd.f32 %v3750_v17, %v3489_v33  ;;  %v3771_v36 = vsel %vm288_vm1, %v3759_v4, -inf }
0x16d8   :  { %v4595_v29 = vpop.f32.mrf.mxu1 }
0x16d9   :  { %v3762_v50 = vadd.f32 %v4595_v29, %v3492_v26  ;;  %v3765_v38 = vsel %vm288_vm1, %v3751_v46, -inf }
0x16da   :  { %v3753_v1 = vpop.f32.mrf.mxu1 }
0x16db   :  { %v3754_v22 = vadd.f32 %v3753_v1, %v3490_v24  ;;  %v3774_v58 = vsel %vm288_vm1, %v3762_v50, -inf }
0x16dd   :  { %v3768_v51 = vsel %vm288_vm1, %v3754_v22, -inf }
0x1751   :  { %v3567_v19 = vpop.xlane.xlu1 %3566 }
0x1752   :  { %v3573_v20 = vsub.f32 %v3553_v62, %v3567_v19 }
0x1754   :  { %v3579_v21 = vmul.f32 1.442695, %v3573_v20  ;;  %v3603_v20 = vpack.c.bf16 %v3493_v49, %v3493_v49 }
0x1755   :  { %v3570_v48 = vpop.xlane.xlu0 %3569  ;;  %v3561_v10 = vpop.xlane.xlu1 %3560 }
0x1756   :  { %4700 = vpow2.f32 %v3579_v21  ;;  %v3574_v27 = vsub.f32 %v3556_v3, %v3570_v48  ;;  %v3571_v6 = vsub.f32 %v3545_v42, %v3561_v10 }
0x1758   :  { %v3581_v59 = vmul.f32 1.442695, %v3574_v27  ;;  %v3575_v15 = vmul.f32 1.442695, %v3571_v6 }
0x1759   :  { %v3564_v53 = vpop.xlane.xlu0 %3563 }
0x175a   :  { %4702 = vpow2.f32 %v3581_v59  ;;  %v3572_v54 = vsub.f32 %v3548_v13, %v3564_v53 }
0x175b   :  { %4704 = vpow2.f32 %v3575_v15 }
0x175c   :  { %v3577_v0 = vmul.f32 1.442695, %v3572_v54  ;;  %v3651_v54 = vld [vmem:[#allocation2 + $0x230] sm:$0xff] }
0x175e   :  { %4706 = vpow2.f32 %v3577_v0  ;;  %v3652_v0 = vld [vmem:[#allocation2 + $0x238] sm:$0xff] }
0x1763   :  { %v4701_v14 = vpop.eup %4700 }
0x1764   :  { %v3589_v56 = vsel %vm288_vm1, %v4701_v14, 0.0 }
0x1765   :  { %3590 = vadd.xlane.f32.xlu1 %v3589_v56  ;;  %v3650_v56 = vld [vmem:[#allocation2 + $0x228] sm:$0xff] }
0x1766   :  { %v3654_v17 = vpack.c.bf16 %v3650_v56, %v3649_v12 }
0x1767   :  { %v4703_v44 = vpop.eup %4702 }
0x1768   :  { %v4705_v37 = vpop.eup %4704  ;;  %v3592_v63 = vsel %vm288_vm1, %v4703_v44, 0.0 }
0x1769   :  { %3593 = vadd.xlane.f32.xlu0 %v3592_v63  ;;  %v3583_v52 = vsel %vm288_vm1, %v4705_v37, 0.0 }
0x176a   :  { %3584 = vadd.xlane.f32.xlu1 %v3583_v52 }
0x176b   :  { %v4707_v9 = vpop.eup %4706 }
0x176c   :  { %v3586_v39 = vsel %vm288_vm1, %v4707_v9, 0.0 }
0x176d   :  { %3587 = vadd.xlane.f32.xlu0 %v3586_v39 }
0x176e   :  { %3772 = vmax.xlane.f32.xlu1 %v3771_v36 }
0x1771   :  { %3775 = vmax.xlane.f32.xlu0 %v3774_v58 }
0x1772   :  { %3766 = vmax.xlane.f32.xlu1 %v3765_v38 }
0x1775   :  { %3769 = vmax.xlane.f32.xlu0 %v3768_v51 }
0x1777   :  { %v3482_v11 = vpop.f32.mrf.mxu0 }
0x1778   :  { %v5340_v25 = vadd.f32 %v3482_v11, %v5288_v60 }
0x1779   :  { %v4562_v34 = vpop.f32.mrf.mxu0 }
0x177b   :  { %v3485_v40 = vpop.f32.mrf.mxu0 }
0x177d   :  { %v4563_v43 = vpop.f32.mrf.mxu0 }
0x177e   :  { %v3853_v43 = vld [vmem:[#allocation2 + $0x250] sm:$0xff] }
0x17ee   :  { %v3591_v30 = vpop.xlane.xlu1 %3590 }
0x17ef   :  { %4708 = vrcp.f32 %v3591_v30  ;;  %v3854_v30 = vld [vmem:[#allocation2 + $0x258] sm:$0xff] }
0x17f2   :  { %v3594_v32 = vpop.xlane.xlu0 %3593 }
0x17f3   :  { %4710 = vrcp.f32 %v3594_v32  ;;  %v3585_v18 = vpop.xlane.xlu1 %3584  ;;  %v3857_v32 = vpack.c.bf16 %v3854_v30, %v3853_v43 }
0x17f4   :  { %4712 = vrcp.f32 %v3585_v18  ;;  %v3851_v18 = vld [vmem:[#allocation2 + $0x240] sm:$0xff] }
0x17f6   :  { %v3588_v8 = vpop.xlane.xlu0 %3587 }
0x17f7   :  { %4714 = vrcp.f32 %v3588_v8  ;;  %v3773_v35 = vpop.xlane.xlu1 %3772  ;;  %v3852_v8 = vld [vmem:[#allocation2 + $0x248] sm:$0xff] }
0x17f8   :  { %v3779_v41 = vsub.f32 %v3759_v4, %v3773_v35  ;;  %v3856_v35 = vpack.c.bf16 %v3852_v8, %v3851_v18 }
0x17fa   :  { %v3785_v23 = vmul.f32 1.442695, %v3779_v41  ;;  %v3776_v47 = vpop.xlane.xlu0 %3775 }
0x17fb   :  { %v3780_v16 = vsub.f32 %v3762_v50, %v3776_v47  ;;  %v3767_v61 = vpop.xlane.xlu1 %3766 }
0x17fc   :  { %4716 = vpow2.f32 %v3785_v23  ;;  %v3777_v60 = vsub.f32 %v3751_v46, %v3767_v61  ;;  %v4709_v33 = vpop.eup %4708 }
0x17fd   :  { %v3787_v31 = vmul.f32 1.442695, %v3780_v16  ;;  %v3601_v2 = vmul.f32 %v4709_v33, %v4701_v14  ;;  %v3655_v14 = vpack.c.bf16 %v3652_v0, %v3651_v54 }
0x17fe   :  { %v3781_v62 = vmul.f32 1.442695, %v3777_v60  ;;  %v3770_v57 = vpop.xlane.xlu0 %3769 }
0x17ff   :  { %4718 = vpow2.f32 %v3787_v31  ;;  %v3778_v26 = vsub.f32 %v3754_v22, %v3770_v57 }
0x1800   :  { %v4711_v42 = vpop.eup %4710  ;;  %4720 = vpow2.f32 %v3781_v62 }
0x1801   :  { %v3783_v5 = vmul.f32 1.442695, %v3778_v26  ;;  %v3602_v24 = vmul.f32 %v4711_v42, %v4703_v44  ;;  %v4713_v3 = vpop.eup %4712 }
0x1802   :  { %v3599_v28 = vmul.f32 %v4713_v3, %v4705_v37 }
0x1803   :  { %4722 = vpow2.f32 %v3783_v5  ;;  %v3605_v7 = vpack.c.bf16 %v3602_v24, %v3601_v2 }
0x1804   :  { %v4715_v13 = vpop.eup %4714 }
0x1805   :  { %4573 = vmatpush3.bf16.msra.mxu0 %v3605_v7  ;;  %v3600_v45 = vmul.f32 %v4715_v13, %v4707_v9 }
0x1806   :  { %4574 = vmatprep.subr.bf16.mxu0 %v4758_v55 }
0x1807   :  { %v3604_v19 = vpack.c.bf16 %v3600_v45, %v3599_v28 }
0x1809   :  { %v4717_v21 = vpop.eup %4716  ;;  %4575 = vmatpush3.bf16.msra.mxu0 %v3604_v19 }
0x180a   :  { %v3795_v48 = vsel %vm288_vm1, %v4717_v21, 0.0  ;;  %4580 = vmatprep.subr.bf16.mxu0 %v4758_v55 }
0x180b   :  { %3796 = vadd.xlane.f32.xlu1 %v3795_v48 }
0x180c   :  { %v4719_v10 = vpop.eup %4718  ;;  %4577 = vmatmul.mubr.msk.bf16.vlgmr.msra.gmra.mxu0 %vm288_vm1, %v3603_v20 }
0x180d   :  { %v4721_v27 = vpop.eup %4720  ;;  %v3798_v6 = vsel %vm288_vm1, %v4719_v10, 0.0  ;;  %4584 = vmatprep.mubr.msk.bf16.mxu0 %vm4759_vm4, %v4758_v55  ;;  %4581 = vmatpush3.bf16.msra.mxu0 %v3655_v14 }
0x180e   :  { %3799 = vadd.xlane.f32.xlu0 %v3798_v6  ;;  %v3789_v59 = vsel %vm288_vm1, %v4721_v27, 0.0  ;;  %4582 = vmatprep.subr.bf16.mxu0 %v4758_v55 }
0x180f   :  { %3790 = vadd.xlane.f32.xlu1 %v3789_v59 }
0x1810   :  { %v4723_v15 = vpop.eup %4722 }
0x1811   :  { %v3792_v53 = vsel %vm288_vm1, %v4723_v15, 0.0  ;;  %4583 = vmatpush3.bf16.msra.mxu0 %v3654_v17 }
0x1812   :  { %3793 = vadd.xlane.f32.xlu0 %v3792_v53  ;;  %4596 = vmatprep.subr.bf16.mxu0 %v4758_v55 }
0x1894   :  { %v3797_v37 = vpop.xlane.xlu1 %3796 }
0x1897   :  { %v3800_v44 = vpop.xlane.xlu0 %3799 }
0x1898   :  { %4724 = vrcp.f32 %v3800_v44  ;;  %v3791_v4 = vpop.xlane.xlu1 %3790 }
0x1899   :  { %4726 = vrcp.f32 %v3797_v37 }
0x189b   :  { %v3794_v63 = vpop.xlane.xlu0 %3793 }
0x189c   :  { %4728 = vrcp.f32 %v3794_v63 }
0x189d   :  { %4730 = vrcp.f32 %v3791_v4 }
0x18a5   :  { %v4725_v29 = vpop.eup %4724 }
0x18a6   :  { %v4727_v52 = vpop.eup %4726  ;;  %v3808_v9 = vmul.f32 %v4725_v29, %v4719_v10 }
0x18a7   :  { %v3807_v46 = vmul.f32 %v4727_v52, %v4717_v21 }
0x18a9   :  { %v4729_v50 = vpop.eup %4728  ;;  %v3810_v22 = vpack.c.bf16 %v3808_v9, %v3807_v46 }
0x18aa   :  { %v4731_v1 = vpop.eup %4730  ;;  %v3806_v38 = vmul.f32 %v4729_v50, %v4723_v15 }
0x18ab   :  { %v3805_v11 = vmul.f32 %v4731_v1, %v4721_v27 }
0x18ad   :  { %v3809_v34 = vpack.c.bf16 %v3806_v38, %v3805_v11 }
0x18cc   :  { %v3643_v39 = vpop.f32.mrf.mxu0 }
0x18cd   :  { %v3653_v36 = vpack.c.bf16 %v3643_v39, %v3643_v39 }
0x18ce   :  { %v4578_v58 = vpop.f32.mrf.mxu0 }
0x18cf   :  { %4585 = vmatmul.mubr.msk.bf16.vlgmr.msra.gmra.mxu0 %vm288_vm1, %v3653_v36 }
0x18d0   :  { %4597 = vmatpush3.bf16.msra.mxu0 %v3810_v22  ;;  %v3646_v51 = vpop.f32.mrf.mxu0  ;;  %4600 = vmatprep.mubr.msk.bf16.mxu0 %vm4759_vm4, %v4758_v55 }
0x18d1   :  { %4598 = vmatprep.subr.bf16.mxu0 %v4758_v55 }
0x18d2   :  { %v4579_v40 = vpop.f32.mrf.mxu0 }
0x18d4   :  { %4599 = vmatpush3.bf16.msra.mxu0 %v3809_v34 }
0x18d5   :  { %4604 = vmatprep.subr.bf16.mxu0 %v4758_v55 }
0x18d7   :  { %4601 = vmatmul.mubr.msk.bf16.vlgmr.msra.gmra.mxu0 %vm288_vm1, %v3603_v20 }
0x18d8   :  { %4608 = vmatprep.mubr.msk.bf16.mxu0 %vm4759_vm4, %v4758_v55  ;;  %4605 = vmatpush3.bf16.msra.mxu0 %v3857_v32 }
0x18d9   :  { %4606 = vmatprep.subr.bf16.mxu0 %v4758_v55 }
0x18dc   :  { %4607 = vmatpush3.bf16.msra.mxu0 %v3856_v35 }
0x198f   :  { %v3693_v41 = vpop.f32.mrf.mxu0 }
0x1990   :  { %v3699_v23 = vadd.f32 %v3693_v41, %v5340_v25 }
0x1991   :  { %v4586_v47 = vpop.f32.mrf.mxu0 }
0x1993   :  { %v3696_v16 = vpop.f32.mrf.mxu0 }
0x1995   :  { %v4587_v61 = vpop.f32.mrf.mxu0 }
0x1997   :  { %v3845_v60 = vpop.f32.mrf.mxu0 }
0x1998   :  { %v3855_v31 = vpack.c.bf16 %v3845_v60, %v3845_v60 }
0x1999   :  { %v4602_v33 = vpop.f32.mrf.mxu0 }
0x199a   :  { %4609 = vmatmul.mubr.msk.bf16.vlgmr.msra.gmra.mxu0 %vm288_vm1, %v3855_v31 }
0x199b   :  { %v3848_v62 = vpop.f32.mrf.mxu0 }
0x199d   :  { %v4603_v57 = vpop.f32.mrf.mxu0 }
0x1a5a   :  { %v3895_v26 = vpop.f32.mrf.mxu0 }
0x1a5b   :  { %v3901_v42 = vadd.f32 %v3895_v26, %v3699_v23 }
0x1a5c   :  { %v4610_v55 = vpop.f32.mrf.mxu0 }
0x1a5d   :  { %3902 = vst [vmem:[%s5369_s2] sm:$0xff] %v3901_v42 }
0x1a5e   :  { %v3898_v5 = vpop.f32.mrf.mxu0 }
0x1a60   :  { %v4611_v2 = vpop.f32.mrf.mxu0 }
0x1a61   :  { %3907 = vsyncpa [#allocation3], 1 }

</bundles_post_ra>
